<compile_context>
chip_gen: v7x
topology: tpu7x:2x2x1
jax: 0.10.0
libtpu: 0.0.40
codegen_flags: <defaults>
</compile_context>

<pallas_src>
import copy
from collections import OrderedDict
from operator import itemgetter

import numpy as np
import jax
import jax.numpy as jnp
from jax import lax
from jax.experimental import pallas as pl
from jax.experimental.pallas import tpu as pltpu


# Set to jnp.bfloat16 on v6e/v7x for ~2x MXU throughput (elementwise math and
# all accumulators stay f32 via preferred_element_type).  Kept f32 by default
# so v5e (no bf16 VPU/EUP) and the f32 reference check match closely.
MXU_DTYPE = jnp.float32


def _round_up(x, m):
    return ((x + m - 1) // m) * m


def _pad_axis(a, axis, new_size):
    pad = new_size - a.shape[axis]
    if pad == 0:
        return a
    widths = [(0, 0)] * a.ndim
    widths[axis] = (0, pad)
    return jnp.pad(a, widths)


def _pad_gates(w, H, Hp):
    # (..., 3H) -> (..., 3Hp): pad each of the r/z/n gates separately so every
    # gate slice starts on a 128-lane boundary inside the kernel.
    parts = [_pad_axis(w[..., g * H:(g + 1) * H], -1, Hp) for g in range(3)]
    return jnp.concatenate(parts, axis=-1)


# -----------------------------------------------------------------------------
# Pallas kernel 1: AttentionalBiGRU
#   masked bidirectional GRU over time  +  lin/tanh/att masked-softmax pooling
#   - input projections hoisted out of the recurrence (one big MXU matmul)
#   - fwd/bwd recurrences fused into one unrolled loop (only h @ whh serial)
#   - attention pooling fully vectorized (single matmul + axis-0 reductions)
# -----------------------------------------------------------------------------
def att_bigru_kernel(x_ref, mask_ref,
                     wih_f_ref, whh_f_ref, bih_f_ref, bhh_f_ref,
                     wih_b_ref, whh_b_ref, bih_b_ref, bhh_b_ref,
                     wlin_ref, blin_ref, watt_ref,
                     out_ref,
                     gi_f_ref, gi_b_ref, enc_f_ref, enc_b_ref):
    T, B, E = x_ref.shape
    Hp = whh_f_ref.shape[0]          # padded hidden size (multiple of 128)
    G = 3 * Hp

    # ---- hoisted input projections: one large MXU matmul per direction ------
    x_flat = x_ref[...].reshape(T * B, E).astype(MXU_DTYPE)
    gi_f_ref[...] = (
        jnp.dot(x_flat, wih_f_ref[...].astype(MXU_DTYPE),
                preferred_element_type=jnp.float32) + bih_f_ref[...]
    ).reshape(T, B, G)
    gi_b_ref[...] = (
        jnp.dot(x_flat, wih_b_ref[...].astype(MXU_DTYPE),
                preferred_element_type=jnp.float32) + bih_b_ref[...]
    ).reshape(T, B, G)

    whh_f = whh_f_ref[...].astype(MXU_DTYPE)
    whh_b = whh_b_ref[...].astype(MXU_DTYPE)
    bhh_f = bhh_f_ref[...]
    bhh_b = bhh_b_ref[...]

    def gru_gates(gi, gh, h):
        # PyTorch GRU gate order: r, z, n (each gate lane-aligned at Hp)
        r = jax.nn.sigmoid(gi[:, 0:Hp] + gh[:, 0:Hp])
        z = jax.nn.sigmoid(gi[:, Hp:2 * Hp] + gh[:, Hp:2 * Hp])
        n = jnp.tanh(gi[:, 2 * Hp:G] + r * gh[:, 2 * Hp:G])
        return (1.0 - z) * n + z * h

    # ---- fused forward/backward recurrence (hidden state frozen and output
    #      zeroed on padded steps, reproducing pack_padded_sequence) ----------
    def step(t, carry):
        hf, hb = carry
        tb = T - 1 - t
        m_f = mask_ref[t]                       # (B, 1)
        m_b = mask_ref[tb]
        gh_f = jnp.dot(hf.astype(MXU_DTYPE), whh_f,
                       preferred_element_type=jnp.float32) + bhh_f
        gh_b = jnp.dot(hb.astype(MXU_DTYPE), whh_b,
                       preferred_element_type=jnp.float32) + bhh_b
        hf_new = gru_gates(gi_f_ref[t], gh_f, hf)
        hb_new = gru_gates(gi_b_ref[tb], gh_b, hb)
        hf = jnp.where(m_f > 0.5, hf_new, hf)
        hb = jnp.where(m_b > 0.5, hb_new, hb)
        enc_f_ref[t] = hf * m_f
        enc_b_ref[tb] = hb * m_b
        return hf, hb

    h0 = jnp.zeros((B, Hp), jnp.float32)
    lax.fori_loop(0, T, step, (h0, h0), unroll=True)

    # ---- vectorized attention pooling (no per-timestep loop) ----------------
    enc = jnp.concatenate([enc_f_ref[...], enc_b_ref[...]], axis=-1)  # (T,B,2Hp)
    emb = jnp.tanh(
        jnp.dot(enc.reshape(T * B, 2 * Hp).astype(MXU_DTYPE),
                wlin_ref[...].astype(MXU_DTYPE),
                preferred_element_type=jnp.float32) + blin_ref[...])
    logit = jnp.sum(emb.reshape(T, B, emb.shape[-1]) * watt_ref[...],
                    axis=-1, keepdims=True)                           # (T,B,1)
    # TODO(synk): keeps the module's exact masked softmax (no max subtraction);
    # a max-subtracted form is advisable if logits can overflow in production.
    e = jnp.exp(logit) * mask_ref[...]                                # (T,B,1)
    num = jnp.sum(e * enc, axis=0)                                    # (B,2Hp)
    den = jnp.sum(e, axis=0)                                          # (B,1)
    out_ref[...] = num / (den + 1e-4)


def attentional_bigru_pallas(x_tm, mask_tm, p):
    T, B, E = x_tm.shape
    H = p['whh_f'].shape[0]
    Hp = _round_up(H, 128)
    Ep = _round_up(E, 128)
    Bp = _round_up(B, 8)
    Np = _round_up(2 * H, 128)                    # natt (lin/att output width)

    # zero-pad activations / mask (padded lanes & rows stay exactly zero
    # through the GRU because padded weight rows/cols are zero).
    x_p = _pad_axis(_pad_axis(x_tm, 1, Bp), 2, Ep)
    m_p = _pad_axis(mask_tm, 1, Bp)

    def pad_ih(w):                                # (E, 3H) -> (Ep, 3Hp)
        return _pad_gates(_pad_axis(w, 0, Ep), H, Hp)

    def pad_hh(w):                                # (H, 3H) -> (Hp, 3Hp)
        return _pad_gates(_pad_axis(w, 0, Hp), H, Hp)

    def pad_b(b):                                 # (1, 3H) -> (1, 3Hp)
        return _pad_gates(b, H, Hp)

    wlin = p['wlin']                              # (2H, 2H)
    wlin_p = jnp.concatenate([_pad_axis(wlin[:H], 0, Hp),
                              _pad_axis(wlin[H:], 0, Hp)], axis=0)
    wlin_p = _pad_axis(wlin_p, 1, Np)             # (2Hp, Np)
    blin_p = _pad_axis(p['blin'], 1, Np)          # (1, Np)
    watt_p = _pad_axis(p['watt'], 1, Np)          # (1, Np)

    args = (x_p, m_p,
            pad_ih(p['wih_f']), pad_hh(p['whh_f']), pad_b(p['bih_f']), pad_b(p['bhh_f']),
            pad_ih(p['wih_b']), pad_hh(p['whh_b']), pad_b(p['bih_b']), pad_b(p['bhh_b']),
            wlin_p, blin_p, watt_p)
    vmem = pl.BlockSpec(memory_space=pltpu.MemorySpace.VMEM)

    # TODO(synk): for production-sized B on v7x, add a ("parallel",) grid over
    # batch tiles so both TensorCores are used; at these sizes grid=() is fine.
    out_p = pl.pallas_call(
        att_bigru_kernel,
        out_shape=jax.ShapeDtypeStruct((Bp, 2 * Hp), jnp.float32),
        in_specs=[vmem] * len(args),
        out_specs=vmem,
        scratch_shapes=[
            pltpu.VMEM((T, Bp, 3 * Hp), jnp.float32),   # hoisted gi forward
            pltpu.VMEM((T, Bp, 3 * Hp), jnp.float32),   # hoisted gi backward
            pltpu.VMEM((T, Bp, Hp), jnp.float32),       # enc forward
            pltpu.VMEM((T, Bp, Hp), jnp.float32),       # enc backward
        ],
    )(*args)
    # strip padding: real output is [enc_f(:H) | enc_b(:H)]
    return jnp.concatenate([out_p[:B, :H], out_p[:B, Hp:Hp + H]], axis=-1)


# -----------------------------------------------------------------------------
# Pallas kernel 2: mention ranking
#   cosine_similarity(doc, cand) & cosine_similarity(sent, cand) -> Linear(2,1)
#   - rsqrt instead of sqrt+divide, shared candidate squared-norms
#   - lane-dense padded (M, Cp) output
# -----------------------------------------------------------------------------
def mention_rank_kernel(doc_ref, sent_ref, data_ref, w_ref, b_ref, out_ref):
    eps = 1e-8
    doc = doc_ref[...]                                        # (M, D)
    sent = sent_ref[...]                                      # (M, D)
    data = data_ref[...]                                      # (M, C, D)
    data_n2 = jnp.sum(data * data, axis=-1)                   # (M, C) shared
    doc_dot = jnp.sum(doc[:, None, :] * data, axis=-1)        # (M, C)
    sent_dot = jnp.sum(sent[:, None, :] * data, axis=-1)      # (M, C)
    doc_n2 = jnp.sum(doc * doc, axis=-1, keepdims=True)       # (M, 1)
    sent_n2 = jnp.sum(sent * sent, axis=-1, keepdims=True)    # (M, 1)
    # dot / max(||a||*||d||, eps) == dot * rsqrt(max(||a||^2*||d||^2, eps^2))
    doc_sim = doc_dot * lax.rsqrt(jnp.maximum(doc_n2 * data_n2, eps * eps))
    sent_sim = sent_dot * lax.rsqrt(jnp.maximum(sent_n2 * data_n2, eps * eps))
    out_ref[...] = doc_sim * w_ref[0] + sent_sim * w_ref[1] + b_ref[0]


def mention_rank_pallas(doc_view, sent_view, data_t, w, b):
    M, C, D = data_t.shape
    Mp = _round_up(M, 8)
    Cp = _round_up(C, 128)
    Dp = _round_up(D, 128)
    doc_p = _pad_axis(_pad_axis(doc_view, 0, Mp), 1, Dp)
    sent_p = _pad_axis(_pad_axis(sent_view, 0, Mp), 1, Dp)
    data_p = _pad_axis(_pad_axis(_pad_axis(data_t, 0, Mp), 1, Cp), 2, Dp)
    vmem = pl.BlockSpec(memory_space=pltpu.MemorySpace.VMEM)
    smem = pl.BlockSpec(memory_space=pltpu.MemorySpace.SMEM)
    # TODO(synk): for production M, tile M with a ("parallel",) grid and route
    # the dots through a batched dot_general; at these sizes grid=() is fine.
    out_p = pl.pallas_call(
        mention_rank_kernel,
        out_shape=jax.ShapeDtypeStruct((Mp, Cp), jnp.float32),
        in_specs=[vmem, vmem, vmem, smem, smem],
        out_specs=vmem,
    )(doc_p, sent_p, data_p, w, b)
    return out_p[:M, :C]


# -----------------------------------------------------------------------------
# Pure-JAX references (numerical sanity check of the kernels)
# -----------------------------------------------------------------------------
def att_bigru_ref(x_tm, mask_tm, p):
    T, B, _ = x_tm.shape
    H = p['whh_f'].shape[0]

    def gru_step(x_t, h, wih, whh, bih, bhh):
        gi = x_t @ wih + bih
        gh = h @ whh + bhh
        r = jax.nn.sigmoid(gi[:, :H] + gh[:, :H])
        z = jax.nn.sigmoid(gi[:, H:2 * H] + gh[:, H:2 * H])
        n = jnp.tanh(gi[:, 2 * H:] + r * gh[:, 2 * H:])
        return (1.0 - z) * n + z * h

    hf = jnp.zeros((B, H), jnp.float32)
    hb = jnp.zeros((B, H), jnp.float32)
    enc_f, enc_b = [], [None] * T
    for t in range(T):
        m = mask_tm[t]
        hf = jnp.where(m > 0.5, gru_step(x_tm[t], hf, p['wih_f'], p['whh_f'],
                                         p['bih_f'], p['bhh_f']), hf)
        enc_f.append(hf * m)
    for t in range(T - 1, -1, -1):
        m = mask_tm[t]
        hb = jnp.where(m > 0.5, gru_step(x_tm[t], hb, p['wih_b'], p['whh_b'],
                                         p['bih_b'], p['bhh_b']), hb)
        enc_b[t] = hb * m
    enc = jnp.concatenate([jnp.stack(enc_f), jnp.stack(enc_b)], axis=-1)
    emb = jnp.tanh(enc @ p['wlin'] + p['blin'])
    logit = jnp.sum(emb * p['watt'], axis=-1)                 # (T, B)
    e = jnp.exp(logit) * mask_tm[..., 0]
    att = e / (jnp.sum(e, axis=0, keepdims=True) + 1e-4)
    return jnp.sum(att[:, :, None] * enc, axis=0)


def mention_rank_ref(doc, sent, data, w, b):
    eps = 1e-8

    def cos(a, d):
        dot = jnp.sum(a[:, None, :] * d, axis=-1)
        return dot / jnp.maximum(jnp.linalg.norm(a, axis=-1, keepdims=True) *
                                 jnp.linalg.norm(d, axis=-1), eps)

    return cos(doc, data) * w[0] + cos(sent, data) * w[1] + b[0]


# -----------------------------------------------------------------------------
# Host-side glue (HANConnect plumbing: embedding lookup, reorder, mention setup)
# -----------------------------------------------------------------------------
def _reorder_sent(sents, stats):
    sort_r = sorted([(l, r, s, m, i) for i, (l, r, s, m) in enumerate(stats)],
                    key=itemgetter(0, 1, 2))
    builder, menbuilder = OrderedDict(), OrderedDict()
    for _, doc_id, _, sent_view_mentions, i in sort_r:
        if doc_id not in builder:
            builder[doc_id] = [i]
            menbuilder[doc_id] = list(sent_view_mentions)
        else:
            builder[doc_id].append(i)
            menbuilder[doc_id].extend(sent_view_mentions)
    list_r = list(reversed(builder))
    n_docs, max_len, D = len(builder), len(builder[list_r[0]]), sents.shape[1]
    docs = jnp.zeros((n_docs, max_len, D), dtype=sents.dtype)
    lens, real_order, mentions_l, sent_l = [], [], [], []
    for i, x in enumerate(list_r):
        idx = builder[x]
        docs = docs.at[i, 0:len(idx), :].set(sents[np.asarray(idx), :])
        sent_l.append(idx)
        mentions_l.append(menbuilder[x])
        lens.append(len(idx))
        real_order.append(x)
    real_order = sorted(range(len(real_order)), key=lambda k: real_order[k])
    return docs, lens, real_order, mentions_l, sent_l


def get_mention_ranks(params, ent_dic, doc_emb, doc_mentions, sents_emb,
                      sents_mentions, rank_fn):
    doc_num = np.array([len(m) for m in doc_mentions], dtype=np.int32)
    sent_num = np.array([len(m) for m in sents_mentions], dtype=np.int32)
    mentions_doc_view = doc_emb[np.repeat(np.arange(len(doc_num)), doc_num)]
    mentions_sent_view = sents_emb[np.repeat(np.arange(len(sent_num)), sent_num)]
    mentions_list = [item for sub in doc_mentions for item in sub]
    gold_list = [g for _, g, _ in mentions_list]
    max_size = max(len(x[0]) for x in mentions_list)
    size_mask = [len(x[0]) for x in mentions_list]
    D = doc_emb.shape[1]
    data_np = np.zeros((len(mentions_list), max_size, D), dtype=np.float32)
    for i, (cands, _, _) in enumerate(mentions_list):
        for j, c in enumerate(cands):
            # TODO(synk): the PyTorch module inserts fresh normalized-random
            # embeddings for unseen candidates at forward time; ent_dic is
            # pre-populated deterministically here instead.
            data_np[i, j, :] = ent_dic[c]
    out_un = rank_fn(mentions_doc_view, mentions_sent_view, jnp.asarray(data_np),
                     params['lin_out_w'], params['lin_out_b'])
    return out_un, gold_list, size_mask


def han_connect_forward(params, ent_dic, batch_sent, stats, attn_fn, rank_fn):
    sent_len, doc_len, doc_id, sent_id, mentions = zip(*stats)
    mentions_temp = copy.deepcopy(list(mentions))

    # embedding lookup (glue).  TODO(synk): F.dropout is identity in eval mode.
    emb_w = params['embed'][np.asarray(batch_sent)]            # (B, T, E)
    T = batch_sent.shape[1]
    emb_tm = jnp.transpose(emb_w, (1, 0, 2))                   # (T, B, E)
    mask_w = (np.arange(T)[:, None] < np.asarray(sent_len)[None, :])
    mask_w = jnp.asarray(mask_w[..., None].astype(np.float32))
    sent_view = attn_fn(emb_tm, mask_w, params['word'])        # (B, hid)

    doc_embs, lens, real_order, mentions_l, sent_list = _reorder_sent(
        sent_view, list(zip(doc_len, doc_id, sent_id, mentions)))
    Td = doc_embs.shape[1]
    docs_tm = jnp.transpose(doc_embs, (1, 0, 2))               # (Td, n_docs, hid)
    mask_s = (np.arange(Td)[:, None] < np.asarray(lens)[None, :])
    mask_s = jnp.asarray(mask_s[..., None].astype(np.float32))
    doc_view = attn_fn(docs_tm, mask_s, params['sent'])        # (n_docs, hid)

    final_docs_view = doc_view[np.asarray(real_order)]
    final_mentions_l = [mentions_l[i] for i in real_order]
    final_sent_list = [item for i in real_order for item in sent_list[i]]
    final_sent_mentions = [mentions_temp[i] for i in final_sent_list]
    final_sent_view = sent_view[np.asarray(final_sent_list)]
    return get_mention_ranks(params, ent_dic, final_docs_view, final_mentions_l,
                             final_sent_view, final_sent_mentions, rank_fn)


# -----------------------------------------------------------------------------
if __name__ == "__main__":
    ntoken, emb_size, hid_size = 50, 32, 32
    rnn_size = hid_size // 2

    key = jax.random.PRNGKey(0)
    k_emb, k_word, k_sent, k_lin, k_ent, k_tok = jax.random.split(key, 6)

    def rnd(k, shape, scale=0.25):
        return (scale * jax.random.normal(k, shape)).astype(jnp.float32)

    def init_bigru(k, inp, H):
        ks = jax.random.split(k, 11)
        return {
            'wih_f': rnd(ks[0], (inp, 3 * H)), 'whh_f': rnd(ks[1], (H, 3 * H)),
            'bih_f': rnd(ks[2], (1, 3 * H)), 'bhh_f': rnd(ks[3], (1, 3 * H)),
            'wih_b': rnd(ks[4], (inp, 3 * H)), 'whh_b': rnd(ks[5], (H, 3 * H)),
            'bih_b': rnd(ks[6], (1, 3 * H)), 'bhh_b': rnd(ks[7], (1, 3 * H)),
            'wlin': rnd(ks[8], (2 * H, 2 * H)), 'blin': rnd(ks[9], (1, 2 * H)),
            'watt': rnd(ks[10], (1, 2 * H)),
        }

    embed = rnd(k_emb, (ntoken, emb_size), 0.3).at[0].set(0.0)   # padding_idx=0
    params = {
        'embed': embed,
        'word': init_bigru(k_word, emb_size, rnn_size),
        'sent': init_bigru(k_sent, hid_size, rnn_size),
        'lin_out_w': rnd(k_lin, (2,), 0.5),           # nn.Linear(2, 1) weight
        'lin_out_b': jnp.array([0.05], jnp.float32),  # nn.Linear(2, 1) bias
    }

    # synthetic batch: 5 sentences (max len 8, lengths descending) over 2 docs
    # stats entries: (sent_len, doc_len, doc_id, sent_id, mentions)
    stats = [
        (8, 3, 0, 0, [([1, 2, 3], 1, 0)]),
        (7, 2, 1, 0, [([4, 5], 4, 0), ([2, 6, 7], 6, 0)]),
        (6, 3, 0, 1, [([3, 8], 8, 1)]),
        (5, 2, 1, 1, [([1, 9, 10, 5], 9, 1)]),
        (4, 3, 0, 2, [([11, 12], 11, 2)]),
    ]
    sent_lens = np.array([s[0] for s in stats])
    tok = np.asarray(jax.random.randint(k_tok, (len(stats), int(sent_lens.max())),
                                        1, ntoken))
    batch_sent = np.where(np.arange(tok.shape[1])[None, :] < sent_lens[:, None],
                          tok, 0).astype(np.int32)

    # deterministic, normalized entity dictionary (emb_size == hid_size)
    all_cands = sorted({c for s in stats for cands, _, _ in s[4] for c in cands})
    ent_dic, ek = {}, k_ent
    for c in all_cands:
        ek, sk = jax.random.split(ek)
        v = np.asarray(jax.random.normal(sk, (hid_size,), dtype=jnp.float32))
        ent_dic[c] = v / np.linalg.norm(v)

    out_un, gold_list, size_mask = han_connect_forward(
        params, ent_dic, batch_sent, stats,
        attn_fn=attentional_bigru_pallas, rank_fn=mention_rank_pallas)
    out_un = jax.block_until_ready(out_un)

    # pure-JAX reference check
    ref_un, ref_gold, ref_mask = han_connect_forward(
        params, ent_dic, batch_sent, stats,
        attn_fn=att_bigru_ref, rank_fn=mention_rank_ref)
    np.testing.assert_allclose(np.asarray(out_un), np.asarray(ref_un),
                               rtol=1e-2, atol=1e-2)
    assert gold_list == ref_gold and size_mask == ref_mask

    print("KERNEL_OK")
</pallas_src>

<mosaic_0001>
module attributes {stable_mosaic.version = 11 : i64} {
  func.func @att_bigru_kernel(%arg0: memref<8x8x128xf32, #tpu.memory_space<vmem>>, %arg1: memref<8x8x1xf32, #tpu.memory_space<vmem>>, %arg2: memref<128x384xf32, #tpu.memory_space<vmem>>, %arg3: memref<128x384xf32, #tpu.memory_space<vmem>>, %arg4: memref<1x384xf32, #tpu.memory_space<vmem>>, %arg5: memref<1x384xf32, #tpu.memory_space<vmem>>, %arg6: memref<128x384xf32, #tpu.memory_space<vmem>>, %arg7: memref<128x384xf32, #tpu.memory_space<vmem>>, %arg8: memref<1x384xf32, #tpu.memory_space<vmem>>, %arg9: memref<1x384xf32, #tpu.memory_space<vmem>>, %arg10: memref<256x128xf32, #tpu.memory_space<vmem>>, %arg11: memref<1x128xf32, #tpu.memory_space<vmem>>, %arg12: memref<1x128xf32, #tpu.memory_space<vmem>>, %arg13: memref<8x256xf32, #tpu.memory_space<vmem>>, %arg14: memref<8x8x384xf32, #tpu.memory_space<vmem>>, %arg15: memref<8x8x384xf32, #tpu.memory_space<vmem>>, %arg16: memref<8x8x128xf32, #tpu.memory_space<vmem>>, %arg17: memref<8x8x128xf32, #tpu.memory_space<vmem>>) attributes {dimension_semantics = [], scalar_prefetch = 0 : i64, scratch_operands = 4 : i64, tpu.core_type = #tpu.core_type<tc>} {
    %c0 = arith.constant 0 : index
    %c0_0 = arith.constant 0 : index
    %c0_1 = arith.constant 0 : index
    %0 = vector.load %arg0[%c0, %c0_0, %c0_1] : memref<8x8x128xf32, #tpu.memory_space<vmem>>, vector<8x8x128xf32>
    %1 = vector.shape_cast %0 : vector<8x8x128xf32> to vector<64x128xf32>
    %c0_2 = arith.constant 0 : index
    %c0_3 = arith.constant 0 : index
    %2 = vector.load %arg2[%c0_2, %c0_3] : memref<128x384xf32, #tpu.memory_space<vmem>>, vector<128x384xf32>
    %cst = arith.constant dense<0.000000e+00> : vector<64x384xf32>
    %3 = tpu.matmul %1, %2, %cst {dimension_numbers = #tpu.dot_dimension_numbers<[1], [0], [0], [1], [0, 0, 1, 1], [], []>} : vector<64x128xf32>, vector<128x384xf32>, vector<64x384xf32> -> vector<64x384xf32>
    %c0_4 = arith.constant 0 : index
    %c0_5 = arith.constant 0 : index
    %4 = vector.load %arg4[%c0_4, %c0_5] : memref<1x384xf32, #tpu.memory_space<vmem>>, vector<1x384xf32>
    %5 = vector.broadcast %4 : vector<1x384xf32> to vector<64x384xf32>
    %6 = arith.addf %3, %5 : vector<64x384xf32>
    %7 = vector.shape_cast %6 : vector<64x384xf32> to vector<8x8x384xf32>
    %c0_6 = arith.constant 0 : index
    %c0_7 = arith.constant 0 : index
    %c0_8 = arith.constant 0 : index
    %8 = vector.load %arg14[%c0_6, %c0_7, %c0_8] : memref<8x8x384xf32, #tpu.memory_space<vmem>>, vector<8x8x384xf32>
    tpu.vector_store %arg14[%c0_6, %c0_7, %c0_8], %7 {strides = array<i32>} : memref<8x8x384xf32, #tpu.memory_space<vmem>>, vector<8x8x384xf32>,
    %c0_9 = arith.constant 0 : index
    %c0_10 = arith.constant 0 : index
    %9 = vector.load %arg6[%c0_9, %c0_10] : memref<128x384xf32, #tpu.memory_space<vmem>>, vector<128x384xf32>
    %cst_11 = arith.constant dense<0.000000e+00> : vector<64x384xf32>
    %10 = tpu.matmul %1, %9, %cst_11 {dimension_numbers = #tpu.dot_dimension_numbers<[1], [0], [0], [1], [0, 0, 1, 1], [], []>} : vector<64x128xf32>, vector<128x384xf32>, vector<64x384xf32> -> vector<64x384xf32>
    %c0_12 = arith.constant 0 : index
    %c0_13 = arith.constant 0 : index
    %11 = vector.load %arg8[%c0_12, %c0_13] : memref<1x384xf32, #tpu.memory_space<vmem>>, vector<1x384xf32>
    %12 = vector.broadcast %11 : vector<1x384xf32> to vector<64x384xf32>
    %13 = arith.addf %10, %12 : vector<64x384xf32>
    %14 = vector.shape_cast %13 : vector<64x384xf32> to vector<8x8x384xf32>
    %c0_14 = arith.constant 0 : index
    %c0_15 = arith.constant 0 : index
    %c0_16 = arith.constant 0 : index
    %15 = vector.load %arg15[%c0_14, %c0_15, %c0_16] : memref<8x8x384xf32, #tpu.memory_space<vmem>>, vector<8x8x384xf32>
    tpu.vector_store %arg15[%c0_14, %c0_15, %c0_16], %14 {strides = array<i32>} : memref<8x8x384xf32, #tpu.memory_space<vmem>>, vector<8x8x384xf32>,
    %c0_17 = arith.constant 0 : index
    %c0_18 = arith.constant 0 : index
    %16 = vector.load %arg3[%c0_17, %c0_18] : memref<128x384xf32, #tpu.memory_space<vmem>>, vector<128x384xf32>
    %c0_19 = arith.constant 0 : index
    %c0_20 = arith.constant 0 : index
    %17 = vector.load %arg7[%c0_19, %c0_20] : memref<128x384xf32, #tpu.memory_space<vmem>>, vector<128x384xf32>
    %c0_21 = arith.constant 0 : index
    %c0_22 = arith.constant 0 : index
    %18 = vector.load %arg5[%c0_21, %c0_22] : memref<1x384xf32, #tpu.memory_space<vmem>>, vector<1x384xf32>
    %c0_23 = arith.constant 0 : index
    %c0_24 = arith.constant 0 : index
    %19 = vector.load %arg9[%c0_23, %c0_24] : memref<1x384xf32, #tpu.memory_space<vmem>>, vector<1x384xf32>
    %cst_25 = arith.constant 0.000000e+00 : f32
    %20 = vector.broadcast %cst_25 : f32 to vector<8x128xf32>
    %c0_i32 = arith.constant 0 : i32
    %c7_i32 = arith.constant 7 : i32
    %21 = arith.subi %c7_i32, %c0_i32 : i32
    %22 = arith.index_cast %c0_i32 : i32 to index
    %c0_26 = arith.constant 0 : index
    %c0_27 = arith.constant 0 : index
    %23 = vector.load %arg1[%22, %c0_26, %c0_27] : memref<8x8x1xf32, #tpu.memory_space<vmem>>, vector<1x8x1xf32>
    %24 = vector.shape_cast %23 : vector<1x8x1xf32> to vector<8x1xf32>
    %25 = arith.index_cast %21 : i32 to index
    %c0_28 = arith.constant 0 : index
    %c0_29 = arith.constant 0 : index
    %26 = vector.load %arg1[%25, %c0_28, %c0_29] : memref<8x8x1xf32, #tpu.memory_space<vmem>>, vector<1x8x1xf32>
    %27 = vector.shape_cast %26 : vector<1x8x1xf32> to vector<8x1xf32>
    %cst_30 = arith.constant dense<0.000000e+00> : vector<8x384xf32>
    %28 = tpu.matmul %20, %16, %cst_30 {dimension_numbers = #tpu.dot_dimension_numbers<[1], [0], [0], [1], [0, 0, 1, 1], [], []>} : vector<8x128xf32>, vector<128x384xf32>, vector<8x384xf32> -> vector<8x384xf32>
    %29 = vector.broadcast %18 : vector<1x384xf32> to vector<8x384xf32>
    %30 = arith.addf %28, %29 : vector<8x384xf32>
    %cst_31 = arith.constant dense<0.000000e+00> : vector<8x384xf32>
    %31 = tpu.matmul %20, %17, %cst_31 {dimension_numbers = #tpu.dot_dimension_numbers<[1], [0], [0], [1], [0, 0, 1, 1], [], []>} : vector<8x128xf32>, vector<128x384xf32>, vector<8x384xf32> -> vector<8x384xf32>
    %32 = vector.broadcast %19 : vector<1x384xf32> to vector<8x384xf32>
    %33 = arith.addf %31, %32 : vector<8x384xf32>
    %34 = arith.index_cast %c0_i32 : i32 to index
    %c0_32 = arith.constant 0 : index
    %c0_33 = arith.constant 0 : index
    %35 = vector.load %arg14[%34, %c0_32, %c0_33] : memref<8x8x384xf32, #tpu.memory_space<vmem>>, vector<1x8x384xf32>
    %36 = vector.shape_cast %35 : vector<1x8x384xf32> to vector<8x384xf32>
    %37 = vector.extract_strided_slice %36 {offsets = [0, 0], sizes = [8, 128], strides = [1, 1]} : vector<8x384xf32> to vector<8x128xf32>
    %38 = vector.extract_strided_slice %30 {offsets = [0, 0], sizes = [8, 128], strides = [1, 1]} : vector<8x384xf32> to vector<8x128xf32>
    %39 = arith.addf %37, %38 : vector<8x128xf32>
    %40 = arith.negf %39 : vector<8x128xf32>
    %41 = math.exp %40 : vector<8x128xf32>
    %cst_34 = arith.constant 1.000000e+00 : f32
    %42 = vector.broadcast %cst_34 : f32 to vector<8x128xf32>
    %43 = arith.addf %42, %41 : vector<8x128xf32>
    %44 = arith.divf %42, %43 : vector<8x128xf32>
    %45 = vector.extract_strided_slice %36 {offsets = [0, 128], sizes = [8, 128], strides = [1, 1]} : vector<8x384xf32> to vector<8x128xf32>
    %46 = vector.extract_strided_slice %30 {offsets = [0, 128], sizes = [8, 128], strides = [1, 1]} : vector<8x384xf32> to vector<8x128xf32>
    %47 = arith.addf %45, %46 : vector<8x128xf32>
    %48 = arith.negf %47 : vector<8x128xf32>
    %49 = math.exp %48 : vector<8x128xf32>
    %cst_35 = arith.constant 1.000000e+00 : f32
    %50 = vector.broadcast %cst_35 : f32 to vector<8x128xf32>
    %51 = arith.addf %50, %49 : vector<8x128xf32>
    %52 = arith.divf %50, %51 : vector<8x128xf32>
    %53 = vector.extract_strided_slice %36 {offsets = [0, 256], sizes = [8, 128], strides = [1, 1]} : vector<8x384xf32> to vector<8x128xf32>
    %54 = vector.extract_strided_slice %30 {offsets = [0, 256], sizes = [8, 128], strides = [1, 1]} : vector<8x384xf32> to vector<8x128xf32>
    %55 = arith.mulf %44, %54 : vector<8x128xf32>
    %56 = arith.addf %53, %55 : vector<8x128xf32>
    %57 = math.tanh %56 : vector<8x128xf32>
    %cst_36 = arith.constant 1.000000e+00 : f32
    %58 = vector.broadcast %cst_36 : f32 to vector<8x128xf32>
    %59 = arith.subf %58, %52 : vector<8x128xf32>
    %60 = arith.mulf %59, %57 : vector<8x128xf32>
    %61 = arith.mulf %52, %20 : vector<8x128xf32>
    %62 = arith.addf %60, %61 : vector<8x128xf32>
    %63 = arith.index_cast %21 : i32 to index
    %c0_37 = arith.constant 0 : index
    %c0_38 = arith.constant 0 : index
    %64 = vector.load %arg15[%63, %c0_37, %c0_38] : memref<8x8x384xf32, #tpu.memory_space<vmem>>, vector<1x8x384xf32>
    %65 = vector.shape_cast %64 : vector<1x8x384xf32> to vector<8x384xf32>
    %66 = vector.extract_strided_slice %65 {offsets = [0, 0], sizes = [8, 128], strides = [1, 1]} : vector<8x384xf32> to vector<8x128xf32>
    %67 = vector.extract_strided_slice %33 {offsets = [0, 0], sizes = [8, 128], strides = [1, 1]} : vector<8x384xf32> to vector<8x128xf32>
    %68 = arith.addf %66, %67 : vector<8x128xf32>
    %69 = arith.negf %68 : vector<8x128xf32>
    %70 = math.exp %69 : vector<8x128xf32>
    %cst_39 = arith.constant 1.000000e+00 : f32
    %71 = vector.broadcast %cst_39 : f32 to vector<8x128xf32>
    %72 = arith.addf %71, %70 : vector<8x128xf32>
    %73 = arith.divf %71, %72 : vector<8x128xf32>
    %74 = vector.extract_strided_slice %65 {offsets = [0, 128], sizes = [8, 128], strides = [1, 1]} : vector<8x384xf32> to vector<8x128xf32>
    %75 = vector.extract_strided_slice %33 {offsets = [0, 128], sizes = [8, 128], strides = [1, 1]} : vector<8x384xf32> to vector<8x128xf32>
    %76 = arith.addf %74, %75 : vector<8x128xf32>
    %77 = arith.negf %76 : vector<8x128xf32>
    %78 = math.exp %77 : vector<8x128xf32>
    %cst_40 = arith.constant 1.000000e+00 : f32
    %79 = vector.broadcast %cst_40 : f32 to vector<8x128xf32>
    %80 = arith.addf %79, %78 : vector<8x128xf32>
    %81 = arith.divf %79, %80 : vector<8x128xf32>
    %82 = vector.extract_strided_slice %65 {offsets = [0, 256], sizes = [8, 128], strides = [1, 1]} : vector<8x384xf32> to vector<8x128xf32>
    %83 = vector.extract_strided_slice %33 {offsets = [0, 256], sizes = [8, 128], strides = [1, 1]} : vector<8x384xf32> to vector<8x128xf32>
    %84 = arith.mulf %73, %83 : vector<8x128xf32>
    %85 = arith.addf %82, %84 : vector<8x128xf32>
    %86 = math.tanh %85 : vector<8x128xf32>
    %cst_41 = arith.constant 1.000000e+00 : f32
    %87 = vector.broadcast %cst_41 : f32 to vector<8x128xf32>
    %88 = arith.subf %87, %81 : vector<8x128xf32>
    %89 = arith.mulf %88, %86 : vector<8x128xf32>
    %90 = arith.mulf %81, %20 : vector<8x128xf32>
    %91 = arith.addf %89, %90 : vector<8x128xf32>
    %cst_42 = arith.constant 5.000000e-01 : f32
    %92 = vector.broadcast %cst_42 : f32 to vector<8x1xf32>
    %93 = arith.cmpf ogt, %24, %92 : vector<8x1xf32>
    %94 = vector.shape_cast %93 : vector<8x1xi1> to vector<8x1xi1>
    %95 = vector.broadcast %94 : vector<8x1xi1> to vector<8x128xi1>
    %96 = arith.select %95, %62, %20 : vector<8x128xi1>, vector<8x128xf32>
    %cst_43 = arith.constant 5.000000e-01 : f32
    %97 = vector.broadcast %cst_43 : f32 to vector<8x1xf32>
    %98 = arith.cmpf ogt, %27, %97 : vector<8x1xf32>
    %99 = vector.shape_cast %98 : vector<8x1xi1> to vector<8x1xi1>
    %100 = vector.broadcast %99 : vector<8x1xi1> to vector<8x128xi1>
    %101 = arith.select %100, %91, %20 : vector<8x128xi1>, vector<8x128xf32>
    %102 = vector.broadcast %24 : vector<8x1xf32> to vector<8x128xf32>
    %103 = arith.mulf %96, %102 : vector<8x128xf32>
    %104 = arith.index_cast %c0_i32 : i32 to index
    %c0_44 = arith.constant 0 : index
    %c0_45 = arith.constant 0 : index
    %105 = vector.load %arg16[%104, %c0_44, %c0_45] : memref<8x8x128xf32, #tpu.memory_space<vmem>>, vector<1x8x128xf32>
    %106 = vector.shape_cast %105 : vector<1x8x128xf32> to vector<8x128xf32>
    %107 = vector.shape_cast %103 : vector<8x128xf32> to vector<1x8x128xf32>
    tpu.vector_store %arg16[%104, %c0_44, %c0_45], %107 {strides = array<i32>} : memref<8x8x128xf32, #tpu.memory_space<vmem>>, vector<1x8x128xf32>,
    %108 = vector.broadcast %27 : vector<8x1xf32> to vector<8x128xf32>
    %109 = arith.mulf %101, %108 : vector<8x128xf32>
    %110 = arith.index_cast %21 : i32 to index
    %c0_46 = arith.constant 0 : index
    %c0_47 = arith.constant 0 : index
    %111 = vector.load %arg17[%110, %c0_46, %c0_47] : memref<8x8x128xf32, #tpu.memory_space<vmem>>, vector<1x8x128xf32>
    %112 = vector.shape_cast %111 : vector<1x8x128xf32> to vector<8x128xf32>
    %113 = vector.shape_cast %109 : vector<8x128xf32> to vector<1x8x128xf32>
    tpu.vector_store %arg17[%110, %c0_46, %c0_47], %113 {strides = array<i32>} : memref<8x8x128xf32, #tpu.memory_space<vmem>>, vector<1x8x128xf32>,
    %c1_i32 = arith.constant 1 : i32
    %c7_i32_48 = arith.constant 7 : i32
    %114 = arith.subi %c7_i32_48, %c1_i32 : i32
    %115 = arith.index_cast %c1_i32 : i32 to index
    %c0_49 = arith.constant 0 : index
    %c0_50 = arith.constant 0 : index
    %116 = vector.load %arg1[%115, %c0_49, %c0_50] : memref<8x8x1xf32, #tpu.memory_space<vmem>>, vector<1x8x1xf32>
    %117 = vector.shape_cast %116 : vector<1x8x1xf32> to vector<8x1xf32>
    %118 = arith.index_cast %114 : i32 to index
    %c0_51 = arith.constant 0 : index
    %c0_52 = arith.constant 0 : index
    %119 = vector.load %arg1[%118, %c0_51, %c0_52] : memref<8x8x1xf32, #tpu.memory_space<vmem>>, vector<1x8x1xf32>
    %120 = vector.shape_cast %119 : vector<1x8x1xf32> to vector<8x1xf32>
    %cst_53 = arith.constant dense<0.000000e+00> : vector<8x384xf32>
    %121 = tpu.matmul %96, %16, %cst_53 {dimension_numbers = #tpu.dot_dimension_numbers<[1], [0], [0], [1], [0, 0, 1, 1], [], []>} : vector<8x128xf32>, vector<128x384xf32>, vector<8x384xf32> -> vector<8x384xf32>
    %122 = vector.broadcast %18 : vector<1x384xf32> to vector<8x384xf32>
    %123 = arith.addf %121, %122 : vector<8x384xf32>
    %cst_54 = arith.constant dense<0.000000e+00> : vector<8x384xf32>
    %124 = tpu.matmul %101, %17, %cst_54 {dimension_numbers = #tpu.dot_dimension_numbers<[1], [0], [0], [1], [0, 0, 1, 1], [], []>} : vector<8x128xf32>, vector<128x384xf32>, vector<8x384xf32> -> vector<8x384xf32>
    %125 = vector.broadcast %19 : vector<1x384xf32> to vector<8x384xf32>
    %126 = arith.addf %124, %125 : vector<8x384xf32>
    %127 = arith.index_cast %c1_i32 : i32 to index
    %c0_55 = arith.constant 0 : index
    %c0_56 = arith.constant 0 : index
    %128 = vector.load %arg14[%127, %c0_55, %c0_56] : memref<8x8x384xf32, #tpu.memory_space<vmem>>, vector<1x8x384xf32>
    %129 = vector.shape_cast %128 : vector<1x8x384xf32> to vector<8x384xf32>
    %130 = vector.extract_strided_slice %129 {offsets = [0, 0], sizes = [8, 128], strides = [1, 1]} : vector<8x384xf32> to vector<8x128xf32>
    %131 = vector.extract_strided_slice %123 {offsets = [0, 0], sizes = [8, 128], strides = [1, 1]} : vector<8x384xf32> to vector<8x128xf32>
    %132 = arith.addf %130, %131 : vector<8x128xf32>
    %133 = arith.negf %132 : vector<8x128xf32>
    %134 = math.exp %133 : vector<8x128xf32>
    %cst_57 = arith.constant 1.000000e+00 : f32
    %135 = vector.broadcast %cst_57 : f32 to vector<8x128xf32>
    %136 = arith.addf %135, %134 : vector<8x128xf32>
    %137 = arith.divf %135, %136 : vector<8x128xf32>
    %138 = vector.extract_strided_slice %129 {offsets = [0, 128], sizes = [8, 128], strides = [1, 1]} : vector<8x384xf32> to vector<8x128xf32>
    %139 = vector.extract_strided_slice %123 {offsets = [0, 128], sizes = [8, 128], strides = [1, 1]} : vector<8x384xf32> to vector<8x128xf32>
    %140 = arith.addf %138, %139 : vector<8x128xf32>
    %141 = arith.negf %140 : vector<8x128xf32>
    %142 = math.exp %141 : vector<8x128xf32>
    %cst_58 = arith.constant 1.000000e+00 : f32
    %143 = vector.broadcast %cst_58 : f32 to vector<8x128xf32>
    %144 = arith.addf %143, %142 : vector<8x128xf32>
    %145 = arith.divf %143, %144 : vector<8x128xf32>
    %146 = vector.extract_strided_slice %129 {offsets = [0, 256], sizes = [8, 128], strides = [1, 1]} : vector<8x384xf32> to vector<8x128xf32>
    %147 = vector.extract_strided_slice %123 {offsets = [0, 256], sizes = [8, 128], strides = [1, 1]} : vector<8x384xf32> to vector<8x128xf32>
    %148 = arith.mulf %137, %147 : vector<8x128xf32>
    %149 = arith.addf %146, %148 : vector<8x128xf32>
    %150 = math.tanh %149 : vector<8x128xf32>
    %cst_59 = arith.constant 1.000000e+00 : f32
    %151 = vector.broadcast %cst_59 : f32 to vector<8x128xf32>
    %152 = arith.subf %151, %145 : vector<8x128xf32>
    %153 = arith.mulf %152, %150 : vector<8x128xf32>
    %154 = arith.mulf %145, %96 : vector<8x128xf32>
    %155 = arith.addf %153, %154 : vector<8x128xf32>
    %156 = arith.index_cast %114 : i32 to index
    %c0_60 = arith.constant 0 : index
    %c0_61 = arith.constant 0 : index
    %157 = vector.load %arg15[%156, %c0_60, %c0_61] : memref<8x8x384xf32, #tpu.memory_space<vmem>>, vector<1x8x384xf32>
    %158 = vector.shape_cast %157 : vector<1x8x384xf32> to vector<8x384xf32>
    %159 = vector.extract_strided_slice %158 {offsets = [0, 0], sizes = [8, 128], strides = [1, 1]} : vector<8x384xf32> to vector<8x128xf32>
    %160 = vector.extract_strided_slice %126 {offsets = [0, 0], sizes = [8, 128], strides = [1, 1]} : vector<8x384xf32> to vector<8x128xf32>
    %161 = arith.addf %159, %160 : vector<8x128xf32>
    %162 = arith.negf %161 : vector<8x128xf32>
    %163 = math.exp %162 : vector<8x128xf32>
    %cst_62 = arith.constant 1.000000e+00 : f32
    %164 = vector.broadcast %cst_62 : f32 to vector<8x128xf32>
    %165 = arith.addf %164, %163 : vector<8x128xf32>
    %166 = arith.divf %164, %165 : vector<8x128xf32>
    %167 = vector.extract_strided_slice %158 {offsets = [0, 128], sizes = [8, 128], strides = [1, 1]} : vector<8x384xf32> to vector<8x128xf32>
    %168 = vector.extract_strided_slice %126 {offsets = [0, 128], sizes = [8, 128], strides = [1, 1]} : vector<8x384xf32> to vector<8x128xf32>
    %169 = arith.addf %167, %168 : vector<8x128xf32>
    %170 = arith.negf %169 : vector<8x128xf32>
    %171 = math.exp %170 : vector<8x128xf32>
    %cst_63 = arith.constant 1.000000e+00 : f32
    %172 = vector.broadcast %cst_63 : f32 to vector<8x128xf32>
    %173 = arith.addf %172, %171 : vector<8x128xf32>
    %174 = arith.divf %172, %173 : vector<8x128xf32>
    %175 = vector.extract_strided_slice %158 {offsets = [0, 256], sizes = [8, 128], strides = [1, 1]} : vector<8x384xf32> to vector<8x128xf32>
    %176 = vector.extract_strided_slice %126 {offsets = [0, 256], sizes = [8, 128], strides = [1, 1]} : vector<8x384xf32> to vector<8x128xf32>
    %177 = arith.mulf %166, %176 : vector<8x128xf32>
    %178 = arith.addf %175, %177 : vector<8x128xf32>
    %179 = math.tanh %178 : vector<8x128xf32>
    %cst_64 = arith.constant 1.000000e+00 : f32
    %180 = vector.broadcast %cst_64 : f32 to vector<8x128xf32>
    %181 = arith.subf %180, %174 : vector<8x128xf32>
    %182 = arith.mulf %181, %179 : vector<8x128xf32>
    %183 = arith.mulf %174, %101 : vector<8x128xf32>
    %184 = arith.addf %182, %183 : vector<8x128xf32>
    %cst_65 = arith.constant 5.000000e-01 : f32
    %185 = vector.broadcast %cst_65 : f32 to vector<8x1xf32>
    %186 = arith.cmpf ogt, %117, %185 : vector<8x1xf32>
    %187 = vector.shape_cast %186 : vector<8x1xi1> to vector<8x1xi1>
    %188 = vector.broadcast %187 : vector<8x1xi1> to vector<8x128xi1>
    %189 = arith.select %188, %155, %96 : vector<8x128xi1>, vector<8x128xf32>
    %cst_66 = arith.constant 5.000000e-01 : f32
    %190 = vector.broadcast %cst_66 : f32 to vector<8x1xf32>
    %191 = arith.cmpf ogt, %120, %190 : vector<8x1xf32>
    %192 = vector.shape_cast %191 : vector<8x1xi1> to vector<8x1xi1>
    %193 = vector.broadcast %192 : vector<8x1xi1> to vector<8x128xi1>
    %194 = arith.select %193, %184, %101 : vector<8x128xi1>, vector<8x128xf32>
    %195 = vector.broadcast %117 : vector<8x1xf32> to vector<8x128xf32>
    %196 = arith.mulf %189, %195 : vector<8x128xf32>
    %197 = arith.index_cast %c1_i32 : i32 to index
    %c0_67 = arith.constant 0 : index
    %c0_68 = arith.constant 0 : index
    %198 = vector.load %arg16[%197, %c0_67, %c0_68] : memref<8x8x128xf32, #tpu.memory_space<vmem>>, vector<1x8x128xf32>
    %199 = vector.shape_cast %198 : vector<1x8x128xf32> to vector<8x128xf32>
    %200 = vector.shape_cast %196 : vector<8x128xf32> to vector<1x8x128xf32>
    tpu.vector_store %arg16[%197, %c0_67, %c0_68], %200 {strides = array<i32>} : memref<8x8x128xf32, #tpu.memory_space<vmem>>, vector<1x8x128xf32>,
    %201 = vector.broadcast %120 : vector<8x1xf32> to vector<8x128xf32>
    %202 = arith.mulf %194, %201 : vector<8x128xf32>
    %203 = arith.index_cast %114 : i32 to index
    %c0_69 = arith.constant 0 : index
    %c0_70 = arith.constant 0 : index
    %204 = vector.load %arg17[%203, %c0_69, %c0_70] : memref<8x8x128xf32, #tpu.memory_space<vmem>>, vector<1x8x128xf32>
    %205 = vector.shape_cast %204 : vector<1x8x128xf32> to vector<8x128xf32>
    %206 = vector.shape_cast %202 : vector<8x128xf32> to vector<1x8x128xf32>
    tpu.vector_store %arg17[%203, %c0_69, %c0_70], %206 {strides = array<i32>} : memref<8x8x128xf32, #tpu.memory_space<vmem>>, vector<1x8x128xf32>,
    %c2_i32 = arith.constant 2 : i32
    %c7_i32_71 = arith.constant 7 : i32
    %207 = arith.subi %c7_i32_71, %c2_i32 : i32
    %208 = arith.index_cast %c2_i32 : i32 to index
    %c0_72 = arith.constant 0 : index
    %c0_73 = arith.constant 0 : index
    %209 = vector.load %arg1[%208, %c0_72, %c0_73] : memref<8x8x1xf32, #tpu.memory_space<vmem>>, vector<1x8x1xf32>
    %210 = vector.shape_cast %209 : vector<1x8x1xf32> to vector<8x1xf32>
    %211 = arith.index_cast %207 : i32 to index
    %c0_74 = arith.constant 0 : index
    %c0_75 = arith.constant 0 : index
    %212 = vector.load %arg1[%211, %c0_74, %c0_75] : memref<8x8x1xf32, #tpu.memory_space<vmem>>, vector<1x8x1xf32>
    %213 = vector.shape_cast %212 : vector<1x8x1xf32> to vector<8x1xf32>
    %cst_76 = arith.constant dense<0.000000e+00> : vector<8x384xf32>
    %214 = tpu.matmul %189, %16, %cst_76 {dimension_numbers = #tpu.dot_dimension_numbers<[1], [0], [0], [1], [0, 0, 1, 1], [], []>} : vector<8x128xf32>, vector<128x384xf32>, vector<8x384xf32> -> vector<8x384xf32>
    %215 = vector.broadcast %18 : vector<1x384xf32> to vector<8x384xf32>
    %216 = arith.addf %214, %215 : vector<8x384xf32>
    %cst_77 = arith.constant dense<0.000000e+00> : vector<8x384xf32>
    %217 = tpu.matmul %194, %17, %cst_77 {dimension_numbers = #tpu.dot_dimension_numbers<[1], [0], [0], [1], [0, 0, 1, 1], [], []>} : vector<8x128xf32>, vector<128x384xf32>, vector<8x384xf32> -> vector<8x384xf32>
    %218 = vector.broadcast %19 : vector<1x384xf32> to vector<8x384xf32>
    %219 = arith.addf %217, %218 : vector<8x384xf32>
    %220 = arith.index_cast %c2_i32 : i32 to index
    %c0_78 = arith.constant 0 : index
    %c0_79 = arith.constant 0 : index
    %221 = vector.load %arg14[%220, %c0_78, %c0_79] : memref<8x8x384xf32, #tpu.memory_space<vmem>>, vector<1x8x384xf32>
    %222 = vector.shape_cast %221 : vector<1x8x384xf32> to vector<8x384xf32>
    %223 = vector.extract_strided_slice %222 {offsets = [0, 0], sizes = [8, 128], strides = [1, 1]} : vector<8x384xf32> to vector<8x128xf32>
    %224 = vector.extract_strided_slice %216 {offsets = [0, 0], sizes = [8, 128], strides = [1, 1]} : vector<8x384xf32> to vector<8x128xf32>
    %225 = arith.addf %223, %224 : vector<8x128xf32>
    %226 = arith.negf %225 : vector<8x128xf32>
    %227 = math.exp %226 : vector<8x128xf32>
    %cst_80 = arith.constant 1.000000e+00 : f32
    %228 = vector.broadcast %cst_80 : f32 to vector<8x128xf32>
    %229 = arith.addf %228, %227 : vector<8x128xf32>
    %230 = arith.divf %228, %229 : vector<8x128xf32>
    %231 = vector.extract_strided_slice %222 {offsets = [0, 128], sizes = [8, 128], strides = [1, 1]} : vector<8x384xf32> to vector<8x128xf32>
    %232 = vector.extract_strided_slice %216 {offsets = [0, 128], sizes = [8, 128], strides = [1, 1]} : vector<8x384xf32> to vector<8x128xf32>
    %233 = arith.addf %231, %232 : vector<8x128xf32>
    %234 = arith.negf %233 : vector<8x128xf32>
    %235 = math.exp %234 : vector<8x128xf32>
    %cst_81 = arith.constant 1.000000e+00 : f32
    %236 = vector.broadcast %cst_81 : f32 to vector<8x128xf32>
    %237 = arith.addf %236, %235 : vector<8x128xf32>
    %238 = arith.divf %236, %237 : vector<8x128xf32>
    %239 = vector.extract_strided_slice %222 {offsets = [0, 256], sizes = [8, 128], strides = [1, 1]} : vector<8x384xf32> to vector<8x128xf32>
    %240 = vector.extract_strided_slice %216 {offsets = [0, 256], sizes = [8, 128], strides = [1, 1]} : vector<8x384xf32> to vector<8x128xf32>
    %241 = arith.mulf %230, %240 : vector<8x128xf32>
    %242 = arith.addf %239, %241 : vector<8x128xf32>
    %243 = math.tanh %242 : vector<8x128xf32>
    %cst_82 = arith.constant 1.000000e+00 : f32
    %244 = vector.broadcast %cst_82 : f32 to vector<8x128xf32>
    %245 = arith.subf %244, %238 : vector<8x128xf32>
    %246 = arith.mulf %245, %243 : vector<8x128xf32>
    %247 = arith.mulf %238, %189 : vector<8x128xf32>
    %248 = arith.addf %246, %247 : vector<8x128xf32>
    %249 = arith.index_cast %207 : i32 to index
    %c0_83 = arith.constant 0 : index
    %c0_84 = arith.constant 0 : index
    %250 = vector.load %arg15[%249, %c0_83, %c0_84] : memref<8x8x384xf32, #tpu.memory_space<vmem>>, vector<1x8x384xf32>
    %251 = vector.shape_cast %250 : vector<1x8x384xf32> to vector<8x384xf32>
    %252 = vector.extract_strided_slice %251 {offsets = [0, 0], sizes = [8, 128], strides = [1, 1]} : vector<8x384xf32> to vector<8x128xf32>
    %253 = vector.extract_strided_slice %219 {offsets = [0, 0], sizes = [8, 128], strides = [1, 1]} : vector<8x384xf32> to vector<8x128xf32>
    %254 = arith.addf %252, %253 : vector<8x128xf32>
    %255 = arith.negf %254 : vector<8x128xf32>
    %256 = math.exp %255 : vector<8x128xf32>
    %cst_85 = arith.constant 1.000000e+00 : f32
    %257 = vector.broadcast %cst_85 : f32 to vector<8x128xf32>
    %258 = arith.addf %257, %256 : vector<8x128xf32>
    %259 = arith.divf %257, %258 : vector<8x128xf32>
    %260 = vector.extract_strided_slice %251 {offsets = [0, 128], sizes = [8, 128], strides = [1, 1]} : vector<8x384xf32> to vector<8x128xf32>
    %261 = vector.extract_strided_slice %219 {offsets = [0, 128], sizes = [8, 128], strides = [1, 1]} : vector<8x384xf32> to vector<8x128xf32>
    %262 = arith.addf %260, %261 : vector<8x128xf32>
    %263 = arith.negf %262 : vector<8x128xf32>
    %264 = math.exp %263 : vector<8x128xf32>
    %cst_86 = arith.constant 1.000000e+00 : f32
    %265 = vector.broadcast %cst_86 : f32 to vector<8x128xf32>
    %266 = arith.addf %265, %264 : vector<8x128xf32>
    %267 = arith.divf %265, %266 : vector<8x128xf32>
    %268 = vector.extract_strided_slice %251 {offsets = [0, 256], sizes = [8, 128], strides = [1, 1]} : vector<8x384xf32> to vector<8x128xf32>
    %269 = vector.extract_strided_slice %219 {offsets = [0, 256], sizes = [8, 128], strides = [1, 1]} : vector<8x384xf32> to vector<8x128xf32>
    %270 = arith.mulf %259, %269 : vector<8x128xf32>
    %271 = arith.addf %268, %270 : vector<8x128xf32>
    %272 = math.tanh %271 : vector<8x128xf32>
    %cst_87 = arith.constant 1.000000e+00 : f32
    %273 = vector.broadcast %cst_87 : f32 to vector<8x128xf32>
    %274 = arith.subf %273, %267 : vector<8x128xf32>
    %275 = arith.mulf %274, %272 : vector<8x128xf32>
    %276 = arith.mulf %267, %194 : vector<8x128xf32>
    %277 = arith.addf %275, %276 : vector<8x128xf32>
    %cst_88 = arith.constant 5.000000e-01 : f32
    %278 = vector.broadcast %cst_88 : f32 to vector<8x1xf32>
    %279 = arith.cmpf ogt, %210, %278 : vector<8x1xf32>
    %280 = vector.shape_cast %279 : vector<8x1xi1> to vector<8x1xi1>
    %281 = vector.broadcast %280 : vector<8x1xi1> to vector<8x128xi1>
    %282 = arith.select %281, %248, %189 : vector<8x128xi1>, vector<8x128xf32>
    %cst_89 = arith.constant 5.000000e-01 : f32
    %283 = vector.broadcast %cst_89 : f32 to vector<8x1xf32>
    %284 = arith.cmpf ogt, %213, %283 : vector<8x1xf32>
    %285 = vector.shape_cast %284 : vector<8x1xi1> to vector<8x1xi1>
    %286 = vector.broadcast %285 : vector<8x1xi1> to vector<8x128xi1>
    %287 = arith.select %286, %277, %194 : vector<8x128xi1>, vector<8x128xf32>
    %288 = vector.broadcast %210 : vector<8x1xf32> to vector<8x128xf32>
    %289 = arith.mulf %282, %288 : vector<8x128xf32>
    %290 = arith.index_cast %c2_i32 : i32 to index
    %c0_90 = arith.constant 0 : index
    %c0_91 = arith.constant 0 : index
    %291 = vector.load %arg16[%290, %c0_90, %c0_91] : memref<8x8x128xf32, #tpu.memory_space<vmem>>, vector<1x8x128xf32>
    %292 = vector.shape_cast %291 : vector<1x8x128xf32> to vector<8x128xf32>
    %293 = vector.shape_cast %289 : vector<8x128xf32> to vector<1x8x128xf32>
    tpu.vector_store %arg16[%290, %c0_90, %c0_91], %293 {strides = array<i32>} : memref<8x8x128xf32, #tpu.memory_space<vmem>>, vector<1x8x128xf32>,
    %294 = vector.broadcast %213 : vector<8x1xf32> to vector<8x128xf32>
    %295 = arith.mulf %287, %294 : vector<8x128xf32>
    %296 = arith.index_cast %207 : i32 to index
    %c0_92 = arith.constant 0 : index
    %c0_93 = arith.constant 0 : index
    %297 = vector.load %arg17[%296, %c0_92, %c0_93] : memref<8x8x128xf32, #tpu.memory_space<vmem>>, vector<1x8x128xf32>
    %298 = vector.shape_cast %297 : vector<1x8x128xf32> to vector<8x128xf32>
    %299 = vector.shape_cast %295 : vector<8x128xf32> to vector<1x8x128xf32>
    tpu.vector_store %arg17[%296, %c0_92, %c0_93], %299 {strides = array<i32>} : memref<8x8x128xf32, #tpu.memory_space<vmem>>, vector<1x8x128xf32>,
    %c3_i32 = arith.constant 3 : i32
    %c7_i32_94 = arith.constant 7 : i32
    %300 = arith.subi %c7_i32_94, %c3_i32 : i32
    %301 = arith.index_cast %c3_i32 : i32 to index
    %c0_95 = arith.constant 0 : index
    %c0_96 = arith.constant 0 : index
    %302 = vector.load %arg1[%301, %c0_95, %c0_96] : memref<8x8x1xf32, #tpu.memory_space<vmem>>, vector<1x8x1xf32>
    %303 = vector.shape_cast %302 : vector<1x8x1xf32> to vector<8x1xf32>
    %304 = arith.index_cast %300 : i32 to index
    %c0_97 = arith.constant 0 : index
    %c0_98 = arith.constant 0 : index
    %305 = vector.load %arg1[%304, %c0_97, %c0_98] : memref<8x8x1xf32, #tpu.memory_space<vmem>>, vector<1x8x1xf32>
    %306 = vector.shape_cast %305 : vector<1x8x1xf32> to vector<8x1xf32>
    %cst_99 = arith.constant dense<0.000000e+00> : vector<8x384xf32>
    %307 = tpu.matmul %282, %16, %cst_99 {dimension_numbers = #tpu.dot_dimension_numbers<[1], [0], [0], [1], [0, 0, 1, 1], [], []>} : vector<8x128xf32>, vector<128x384xf32>, vector<8x384xf32> -> vector<8x384xf32>
    %308 = vector.broadcast %18 : vector<1x384xf32> to vector<8x384xf32>
    %309 = arith.addf %307, %308 : vector<8x384xf32>
    %cst_100 = arith.constant dense<0.000000e+00> : vector<8x384xf32>
    %310 = tpu.matmul %287, %17, %cst_100 {dimension_numbers = #tpu.dot_dimension_numbers<[1], [0], [0], [1], [0, 0, 1, 1], [], []>} : vector<8x128xf32>, vector<128x384xf32>, vector<8x384xf32> -> vector<8x384xf32>
    %311 = vector.broadcast %19 : vector<1x384xf32> to vector<8x384xf32>
    %312 = arith.addf %310, %311 : vector<8x384xf32>
    %313 = arith.index_cast %c3_i32 : i32 to index
    %c0_101 = arith.constant 0 : index
    %c0_102 = arith.constant 0 : index
    %314 = vector.load %arg14[%313, %c0_101, %c0_102] : memref<8x8x384xf32, #tpu.memory_space<vmem>>, vector<1x8x384xf32>
    %315 = vector.shape_cast %314 : vector<1x8x384xf32> to vector<8x384xf32>
    %316 = vector.extract_strided_slice %315 {offsets = [0, 0], sizes = [8, 128], strides = [1, 1]} : vector<8x384xf32> to vector<8x128xf32>
    %317 = vector.extract_strided_slice %309 {offsets = [0, 0], sizes = [8, 128], strides = [1, 1]} : vector<8x384xf32> to vector<8x128xf32>
    %318 = arith.addf %316, %317 : vector<8x128xf32>
    %319 = arith.negf %318 : vector<8x128xf32>
    %320 = math.exp %319 : vector<8x128xf32>
    %cst_103 = arith.constant 1.000000e+00 : f32
    %321 = vector.broadcast %cst_103 : f32 to vector<8x128xf32>
    %322 = arith.addf %321, %320 : vector<8x128xf32>
    %323 = arith.divf %321, %322 : vector<8x128xf32>
    %324 = vector.extract_strided_slice %315 {offsets = [0, 128], sizes = [8, 128], strides = [1, 1]} : vector<8x384xf32> to vector<8x128xf32>
    %325 = vector.extract_strided_slice %309 {offsets = [0, 128], sizes = [8, 128], strides = [1, 1]} : vector<8x384xf32> to vector<8x128xf32>
    %326 = arith.addf %324, %325 : vector<8x128xf32>
    %327 = arith.negf %326 : vector<8x128xf32>
    %328 = math.exp %327 : vector<8x128xf32>
    %cst_104 = arith.constant 1.000000e+00 : f32
    %329 = vector.broadcast %cst_104 : f32 to vector<8x128xf32>
    %330 = arith.addf %329, %328 : vector<8x128xf32>
    %331 = arith.divf %329, %330 : vector<8x128xf32>
    %332 = vector.extract_strided_slice %315 {offsets = [0, 256], sizes = [8, 128], strides = [1, 1]} : vector<8x384xf32> to vector<8x128xf32>
    %333 = vector.extract_strided_slice %309 {offsets = [0, 256], sizes = [8, 128], strides = [1, 1]} : vector<8x384xf32> to vector<8x128xf32>
    %334 = arith.mulf %323, %333 : vector<8x128xf32>
    %335 = arith.addf %332, %334 : vector<8x128xf32>
    %336 = math.tanh %335 : vector<8x128xf32>
    %cst_105 = arith.constant 1.000000e+00 : f32
    %337 = vector.broadcast %cst_105 : f32 to vector<8x128xf32>
    %338 = arith.subf %337, %331 : vector<8x128xf32>
    %339 = arith.mulf %338, %336 : vector<8x128xf32>
    %340 = arith.mulf %331, %282 : vector<8x128xf32>
    %341 = arith.addf %339, %340 : vector<8x128xf32>
    %342 = arith.index_cast %300 : i32 to index
    %c0_106 = arith.constant 0 : index
    %c0_107 = arith.constant 0 : index
    %343 = vector.load %arg15[%342, %c0_106, %c0_107] : memref<8x8x384xf32, #tpu.memory_space<vmem>>, vector<1x8x384xf32>
    %344 = vector.shape_cast %343 : vector<1x8x384xf32> to vector<8x384xf32>
    %345 = vector.extract_strided_slice %344 {offsets = [0, 0], sizes = [8, 128], strides = [1, 1]} : vector<8x384xf32> to vector<8x128xf32>
    %346 = vector.extract_strided_slice %312 {offsets = [0, 0], sizes = [8, 128], strides = [1, 1]} : vector<8x384xf32> to vector<8x128xf32>
    %347 = arith.addf %345, %346 : vector<8x128xf32>
    %348 = arith.negf %347 : vector<8x128xf32>
    %349 = math.exp %348 : vector<8x128xf32>
    %cst_108 = arith.constant 1.000000e+00 : f32
    %350 = vector.broadcast %cst_108 : f32 to vector<8x128xf32>
    %351 = arith.addf %350, %349 : vector<8x128xf32>
    %352 = arith.divf %350, %351 : vector<8x128xf32>
    %353 = vector.extract_strided_slice %344 {offsets = [0, 128], sizes = [8, 128], strides = [1, 1]} : vector<8x384xf32> to vector<8x128xf32>
    %354 = vector.extract_strided_slice %312 {offsets = [0, 128], sizes = [8, 128], strides = [1, 1]} : vector<8x384xf32> to vector<8x128xf32>
    %355 = arith.addf %353, %354 : vector<8x128xf32>
    %356 = arith.negf %355 : vector<8x128xf32>
    %357 = math.exp %356 : vector<8x128xf32>
    %cst_109 = arith.constant 1.000000e+00 : f32
    %358 = vector.broadcast %cst_109 : f32 to vector<8x128xf32>
    %359 = arith.addf %358, %357 : vector<8x128xf32>
    %360 = arith.divf %358, %359 : vector<8x128xf32>
    %361 = vector.extract_strided_slice %344 {offsets = [0, 256], sizes = [8, 128], strides = [1, 1]} : vector<8x384xf32> to vector<8x128xf32>
    %362 = vector.extract_strided_slice %312 {offsets = [0, 256], sizes = [8, 128], strides = [1, 1]} : vector<8x384xf32> to vector<8x128xf32>
    %363 = arith.mulf %352, %362 : vector<8x128xf32>
    %364 = arith.addf %361, %363 : vector<8x128xf32>
    %365 = math.tanh %364 : vector<8x128xf32>
    %cst_110 = arith.constant 1.000000e+00 : f32
    %366 = vector.broadcast %cst_110 : f32 to vector<8x128xf32>
    %367 = arith.subf %366, %360 : vector<8x128xf32>
    %368 = arith.mulf %367, %365 : vector<8x128xf32>
    %369 = arith.mulf %360, %287 : vector<8x128xf32>
    %370 = arith.addf %368, %369 : vector<8x128xf32>
    %cst_111 = arith.constant 5.000000e-01 : f32
    %371 = vector.broadcast %cst_111 : f32 to vector<8x1xf32>
    %372 = arith.cmpf ogt, %303, %371 : vector<8x1xf32>
    %373 = vector.shape_cast %372 : vector<8x1xi1> to vector<8x1xi1>
    %374 = vector.broadcast %373 : vector<8x1xi1> to vector<8x128xi1>
    %375 = arith.select %374, %341, %282 : vector<8x128xi1>, vector<8x128xf32>
    %cst_112 = arith.constant 5.000000e-01 : f32
    %376 = vector.broadcast %cst_112 : f32 to vector<8x1xf32>
    %377 = arith.cmpf ogt, %306, %376 : vector<8x1xf32>
    %378 = vector.shape_cast %377 : vector<8x1xi1> to vector<8x1xi1>
    %379 = vector.broadcast %378 : vector<8x1xi1> to vector<8x128xi1>
    %380 = arith.select %379, %370, %287 : vector<8x128xi1>, vector<8x128xf32>
    %381 = vector.broadcast %303 : vector<8x1xf32> to vector<8x128xf32>
    %382 = arith.mulf %375, %381 : vector<8x128xf32>
    %383 = arith.index_cast %c3_i32 : i32 to index
    %c0_113 = arith.constant 0 : index
    %c0_114 = arith.constant 0 : index
    %384 = vector.load %arg16[%383, %c0_113, %c0_114] : memref<8x8x128xf32, #tpu.memory_space<vmem>>, vector<1x8x128xf32>
    %385 = vector.shape_cast %384 : vector<1x8x128xf32> to vector<8x128xf32>
    %386 = vector.shape_cast %382 : vector<8x128xf32> to vector<1x8x128xf32>
    tpu.vector_store %arg16[%383, %c0_113, %c0_114], %386 {strides = array<i32>} : memref<8x8x128xf32, #tpu.memory_space<vmem>>, vector<1x8x128xf32>,
    %387 = vector.broadcast %306 : vector<8x1xf32> to vector<8x128xf32>
    %388 = arith.mulf %380, %387 : vector<8x128xf32>
    %389 = arith.index_cast %300 : i32 to index
    %c0_115 = arith.constant 0 : index
    %c0_116 = arith.constant 0 : index
    %390 = vector.load %arg17[%389, %c0_115, %c0_116] : memref<8x8x128xf32, #tpu.memory_space<vmem>>, vector<1x8x128xf32>
    %391 = vector.shape_cast %390 : vector<1x8x128xf32> to vector<8x128xf32>
    %392 = vector.shape_cast %388 : vector<8x128xf32> to vector<1x8x128xf32>
    tpu.vector_store %arg17[%389, %c0_115, %c0_116], %392 {strides = array<i32>} : memref<8x8x128xf32, #tpu.memory_space<vmem>>, vector<1x8x128xf32>,
    %c4_i32 = arith.constant 4 : i32
    %c7_i32_117 = arith.constant 7 : i32
    %393 = arith.subi %c7_i32_117, %c4_i32 : i32
    %394 = arith.index_cast %c4_i32 : i32 to index
    %c0_118 = arith.constant 0 : index
    %c0_119 = arith.constant 0 : index
    %395 = vector.load %arg1[%394, %c0_118, %c0_119] : memref<8x8x1xf32, #tpu.memory_space<vmem>>, vector<1x8x1xf32>
    %396 = vector.shape_cast %395 : vector<1x8x1xf32> to vector<8x1xf32>
    %397 = arith.index_cast %393 : i32 to index
    %c0_120 = arith.constant 0 : index
    %c0_121 = arith.constant 0 : index
    %398 = vector.load %arg1[%397, %c0_120, %c0_121] : memref<8x8x1xf32, #tpu.memory_space<vmem>>, vector<1x8x1xf32>
    %399 = vector.shape_cast %398 : vector<1x8x1xf32> to vector<8x1xf32>
    %cst_122 = arith.constant dense<0.000000e+00> : vector<8x384xf32>
    %400 = tpu.matmul %375, %16, %cst_122 {dimension_numbers = #tpu.dot_dimension_numbers<[1], [0], [0], [1], [0, 0, 1, 1], [], []>} : vector<8x128xf32>, vector<128x384xf32>, vector<8x384xf32> -> vector<8x384xf32>
    %401 = vector.broadcast %18 : vector<1x384xf32> to vector<8x384xf32>
    %402 = arith.addf %400, %401 : vector<8x384xf32>
    %cst_123 = arith.constant dense<0.000000e+00> : vector<8x384xf32>
    %403 = tpu.matmul %380, %17, %cst_123 {dimension_numbers = #tpu.dot_dimension_numbers<[1], [0], [0], [1], [0, 0, 1, 1], [], []>} : vector<8x128xf32>, vector<128x384xf32>, vector<8x384xf32> -> vector<8x384xf32>
    %404 = vector.broadcast %19 : vector<1x384xf32> to vector<8x384xf32>
    %405 = arith.addf %403, %404 : vector<8x384xf32>
    %406 = arith.index_cast %c4_i32 : i32 to index
    %c0_124 = arith.constant 0 : index
    %c0_125 = arith.constant 0 : index
    %407 = vector.load %arg14[%406, %c0_124, %c0_125] : memref<8x8x384xf32, #tpu.memory_space<vmem>>, vector<1x8x384xf32>
    %408 = vector.shape_cast %407 : vector<1x8x384xf32> to vector<8x384xf32>
    %409 = vector.extract_strided_slice %408 {offsets = [0, 0], sizes = [8, 128], strides = [1, 1]} : vector<8x384xf32> to vector<8x128xf32>
    %410 = vector.extract_strided_slice %402 {offsets = [0, 0], sizes = [8, 128], strides = [1, 1]} : vector<8x384xf32> to vector<8x128xf32>
    %411 = arith.addf %409, %410 : vector<8x128xf32>
    %412 = arith.negf %411 : vector<8x128xf32>
    %413 = math.exp %412 : vector<8x128xf32>
    %cst_126 = arith.constant 1.000000e+00 : f32
    %414 = vector.broadcast %cst_126 : f32 to vector<8x128xf32>
    %415 = arith.addf %414, %413 : vector<8x128xf32>
    %416 = arith.divf %414, %415 : vector<8x128xf32>
    %417 = vector.extract_strided_slice %408 {offsets = [0, 128], sizes = [8, 128], strides = [1, 1]} : vector<8x384xf32> to vector<8x128xf32>
    %418 = vector.extract_strided_slice %402 {offsets = [0, 128], sizes = [8, 128], strides = [1, 1]} : vector<8x384xf32> to vector<8x128xf32>
    %419 = arith.addf %417, %418 : vector<8x128xf32>
    %420 = arith.negf %419 : vector<8x128xf32>
    %421 = math.exp %420 : vector<8x128xf32>
    %cst_127 = arith.constant 1.000000e+00 : f32
    %422 = vector.broadcast %cst_127 : f32 to vector<8x128xf32>
    %423 = arith.addf %422, %421 : vector<8x128xf32>
    %424 = arith.divf %422, %423 : vector<8x128xf32>
    %425 = vector.extract_strided_slice %408 {offsets = [0, 256], sizes = [8, 128], strides = [1, 1]} : vector<8x384xf32> to vector<8x128xf32>
    %426 = vector.extract_strided_slice %402 {offsets = [0, 256], sizes = [8, 128], strides = [1, 1]} : vector<8x384xf32> to vector<8x128xf32>
    %427 = arith.mulf %416, %426 : vector<8x128xf32>
    %428 = arith.addf %425, %427 : vector<8x128xf32>
    %429 = math.tanh %428 : vector<8x128xf32>
    %cst_128 = arith.constant 1.000000e+00 : f32
    %430 = vector.broadcast %cst_128 : f32 to vector<8x128xf32>
    %431 = arith.subf %430, %424 : vector<8x128xf32>
    %432 = arith.mulf %431, %429 : vector<8x128xf32>
    %433 = arith.mulf %424, %375 : vector<8x128xf32>
    %434 = arith.addf %432, %433 : vector<8x128xf32>
    %435 = arith.index_cast %393 : i32 to index
    %c0_129 = arith.constant 0 : index
    %c0_130 = arith.constant 0 : index
    %436 = vector.load %arg15[%435, %c0_129, %c0_130] : memref<8x8x384xf32, #tpu.memory_space<vmem>>, vector<1x8x384xf32>
    %437 = vector.shape_cast %436 : vector<1x8x384xf32> to vector<8x384xf32>
    %438 = vector.extract_strided_slice %437 {offsets = [0, 0], sizes = [8, 128], strides = [1, 1]} : vector<8x384xf32> to vector<8x128xf32>
    %439 = vector.extract_strided_slice %405 {offsets = [0, 0], sizes = [8, 128], strides = [1, 1]} : vector<8x384xf32> to vector<8x128xf32>
    %440 = arith.addf %438, %439 : vector<8x128xf32>
    %441 = arith.negf %440 : vector<8x128xf32>
    %442 = math.exp %441 : vector<8x128xf32>
    %cst_131 = arith.constant 1.000000e+00 : f32
    %443 = vector.broadcast %cst_131 : f32 to vector<8x128xf32>
    %444 = arith.addf %443, %442 : vector<8x128xf32>
    %445 = arith.divf %443, %444 : vector<8x128xf32>
    %446 = vector.extract_strided_slice %437 {offsets = [0, 128], sizes = [8, 128], strides = [1, 1]} : vector<8x384xf32> to vector<8x128xf32>
    %447 = vector.extract_strided_slice %405 {offsets = [0, 128], sizes = [8, 128], strides = [1, 1]} : vector<8x384xf32> to vector<8x128xf32>
    %448 = arith.addf %446, %447 : vector<8x128xf32>
    %449 = arith.negf %448 : vector<8x128xf32>
    %450 = math.exp %449 : vector<8x128xf32>
    %cst_132 = arith.constant 1.000000e+00 : f32
    %451 = vector.broadcast %cst_132 : f32 to vector<8x128xf32>
    %452 = arith.addf %451, %450 : vector<8x128xf32>
    %453 = arith.divf %451, %452 : vector<8x128xf32>
    %454 = vector.extract_strided_slice %437 {offsets = [0, 256], sizes = [8, 128], strides = [1, 1]} : vector<8x384xf32> to vector<8x128xf32>
    %455 = vector.extract_strided_slice %405 {offsets = [0, 256], sizes = [8, 128], strides = [1, 1]} : vector<8x384xf32> to vector<8x128xf32>
    %456 = arith.mulf %445, %455 : vector<8x128xf32>
    %457 = arith.addf %454, %456 : vector<8x128xf32>
    %458 = math.tanh %457 : vector<8x128xf32>
    %cst_133 = arith.constant 1.000000e+00 : f32
    %459 = vector.broadcast %cst_133 : f32 to vector<8x128xf32>
    %460 = arith.subf %459, %453 : vector<8x128xf32>
    %461 = arith.mulf %460, %458 : vector<8x128xf32>
    %462 = arith.mulf %453, %380 : vector<8x128xf32>
    %463 = arith.addf %461, %462 : vector<8x128xf32>
    %cst_134 = arith.constant 5.000000e-01 : f32
    %464 = vector.broadcast %cst_134 : f32 to vector<8x1xf32>
    %465 = arith.cmpf ogt, %396, %464 : vector<8x1xf32>
    %466 = vector.shape_cast %465 : vector<8x1xi1> to vector<8x1xi1>
    %467 = vector.broadcast %466 : vector<8x1xi1> to vector<8x128xi1>
    %468 = arith.select %467, %434, %375 : vector<8x128xi1>, vector<8x128xf32>
    %cst_135 = arith.constant 5.000000e-01 : f32
    %469 = vector.broadcast %cst_135 : f32 to vector<8x1xf32>
    %470 = arith.cmpf ogt, %399, %469 : vector<8x1xf32>
    %471 = vector.shape_cast %470 : vector<8x1xi1> to vector<8x1xi1>
    %472 = vector.broadcast %471 : vector<8x1xi1> to vector<8x128xi1>
    %473 = arith.select %472, %463, %380 : vector<8x128xi1>, vector<8x128xf32>
    %474 = vector.broadcast %396 : vector<8x1xf32> to vector<8x128xf32>
    %475 = arith.mulf %468, %474 : vector<8x128xf32>
    %476 = arith.index_cast %c4_i32 : i32 to index
    %c0_136 = arith.constant 0 : index
    %c0_137 = arith.constant 0 : index
    %477 = vector.load %arg16[%476, %c0_136, %c0_137] : memref<8x8x128xf32, #tpu.memory_space<vmem>>, vector<1x8x128xf32>
    %478 = vector.shape_cast %477 : vector<1x8x128xf32> to vector<8x128xf32>
    %479 = vector.shape_cast %475 : vector<8x128xf32> to vector<1x8x128xf32>
    tpu.vector_store %arg16[%476, %c0_136, %c0_137], %479 {strides = array<i32>} : memref<8x8x128xf32, #tpu.memory_space<vmem>>, vector<1x8x128xf32>,
    %480 = vector.broadcast %399 : vector<8x1xf32> to vector<8x128xf32>
    %481 = arith.mulf %473, %480 : vector<8x128xf32>
    %482 = arith.index_cast %393 : i32 to index
    %c0_138 = arith.constant 0 : index
    %c0_139 = arith.constant 0 : index
    %483 = vector.load %arg17[%482, %c0_138, %c0_139] : memref<8x8x128xf32, #tpu.memory_space<vmem>>, vector<1x8x128xf32>
    %484 = vector.shape_cast %483 : vector<1x8x128xf32> to vector<8x128xf32>
    %485 = vector.shape_cast %481 : vector<8x128xf32> to vector<1x8x128xf32>
    tpu.vector_store %arg17[%482, %c0_138, %c0_139], %485 {strides = array<i32>} : memref<8x8x128xf32, #tpu.memory_space<vmem>>, vector<1x8x128xf32>,
    %c5_i32 = arith.constant 5 : i32
    %c7_i32_140 = arith.constant 7 : i32
    %486 = arith.subi %c7_i32_140, %c5_i32 : i32
    %487 = arith.index_cast %c5_i32 : i32 to index
    %c0_141 = arith.constant 0 : index
    %c0_142 = arith.constant 0 : index
    %488 = vector.load %arg1[%487, %c0_141, %c0_142] : memref<8x8x1xf32, #tpu.memory_space<vmem>>, vector<1x8x1xf32>
    %489 = vector.shape_cast %488 : vector<1x8x1xf32> to vector<8x1xf32>
    %490 = arith.index_cast %486 : i32 to index
    %c0_143 = arith.constant 0 : index
    %c0_144 = arith.constant 0 : index
    %491 = vector.load %arg1[%490, %c0_143, %c0_144] : memref<8x8x1xf32, #tpu.memory_space<vmem>>, vector<1x8x1xf32>
    %492 = vector.shape_cast %491 : vector<1x8x1xf32> to vector<8x1xf32>
    %cst_145 = arith.constant dense<0.000000e+00> : vector<8x384xf32>
    %493 = tpu.matmul %468, %16, %cst_145 {dimension_numbers = #tpu.dot_dimension_numbers<[1], [0], [0], [1], [0, 0, 1, 1], [], []>} : vector<8x128xf32>, vector<128x384xf32>, vector<8x384xf32> -> vector<8x384xf32>
    %494 = vector.broadcast %18 : vector<1x384xf32> to vector<8x384xf32>
    %495 = arith.addf %493, %494 : vector<8x384xf32>
    %cst_146 = arith.constant dense<0.000000e+00> : vector<8x384xf32>
    %496 = tpu.matmul %473, %17, %cst_146 {dimension_numbers = #tpu.dot_dimension_numbers<[1], [0], [0], [1], [0, 0, 1, 1], [], []>} : vector<8x128xf32>, vector<128x384xf32>, vector<8x384xf32> -> vector<8x384xf32>
    %497 = vector.broadcast %19 : vector<1x384xf32> to vector<8x384xf32>
    %498 = arith.addf %496, %497 : vector<8x384xf32>
    %499 = arith.index_cast %c5_i32 : i32 to index
    %c0_147 = arith.constant 0 : index
    %c0_148 = arith.constant 0 : index
    %500 = vector.load %arg14[%499, %c0_147, %c0_148] : memref<8x8x384xf32, #tpu.memory_space<vmem>>, vector<1x8x384xf32>
    %501 = vector.shape_cast %500 : vector<1x8x384xf32> to vector<8x384xf32>
    %502 = vector.extract_strided_slice %501 {offsets = [0, 0], sizes = [8, 128], strides = [1, 1]} : vector<8x384xf32> to vector<8x128xf32>
    %503 = vector.extract_strided_slice %495 {offsets = [0, 0], sizes = [8, 128], strides = [1, 1]} : vector<8x384xf32> to vector<8x128xf32>
    %504 = arith.addf %502, %503 : vector<8x128xf32>
    %505 = arith.negf %504 : vector<8x128xf32>
    %506 = math.exp %505 : vector<8x128xf32>
    %cst_149 = arith.constant 1.000000e+00 : f32
    %507 = vector.broadcast %cst_149 : f32 to vector<8x128xf32>
    %508 = arith.addf %507, %506 : vector<8x128xf32>
    %509 = arith.divf %507, %508 : vector<8x128xf32>
    %510 = vector.extract_strided_slice %501 {offsets = [0, 128], sizes = [8, 128], strides = [1, 1]} : vector<8x384xf32> to vector<8x128xf32>
    %511 = vector.extract_strided_slice %495 {offsets = [0, 128], sizes = [8, 128], strides = [1, 1]} : vector<8x384xf32> to vector<8x128xf32>
    %512 = arith.addf %510, %511 : vector<8x128xf32>
    %513 = arith.negf %512 : vector<8x128xf32>
    %514 = math.exp %513 : vector<8x128xf32>
    %cst_150 = arith.constant 1.000000e+00 : f32
    %515 = vector.broadcast %cst_150 : f32 to vector<8x128xf32>
    %516 = arith.addf %515, %514 : vector<8x128xf32>
    %517 = arith.divf %515, %516 : vector<8x128xf32>
    %518 = vector.extract_strided_slice %501 {offsets = [0, 256], sizes = [8, 128], strides = [1, 1]} : vector<8x384xf32> to vector<8x128xf32>
    %519 = vector.extract_strided_slice %495 {offsets = [0, 256], sizes = [8, 128], strides = [1, 1]} : vector<8x384xf32> to vector<8x128xf32>
    %520 = arith.mulf %509, %519 : vector<8x128xf32>
    %521 = arith.addf %518, %520 : vector<8x128xf32>
    %522 = math.tanh %521 : vector<8x128xf32>
    %cst_151 = arith.constant 1.000000e+00 : f32
    %523 = vector.broadcast %cst_151 : f32 to vector<8x128xf32>
    %524 = arith.subf %523, %517 : vector<8x128xf32>
    %525 = arith.mulf %524, %522 : vector<8x128xf32>
    %526 = arith.mulf %517, %468 : vector<8x128xf32>
    %527 = arith.addf %525, %526 : vector<8x128xf32>
    %528 = arith.index_cast %486 : i32 to index
    %c0_152 = arith.constant 0 : index
    %c0_153 = arith.constant 0 : index
    %529 = vector.load %arg15[%528, %c0_152, %c0_153] : memref<8x8x384xf32, #tpu.memory_space<vmem>>, vector<1x8x384xf32>
    %530 = vector.shape_cast %529 : vector<1x8x384xf32> to vector<8x384xf32>
    %531 = vector.extract_strided_slice %530 {offsets = [0, 0], sizes = [8, 128], strides = [1, 1]} : vector<8x384xf32> to vector<8x128xf32>
    %532 = vector.extract_strided_slice %498 {offsets = [0, 0], sizes = [8, 128], strides = [1, 1]} : vector<8x384xf32> to vector<8x128xf32>
    %533 = arith.addf %531, %532 : vector<8x128xf32>
    %534 = arith.negf %533 : vector<8x128xf32>
    %535 = math.exp %534 : vector<8x128xf32>
    %cst_154 = arith.constant 1.000000e+00 : f32
    %536 = vector.broadcast %cst_154 : f32 to vector<8x128xf32>
    %537 = arith.addf %536, %535 : vector<8x128xf32>
    %538 = arith.divf %536, %537 : vector<8x128xf32>
    %539 = vector.extract_strided_slice %530 {offsets = [0, 128], sizes = [8, 128], strides = [1, 1]} : vector<8x384xf32> to vector<8x128xf32>
    %540 = vector.extract_strided_slice %498 {offsets = [0, 128], sizes = [8, 128], strides = [1, 1]} : vector<8x384xf32> to vector<8x128xf32>
    %541 = arith.addf %539, %540 : vector<8x128xf32>
    %542 = arith.negf %541 : vector<8x128xf32>
    %543 = math.exp %542 : vector<8x128xf32>
    %cst_155 = arith.constant 1.000000e+00 : f32
    %544 = vector.broadcast %cst_155 : f32 to vector<8x128xf32>
    %545 = arith.addf %544, %543 : vector<8x128xf32>
    %546 = arith.divf %544, %545 : vector<8x128xf32>
    %547 = vector.extract_strided_slice %530 {offsets = [0, 256], sizes = [8, 128], strides = [1, 1]} : vector<8x384xf32> to vector<8x128xf32>
    %548 = vector.extract_strided_slice %498 {offsets = [0, 256], sizes = [8, 128], strides = [1, 1]} : vector<8x384xf32> to vector<8x128xf32>
    %549 = arith.mulf %538, %548 : vector<8x128xf32>
    %550 = arith.addf %547, %549 : vector<8x128xf32>
    %551 = math.tanh %550 : vector<8x128xf32>
    %cst_156 = arith.constant 1.000000e+00 : f32
    %552 = vector.broadcast %cst_156 : f32 to vector<8x128xf32>
    %553 = arith.subf %552, %546 : vector<8x128xf32>
    %554 = arith.mulf %553, %551 : vector<8x128xf32>
    %555 = arith.mulf %546, %473 : vector<8x128xf32>
    %556 = arith.addf %554, %555 : vector<8x128xf32>
    %cst_157 = arith.constant 5.000000e-01 : f32
    %557 = vector.broadcast %cst_157 : f32 to vector<8x1xf32>
    %558 = arith.cmpf ogt, %489, %557 : vector<8x1xf32>
    %559 = vector.shape_cast %558 : vector<8x1xi1> to vector<8x1xi1>
    %560 = vector.broadcast %559 : vector<8x1xi1> to vector<8x128xi1>
    %561 = arith.select %560, %527, %468 : vector<8x128xi1>, vector<8x128xf32>
    %cst_158 = arith.constant 5.000000e-01 : f32
    %562 = vector.broadcast %cst_158 : f32 to vector<8x1xf32>
    %563 = arith.cmpf ogt, %492, %562 : vector<8x1xf32>
    %564 = vector.shape_cast %563 : vector<8x1xi1> to vector<8x1xi1>
    %565 = vector.broadcast %564 : vector<8x1xi1> to vector<8x128xi1>
    %566 = arith.select %565, %556, %473 : vector<8x128xi1>, vector<8x128xf32>
    %567 = vector.broadcast %489 : vector<8x1xf32> to vector<8x128xf32>
    %568 = arith.mulf %561, %567 : vector<8x128xf32>
    %569 = arith.index_cast %c5_i32 : i32 to index
    %c0_159 = arith.constant 0 : index
    %c0_160 = arith.constant 0 : index
    %570 = vector.load %arg16[%569, %c0_159, %c0_160] : memref<8x8x128xf32, #tpu.memory_space<vmem>>, vector<1x8x128xf32>
    %571 = vector.shape_cast %570 : vector<1x8x128xf32> to vector<8x128xf32>
    %572 = vector.shape_cast %568 : vector<8x128xf32> to vector<1x8x128xf32>
    tpu.vector_store %arg16[%569, %c0_159, %c0_160], %572 {strides = array<i32>} : memref<8x8x128xf32, #tpu.memory_space<vmem>>, vector<1x8x128xf32>,
    %573 = vector.broadcast %492 : vector<8x1xf32> to vector<8x128xf32>
    %574 = arith.mulf %566, %573 : vector<8x128xf32>
    %575 = arith.index_cast %486 : i32 to index
    %c0_161 = arith.constant 0 : index
    %c0_162 = arith.constant 0 : index
    %576 = vector.load %arg17[%575, %c0_161, %c0_162] : memref<8x8x128xf32, #tpu.memory_space<vmem>>, vector<1x8x128xf32>
    %577 = vector.shape_cast %576 : vector<1x8x128xf32> to vector<8x128xf32>
    %578 = vector.shape_cast %574 : vector<8x128xf32> to vector<1x8x128xf32>
    tpu.vector_store %arg17[%575, %c0_161, %c0_162], %578 {strides = array<i32>} : memref<8x8x128xf32, #tpu.memory_space<vmem>>, vector<1x8x128xf32>,
    %c6_i32 = arith.constant 6 : i32
    %c7_i32_163 = arith.constant 7 : i32
    %579 = arith.subi %c7_i32_163, %c6_i32 : i32
    %580 = arith.index_cast %c6_i32 : i32 to index
    %c0_164 = arith.constant 0 : index
    %c0_165 = arith.constant 0 : index
    %581 = vector.load %arg1[%580, %c0_164, %c0_165] : memref<8x8x1xf32, #tpu.memory_space<vmem>>, vector<1x8x1xf32>
    %582 = vector.shape_cast %581 : vector<1x8x1xf32> to vector<8x1xf32>
    %583 = arith.index_cast %579 : i32 to index
    %c0_166 = arith.constant 0 : index
    %c0_167 = arith.constant 0 : index
    %584 = vector.load %arg1[%583, %c0_166, %c0_167] : memref<8x8x1xf32, #tpu.memory_space<vmem>>, vector<1x8x1xf32>
    %585 = vector.shape_cast %584 : vector<1x8x1xf32> to vector<8x1xf32>
    %cst_168 = arith.constant dense<0.000000e+00> : vector<8x384xf32>
    %586 = tpu.matmul %561, %16, %cst_168 {dimension_numbers = #tpu.dot_dimension_numbers<[1], [0], [0], [1], [0, 0, 1, 1], [], []>} : vector<8x128xf32>, vector<128x384xf32>, vector<8x384xf32> -> vector<8x384xf32>
    %587 = vector.broadcast %18 : vector<1x384xf32> to vector<8x384xf32>
    %588 = arith.addf %586, %587 : vector<8x384xf32>
    %cst_169 = arith.constant dense<0.000000e+00> : vector<8x384xf32>
    %589 = tpu.matmul %566, %17, %cst_169 {dimension_numbers = #tpu.dot_dimension_numbers<[1], [0], [0], [1], [0, 0, 1, 1], [], []>} : vector<8x128xf32>, vector<128x384xf32>, vector<8x384xf32> -> vector<8x384xf32>
    %590 = vector.broadcast %19 : vector<1x384xf32> to vector<8x384xf32>
    %591 = arith.addf %589, %590 : vector<8x384xf32>
    %592 = arith.index_cast %c6_i32 : i32 to index
    %c0_170 = arith.constant 0 : index
    %c0_171 = arith.constant 0 : index
    %593 = vector.load %arg14[%592, %c0_170, %c0_171] : memref<8x8x384xf32, #tpu.memory_space<vmem>>, vector<1x8x384xf32>
    %594 = vector.shape_cast %593 : vector<1x8x384xf32> to vector<8x384xf32>
    %595 = vector.extract_strided_slice %594 {offsets = [0, 0], sizes = [8, 128], strides = [1, 1]} : vector<8x384xf32> to vector<8x128xf32>
    %596 = vector.extract_strided_slice %588 {offsets = [0, 0], sizes = [8, 128], strides = [1, 1]} : vector<8x384xf32> to vector<8x128xf32>
    %597 = arith.addf %595, %596 : vector<8x128xf32>
    %598 = arith.negf %597 : vector<8x128xf32>
    %599 = math.exp %598 : vector<8x128xf32>
    %cst_172 = arith.constant 1.000000e+00 : f32
    %600 = vector.broadcast %cst_172 : f32 to vector<8x128xf32>
    %601 = arith.addf %600, %599 : vector<8x128xf32>
    %602 = arith.divf %600, %601 : vector<8x128xf32>
    %603 = vector.extract_strided_slice %594 {offsets = [0, 128], sizes = [8, 128], strides = [1, 1]} : vector<8x384xf32> to vector<8x128xf32>
    %604 = vector.extract_strided_slice %588 {offsets = [0, 128], sizes = [8, 128], strides = [1, 1]} : vector<8x384xf32> to vector<8x128xf32>
    %605 = arith.addf %603, %604 : vector<8x128xf32>
    %606 = arith.negf %605 : vector<8x128xf32>
    %607 = math.exp %606 : vector<8x128xf32>
    %cst_173 = arith.constant 1.000000e+00 : f32
    %608 = vector.broadcast %cst_173 : f32 to vector<8x128xf32>
    %609 = arith.addf %608, %607 : vector<8x128xf32>
    %610 = arith.divf %608, %609 : vector<8x128xf32>
    %611 = vector.extract_strided_slice %594 {offsets = [0, 256], sizes = [8, 128], strides = [1, 1]} : vector<8x384xf32> to vector<8x128xf32>
    %612 = vector.extract_strided_slice %588 {offsets = [0, 256], sizes = [8, 128], strides = [1, 1]} : vector<8x384xf32> to vector<8x128xf32>
    %613 = arith.mulf %602, %612 : vector<8x128xf32>
    %614 = arith.addf %611, %613 : vector<8x128xf32>
    %615 = math.tanh %614 : vector<8x128xf32>
    %cst_174 = arith.constant 1.000000e+00 : f32
    %616 = vector.broadcast %cst_174 : f32 to vector<8x128xf32>
    %617 = arith.subf %616, %610 : vector<8x128xf32>
    %618 = arith.mulf %617, %615 : vector<8x128xf32>
    %619 = arith.mulf %610, %561 : vector<8x128xf32>
    %620 = arith.addf %618, %619 : vector<8x128xf32>
    %621 = arith.index_cast %579 : i32 to index
    %c0_175 = arith.constant 0 : index
    %c0_176 = arith.constant 0 : index
    %622 = vector.load %arg15[%621, %c0_175, %c0_176] : memref<8x8x384xf32, #tpu.memory_space<vmem>>, vector<1x8x384xf32>
    %623 = vector.shape_cast %622 : vector<1x8x384xf32> to vector<8x384xf32>
    %624 = vector.extract_strided_slice %623 {offsets = [0, 0], sizes = [8, 128], strides = [1, 1]} : vector<8x384xf32> to vector<8x128xf32>
    %625 = vector.extract_strided_slice %591 {offsets = [0, 0], sizes = [8, 128], strides = [1, 1]} : vector<8x384xf32> to vector<8x128xf32>
    %626 = arith.addf %624, %625 : vector<8x128xf32>
    %627 = arith.negf %626 : vector<8x128xf32>
    %628 = math.exp %627 : vector<8x128xf32>
    %cst_177 = arith.constant 1.000000e+00 : f32
    %629 = vector.broadcast %cst_177 : f32 to vector<8x128xf32>
    %630 = arith.addf %629, %628 : vector<8x128xf32>
    %631 = arith.divf %629, %630 : vector<8x128xf32>
    %632 = vector.extract_strided_slice %623 {offsets = [0, 128], sizes = [8, 128], strides = [1, 1]} : vector<8x384xf32> to vector<8x128xf32>
    %633 = vector.extract_strided_slice %591 {offsets = [0, 128], sizes = [8, 128], strides = [1, 1]} : vector<8x384xf32> to vector<8x128xf32>
    %634 = arith.addf %632, %633 : vector<8x128xf32>
    %635 = arith.negf %634 : vector<8x128xf32>
    %636 = math.exp %635 : vector<8x128xf32>
    %cst_178 = arith.constant 1.000000e+00 : f32
    %637 = vector.broadcast %cst_178 : f32 to vector<8x128xf32>
    %638 = arith.addf %637, %636 : vector<8x128xf32>
    %639 = arith.divf %637, %638 : vector<8x128xf32>
    %640 = vector.extract_strided_slice %623 {offsets = [0, 256], sizes = [8, 128], strides = [1, 1]} : vector<8x384xf32> to vector<8x128xf32>
    %641 = vector.extract_strided_slice %591 {offsets = [0, 256], sizes = [8, 128], strides = [1, 1]} : vector<8x384xf32> to vector<8x128xf32>
    %642 = arith.mulf %631, %641 : vector<8x128xf32>
    %643 = arith.addf %640, %642 : vector<8x128xf32>
    %644 = math.tanh %643 : vector<8x128xf32>
    %cst_179 = arith.constant 1.000000e+00 : f32
    %645 = vector.broadcast %cst_179 : f32 to vector<8x128xf32>
    %646 = arith.subf %645, %639 : vector<8x128xf32>
    %647 = arith.mulf %646, %644 : vector<8x128xf32>
    %648 = arith.mulf %639, %566 : vector<8x128xf32>
    %649 = arith.addf %647, %648 : vector<8x128xf32>
    %cst_180 = arith.constant 5.000000e-01 : f32
    %650 = vector.broadcast %cst_180 : f32 to vector<8x1xf32>
    %651 = arith.cmpf ogt, %582, %650 : vector<8x1xf32>
    %652 = vector.shape_cast %651 : vector<8x1xi1> to vector<8x1xi1>
    %653 = vector.broadcast %652 : vector<8x1xi1> to vector<8x128xi1>
    %654 = arith.select %653, %620, %561 : vector<8x128xi1>, vector<8x128xf32>
    %cst_181 = arith.constant 5.000000e-01 : f32
    %655 = vector.broadcast %cst_181 : f32 to vector<8x1xf32>
    %656 = arith.cmpf ogt, %585, %655 : vector<8x1xf32>
    %657 = vector.shape_cast %656 : vector<8x1xi1> to vector<8x1xi1>
    %658 = vector.broadcast %657 : vector<8x1xi1> to vector<8x128xi1>
    %659 = arith.select %658, %649, %566 : vector<8x128xi1>, vector<8x128xf32>
    %660 = vector.broadcast %582 : vector<8x1xf32> to vector<8x128xf32>
    %661 = arith.mulf %654, %660 : vector<8x128xf32>
    %662 = arith.index_cast %c6_i32 : i32 to index
    %c0_182 = arith.constant 0 : index
    %c0_183 = arith.constant 0 : index
    %663 = vector.load %arg16[%662, %c0_182, %c0_183] : memref<8x8x128xf32, #tpu.memory_space<vmem>>, vector<1x8x128xf32>
    %664 = vector.shape_cast %663 : vector<1x8x128xf32> to vector<8x128xf32>
    %665 = vector.shape_cast %661 : vector<8x128xf32> to vector<1x8x128xf32>
    tpu.vector_store %arg16[%662, %c0_182, %c0_183], %665 {strides = array<i32>} : memref<8x8x128xf32, #tpu.memory_space<vmem>>, vector<1x8x128xf32>,
    %666 = vector.broadcast %585 : vector<8x1xf32> to vector<8x128xf32>
    %667 = arith.mulf %659, %666 : vector<8x128xf32>
    %668 = arith.index_cast %579 : i32 to index
    %c0_184 = arith.constant 0 : index
    %c0_185 = arith.constant 0 : index
    %669 = vector.load %arg17[%668, %c0_184, %c0_185] : memref<8x8x128xf32, #tpu.memory_space<vmem>>, vector<1x8x128xf32>
    %670 = vector.shape_cast %669 : vector<1x8x128xf32> to vector<8x128xf32>
    %671 = vector.shape_cast %667 : vector<8x128xf32> to vector<1x8x128xf32>
    tpu.vector_store %arg17[%668, %c0_184, %c0_185], %671 {strides = array<i32>} : memref<8x8x128xf32, #tpu.memory_space<vmem>>, vector<1x8x128xf32>,
    %c7_i32_186 = arith.constant 7 : i32
    %c7_i32_187 = arith.constant 7 : i32
    %672 = arith.subi %c7_i32_187, %c7_i32_186 : i32
    %673 = arith.index_cast %c7_i32_186 : i32 to index
    %c0_188 = arith.constant 0 : index
    %c0_189 = arith.constant 0 : index
    %674 = vector.load %arg1[%673, %c0_188, %c0_189] : memref<8x8x1xf32, #tpu.memory_space<vmem>>, vector<1x8x1xf32>
    %675 = vector.shape_cast %674 : vector<1x8x1xf32> to vector<8x1xf32>
    %676 = arith.index_cast %672 : i32 to index
    %c0_190 = arith.constant 0 : index
    %c0_191 = arith.constant 0 : index
    %677 = vector.load %arg1[%676, %c0_190, %c0_191] : memref<8x8x1xf32, #tpu.memory_space<vmem>>, vector<1x8x1xf32>
    %678 = vector.shape_cast %677 : vector<1x8x1xf32> to vector<8x1xf32>
    %cst_192 = arith.constant dense<0.000000e+00> : vector<8x384xf32>
    %679 = tpu.matmul %654, %16, %cst_192 {dimension_numbers = #tpu.dot_dimension_numbers<[1], [0], [0], [1], [0, 0, 1, 1], [], []>} : vector<8x128xf32>, vector<128x384xf32>, vector<8x384xf32> -> vector<8x384xf32>
    %680 = vector.broadcast %18 : vector<1x384xf32> to vector<8x384xf32>
    %681 = arith.addf %679, %680 : vector<8x384xf32>
    %cst_193 = arith.constant dense<0.000000e+00> : vector<8x384xf32>
    %682 = tpu.matmul %659, %17, %cst_193 {dimension_numbers = #tpu.dot_dimension_numbers<[1], [0], [0], [1], [0, 0, 1, 1], [], []>} : vector<8x128xf32>, vector<128x384xf32>, vector<8x384xf32> -> vector<8x384xf32>
    %683 = vector.broadcast %19 : vector<1x384xf32> to vector<8x384xf32>
    %684 = arith.addf %682, %683 : vector<8x384xf32>
    %685 = arith.index_cast %c7_i32_186 : i32 to index
    %c0_194 = arith.constant 0 : index
    %c0_195 = arith.constant 0 : index
    %686 = vector.load %arg14[%685, %c0_194, %c0_195] : memref<8x8x384xf32, #tpu.memory_space<vmem>>, vector<1x8x384xf32>
    %687 = vector.shape_cast %686 : vector<1x8x384xf32> to vector<8x384xf32>
    %688 = vector.extract_strided_slice %687 {offsets = [0, 0], sizes = [8, 128], strides = [1, 1]} : vector<8x384xf32> to vector<8x128xf32>
    %689 = vector.extract_strided_slice %681 {offsets = [0, 0], sizes = [8, 128], strides = [1, 1]} : vector<8x384xf32> to vector<8x128xf32>
    %690 = arith.addf %688, %689 : vector<8x128xf32>
    %691 = arith.negf %690 : vector<8x128xf32>
    %692 = math.exp %691 : vector<8x128xf32>
    %cst_196 = arith.constant 1.000000e+00 : f32
    %693 = vector.broadcast %cst_196 : f32 to vector<8x128xf32>
    %694 = arith.addf %693, %692 : vector<8x128xf32>
    %695 = arith.divf %693, %694 : vector<8x128xf32>
    %696 = vector.extract_strided_slice %687 {offsets = [0, 128], sizes = [8, 128], strides = [1, 1]} : vector<8x384xf32> to vector<8x128xf32>
    %697 = vector.extract_strided_slice %681 {offsets = [0, 128], sizes = [8, 128], strides = [1, 1]} : vector<8x384xf32> to vector<8x128xf32>
    %698 = arith.addf %696, %697 : vector<8x128xf32>
    %699 = arith.negf %698 : vector<8x128xf32>
    %700 = math.exp %699 : vector<8x128xf32>
    %cst_197 = arith.constant 1.000000e+00 : f32
    %701 = vector.broadcast %cst_197 : f32 to vector<8x128xf32>
    %702 = arith.addf %701, %700 : vector<8x128xf32>
    %703 = arith.divf %701, %702 : vector<8x128xf32>
    %704 = vector.extract_strided_slice %687 {offsets = [0, 256], sizes = [8, 128], strides = [1, 1]} : vector<8x384xf32> to vector<8x128xf32>
    %705 = vector.extract_strided_slice %681 {offsets = [0, 256], sizes = [8, 128], strides = [1, 1]} : vector<8x384xf32> to vector<8x128xf32>
    %706 = arith.mulf %695, %705 : vector<8x128xf32>
    %707 = arith.addf %704, %706 : vector<8x128xf32>
    %708 = math.tanh %707 : vector<8x128xf32>
    %cst_198 = arith.constant 1.000000e+00 : f32
    %709 = vector.broadcast %cst_198 : f32 to vector<8x128xf32>
    %710 = arith.subf %709, %703 : vector<8x128xf32>
    %711 = arith.mulf %710, %708 : vector<8x128xf32>
    %712 = arith.mulf %703, %654 : vector<8x128xf32>
    %713 = arith.addf %711, %712 : vector<8x128xf32>
    %714 = arith.index_cast %672 : i32 to index
    %c0_199 = arith.constant 0 : index
    %c0_200 = arith.constant 0 : index
    %715 = vector.load %arg15[%714, %c0_199, %c0_200] : memref<8x8x384xf32, #tpu.memory_space<vmem>>, vector<1x8x384xf32>
    %716 = vector.shape_cast %715 : vector<1x8x384xf32> to vector<8x384xf32>
    %717 = vector.extract_strided_slice %716 {offsets = [0, 0], sizes = [8, 128], strides = [1, 1]} : vector<8x384xf32> to vector<8x128xf32>
    %718 = vector.extract_strided_slice %684 {offsets = [0, 0], sizes = [8, 128], strides = [1, 1]} : vector<8x384xf32> to vector<8x128xf32>
    %719 = arith.addf %717, %718 : vector<8x128xf32>
    %720 = arith.negf %719 : vector<8x128xf32>
    %721 = math.exp %720 : vector<8x128xf32>
    %cst_201 = arith.constant 1.000000e+00 : f32
    %722 = vector.broadcast %cst_201 : f32 to vector<8x128xf32>
    %723 = arith.addf %722, %721 : vector<8x128xf32>
    %724 = arith.divf %722, %723 : vector<8x128xf32>
    %725 = vector.extract_strided_slice %716 {offsets = [0, 128], sizes = [8, 128], strides = [1, 1]} : vector<8x384xf32> to vector<8x128xf32>
    %726 = vector.extract_strided_slice %684 {offsets = [0, 128], sizes = [8, 128], strides = [1, 1]} : vector<8x384xf32> to vector<8x128xf32>
    %727 = arith.addf %725, %726 : vector<8x128xf32>
    %728 = arith.negf %727 : vector<8x128xf32>
    %729 = math.exp %728 : vector<8x128xf32>
    %cst_202 = arith.constant 1.000000e+00 : f32
    %730 = vector.broadcast %cst_202 : f32 to vector<8x128xf32>
    %731 = arith.addf %730, %729 : vector<8x128xf32>
    %732 = arith.divf %730, %731 : vector<8x128xf32>
    %733 = vector.extract_strided_slice %716 {offsets = [0, 256], sizes = [8, 128], strides = [1, 1]} : vector<8x384xf32> to vector<8x128xf32>
    %734 = vector.extract_strided_slice %684 {offsets = [0, 256], sizes = [8, 128], strides = [1, 1]} : vector<8x384xf32> to vector<8x128xf32>
    %735 = arith.mulf %724, %734 : vector<8x128xf32>
    %736 = arith.addf %733, %735 : vector<8x128xf32>
    %737 = math.tanh %736 : vector<8x128xf32>
    %cst_203 = arith.constant 1.000000e+00 : f32
    %738 = vector.broadcast %cst_203 : f32 to vector<8x128xf32>
    %739 = arith.subf %738, %732 : vector<8x128xf32>
    %740 = arith.mulf %739, %737 : vector<8x128xf32>
    %741 = arith.mulf %732, %659 : vector<8x128xf32>
    %742 = arith.addf %740, %741 : vector<8x128xf32>
    %cst_204 = arith.constant 5.000000e-01 : f32
    %743 = vector.broadcast %cst_204 : f32 to vector<8x1xf32>
    %744 = arith.cmpf ogt, %675, %743 : vector<8x1xf32>
    %745 = vector.shape_cast %744 : vector<8x1xi1> to vector<8x1xi1>
    %746 = vector.broadcast %745 : vector<8x1xi1> to vector<8x128xi1>
    %747 = arith.select %746, %713, %654 : vector<8x128xi1>, vector<8x128xf32>
    %cst_205 = arith.constant 5.000000e-01 : f32
    %748 = vector.broadcast %cst_205 : f32 to vector<8x1xf32>
    %749 = arith.cmpf ogt, %678, %748 : vector<8x1xf32>
    %750 = vector.shape_cast %749 : vector<8x1xi1> to vector<8x1xi1>
    %751 = vector.broadcast %750 : vector<8x1xi1> to vector<8x128xi1>
    %752 = arith.select %751, %742, %659 : vector<8x128xi1>, vector<8x128xf32>
    %753 = vector.broadcast %675 : vector<8x1xf32> to vector<8x128xf32>
    %754 = arith.mulf %747, %753 : vector<8x128xf32>
    %755 = arith.index_cast %c7_i32_186 : i32 to index
    %c0_206 = arith.constant 0 : index
    %c0_207 = arith.constant 0 : index
    %756 = vector.load %arg16[%755, %c0_206, %c0_207] : memref<8x8x128xf32, #tpu.memory_space<vmem>>, vector<1x8x128xf32>
    %757 = vector.shape_cast %756 : vector<1x8x128xf32> to vector<8x128xf32>
    %758 = vector.shape_cast %754 : vector<8x128xf32> to vector<1x8x128xf32>
    tpu.vector_store %arg16[%755, %c0_206, %c0_207], %758 {strides = array<i32>} : memref<8x8x128xf32, #tpu.memory_space<vmem>>, vector<1x8x128xf32>,
    %759 = vector.broadcast %678 : vector<8x1xf32> to vector<8x128xf32>
    %760 = arith.mulf %752, %759 : vector<8x128xf32>
    %761 = arith.index_cast %672 : i32 to index
    %c0_208 = arith.constant 0 : index
    %c0_209 = arith.constant 0 : index
    %762 = vector.load %arg17[%761, %c0_208, %c0_209] : memref<8x8x128xf32, #tpu.memory_space<vmem>>, vector<1x8x128xf32>
    %763 = vector.shape_cast %762 : vector<1x8x128xf32> to vector<8x128xf32>
    %764 = vector.shape_cast %760 : vector<8x128xf32> to vector<1x8x128xf32>
    tpu.vector_store %arg17[%761, %c0_208, %c0_209], %764 {strides = array<i32>} : memref<8x8x128xf32, #tpu.memory_space<vmem>>, vector<1x8x128xf32>,
    %c8_i32 = arith.constant 8 : i32
    %c0_210 = arith.constant 0 : index
    %c0_211 = arith.constant 0 : index
    %c0_212 = arith.constant 0 : index
    %765 = vector.load %arg16[%c0_210, %c0_211, %c0_212] : memref<8x8x128xf32, #tpu.memory_space<vmem>>, vector<8x8x128xf32>
    %c0_213 = arith.constant 0 : index
    %c0_214 = arith.constant 0 : index
    %c0_215 = arith.constant 0 : index
    %766 = vector.load %arg17[%c0_213, %c0_214, %c0_215] : memref<8x8x128xf32, #tpu.memory_space<vmem>>, vector<8x8x128xf32>
    %767 = tpu.concatenate %765, %766 in 2 : vector<8x8x128xf32>, vector<8x8x128xf32> -> vector<8x8x256xf32>
    %768 = vector.shape_cast %767 : vector<8x8x256xf32> to vector<64x256xf32>
    %c0_216 = arith.constant 0 : index
    %c0_217 = arith.constant 0 : index
    %769 = vector.load %arg10[%c0_216, %c0_217] : memref<256x128xf32, #tpu.memory_space<vmem>>, vector<256x128xf32>
    %cst_218 = arith.constant dense<0.000000e+00> : vector<64x128xf32>
    %770 = tpu.matmul %768, %769, %cst_218 {dimension_numbers = #tpu.dot_dimension_numbers<[1], [0], [0], [1], [0, 0, 1, 1], [], []>} : vector<64x256xf32>, vector<256x128xf32>, vector<64x128xf32> -> vector<64x128xf32>
    %c0_219 = arith.constant 0 : index
    %c0_220 = arith.constant 0 : index
    %771 = vector.load %arg11[%c0_219, %c0_220] : memref<1x128xf32, #tpu.memory_space<vmem>>, vector<1x128xf32>
    %772 = vector.broadcast %771 : vector<1x128xf32> to vector<64x128xf32>
    %773 = arith.addf %770, %772 : vector<64x128xf32>
    %774 = math.tanh %773 : vector<64x128xf32>
    %775 = vector.shape_cast %774 : vector<64x128xf32> to vector<8x8x128xf32>
    %c0_221 = arith.constant 0 : index
    %c0_222 = arith.constant 0 : index
    %776 = vector.load %arg12[%c0_221, %c0_222] : memref<1x128xf32, #tpu.memory_space<vmem>>, vector<1x128xf32>
    %777 = vector.shape_cast %776 : vector<1x128xf32> to vector<1x1x128xf32>
    %778 = vector.broadcast %777 : vector<1x1x128xf32> to vector<8x8x128xf32>
    %779 = arith.mulf %775, %778 : vector<8x8x128xf32>
    %cst_223 = arith.constant dense<0.000000e+00> : vector<8x8xf32>
    %780 = vector.multi_reduction <add>, %779, %cst_223 [2] : vector<8x8x128xf32> to vector<8x8xf32>
    %781 = vector.shape_cast %780 : vector<8x8xf32> to vector<8x8x1xf32>
    %782 = math.exp %781 : vector<8x8x1xf32>
    %c0_224 = arith.constant 0 : index
    %c0_225 = arith.constant 0 : index
    %c0_226 = arith.constant 0 : index
    %783 = vector.load %arg1[%c0_224, %c0_225, %c0_226] : memref<8x8x1xf32, #tpu.memory_space<vmem>>, vector<8x8x1xf32>
    %784 = arith.mulf %782, %783 : vector<8x8x1xf32>
    %785 = vector.broadcast %784 : vector<8x8x1xf32> to vector<8x8x256xf32>
    %786 = arith.mulf %785, %767 : vector<8x8x256xf32>
    %cst_227 = arith.constant dense<0.000000e+00> : vector<8x256xf32>
    %787 = vector.multi_reduction <add>, %786, %cst_227 [0] : vector<8x8x256xf32> to vector<8x256xf32>
    %cst_228 = arith.constant dense<0.000000e+00> : vector<8x1xf32>
    %788 = vector.multi_reduction <add>, %784, %cst_228 [0] : vector<8x8x1xf32> to vector<8x1xf32>
    %cst_229 = arith.constant 9.99999974E-5 : f32
    %789 = vector.broadcast %cst_229 : f32 to vector<8x1xf32>
    %790 = arith.addf %788, %789 : vector<8x1xf32>
    %791 = vector.broadcast %790 : vector<8x1xf32> to vector<8x256xf32>
    %792 = arith.divf %787, %791 : vector<8x256xf32>
    %c0_230 = arith.constant 0 : index
    %c0_231 = arith.constant 0 : index
    %793 = vector.load %arg13[%c0_230, %c0_231] : memref<8x256xf32, #tpu.memory_space<vmem>>, vector<8x256xf32>
    tpu.vector_store %arg13[%c0_230, %c0_231], %792 {strides = array<i32>} : memref<8x256xf32, #tpu.memory_space<vmem>>, vector<8x256xf32>,
    return
  }
}

</mosaic_0001>

<bundles_post_ra>
// kernel: tpu_custom_call.1
= control target key start
LH: loop header
LB: loop body
LE: loop exit
PB: predicated region body
PF: predicated region fallthrough
CT: control target
= control target key end

     0   :  { %18 = vsyncpa [#allocation7], 0  ;;  %s8119_s0 = inlined_call_operand.vmem [shape: f32[8,8,128], index: 0, kind: input, shape index: {}]   ;;  %s8120_s1 = inlined_call_operand.vmem [shape: f32[8,8,1], index: 1, kind: input, shape index: {}]   ;;  %s8121_s2 = inlined_call_operand.hbm [shape: f32[128,384], index: 2, kind: input, shape index: {}]   ;;  %s8122_s3 = inlined_call_operand.hbm [shape: f32[128,384], index: 3, kind: input, shape index: {}]   ;;  %s8123_s4 = inlined_call_operand.vmem [shape: f32[1,384], index: 4, kind: input, shape index: {}]   ;;  %s8124_s5 = inlined_call_operand.vmem [shape: f32[1,384], index: 5, kind: input, shape index: {}]   ;;  %s8125_s6 = inlined_call_operand.hbm [shape: f32[128,384], index: 6, kind: input, shape index: {}]   ;;  %s8126_s7 = inlined_call_operand.hbm [shape: f32[128,384], index: 7, kind: input, shape index: {}]   ;;  %s8127_s8 = inlined_call_operand.vmem [shape: f32[1,384], index: 8, kind: input, shape index: {}]   ;;  %s8128_s9 = inlined_call_operand.vmem [shape: f32[1,384], index: 9, kind: input, shape index: {}]   ;;  %s8129_s10 = inlined_call_operand.hbm [shape: f32[256,128], index: 10, kind: input, shape index: {}]   ;;  %s8130_s11 = inlined_call_operand.vmem [shape: f32[1,128], index: 11, kind: input, shape index: {}]   ;;  %s8131_s12 = inlined_call_operand.vmem [shape: f32[1,128], index: 12, kind: input, shape index: {}]   ;;  %s8132_s13 = inlined_call_operand.hbm [shape: f32[8,256], index: 13, kind: output, shape index: {}]  }
   0x1   :  { %19 = vsyncpa [#allocation10], 0 }
   0x2   :  { %20 = vsyncpa [#allocation13], 0 }
   0x3   :  { %21 = vsyncpa [#allocation8], 0  ;;  %s6703_s25 = smov [#allocation9]   ;;  %s6704_s27 = smov [#allocation12]  }
   0x4   :  { %s43_s26 = sshll.u32 %s6703_s25, 4  ;;  %s71_s28 = sshll.u32 %s6704_s27, 4  ;;  %s44_s26 = int_to_ptr.vmem [resolvable:$true] %s43_s26  ;;  %s6787_s28 = int_to_ptr.vmem [resolvable:$true] %s71_s28 }
   0x5   :  { %s6563_s14 = scalar_lea.hbm %s8122_s3, 6144 }
   0x6   :  { %p6564_p0 = scmp.ne.s32.totalorder %s8122_s3, %s6563_s14  ;;  %p6567_p1 = scmp.lt.u32.totalorder %s6563_s14, %s8122_s3 }
   0x8   :  { %p6569_p2 = pnand %p6567_p1, %p6564_p0 }
   0xa   :  { %6572 = shalt.err (!%p6569_p2)
}
   0xb   :  { %s6573_s19 = scalar_lea.vmem %s44_s26, 6144  ;;  %p6578_p4 = scmp.lt.s32.totalorder %s44_s26, %s44_s26 }
   0xc   :  { %p6574_p3 = scmp.ne.s32.totalorder %s44_s26, %s6573_s19  ;;  %p6579_p5 = scmp.lt.s32.totalorder %s6573_s19, %s6573_s19 }
   0xe   :  { %p6580_p6 = por %p6579_p5, %p6578_p4 }
  0x10   :  { %p6581_p7 = pnand %p6580_p6, %p6574_p3 }
  0x12   :  { %6584 = shalt.err (!%p6581_p7)
}
  0x13   :  { %s6705_s20 = smov 384   ;;  %s6706_s21 = smov 24  }
  0x14   :  { %49 = dma.hbm_to_vmem [thread:$0]  %s8122_s3, 6144, %s44_s26, [#allocation10], %s6705_s20, %s6705_s20, %s6706_s21  }
  0x15   :  { %s6585_s27 = scalar_lea.hbm %s8126_s7, 6144 }
  0x16   :  { %p6586_p8 = scmp.ne.s32.totalorder %s8126_s7, %s6585_s27  ;;  %p6589_p9 = scmp.lt.u32.totalorder %s6585_s27, %s8126_s7 }
  0x18   :  { %p6591_p10 = pnand %p6589_p9, %p6586_p8 }
  0x1a   :  { %6594 = shalt.err (!%p6591_p10)
}
  0x1b   :  { %s6595_s16 = scalar_lea.vmem %s6787_s28, 6144  ;;  %p6600_p12 = scmp.lt.s32.totalorder %s6787_s28, %s6787_s28 }
  0x1c   :  { %p6596_p11 = scmp.ne.s32.totalorder %s6787_s28, %s6595_s16  ;;  %p6601_p13 = scmp.lt.s32.totalorder %s6595_s16, %s6595_s16 }
  0x1e   :  { %p6602_p0 = por %p6601_p13, %p6600_p12 }
  0x20   :  { %p6603_p1 = pnand %p6602_p0, %p6596_p11 }
  0x22   :  { %6606 = shalt.err (!%p6603_p1)
}
  0x23   :  { %77 = dma.hbm_to_vmem [thread:$0]  %s8126_s7, 6144, %s6787_s28, [#allocation13], %s6705_s20, %s6705_s20, %s6706_s21  }
  0x24   :  { %s6707_s17 = smov [#allocation6]   ;;  %s6708_s19 = smov [#allocation11]  }
  0x25   :  { %s31_s18 = sshll.u32 %s6707_s17, 4  ;;  %s59_s22 = sshll.u32 %s6708_s19, 4  ;;  %s32_s18 = int_to_ptr.vmem [resolvable:$true] %s31_s18  ;;  %s6824_s22 = int_to_ptr.vmem [resolvable:$true] %s59_s22 }
  0x26   :  { %s6607_s25 = scalar_lea.hbm %s8121_s2, 6144 }
  0x27   :  { %p6608_p2 = scmp.ne.s32.totalorder %s8121_s2, %s6607_s25  ;;  %p6611_p3 = scmp.lt.u32.totalorder %s6607_s25, %s8121_s2 }
  0x29   :  { %p6613_p4 = pnand %p6611_p3, %p6608_p2 }
  0x2b   :  { %6616 = shalt.err (!%p6613_p4)
}
  0x2c   :  { %s6617_s7 = scalar_lea.vmem %s32_s18, 6144  ;;  %p6622_p6 = scmp.lt.s32.totalorder %s32_s18, %s32_s18 }
  0x2d   :  { %p6618_p5 = scmp.ne.s32.totalorder %s32_s18, %s6617_s7  ;;  %p6623_p7 = scmp.lt.s32.totalorder %s6617_s7, %s6617_s7 }
  0x2f   :  { %p6624_p8 = por %p6623_p7, %p6622_p6 }
  0x31   :  { %p6625_p9 = pnand %p6624_p8, %p6618_p5 }
  0x33   :  { %6628 = shalt.err (!%p6625_p9)
}
  0x34   :  { %37 = dma.hbm_to_vmem [thread:$0]  %s8121_s2, 6144, %s32_s18, [#allocation7], %s6705_s20, %s6705_s20, %s6706_s21  }
  0x35   :  { %s6629_s26 = scalar_lea.hbm %s8125_s6, 6144 }
  0x36   :  { %p6630_p10 = scmp.ne.s32.totalorder %s8125_s6, %s6629_s26  ;;  %p6633_p11 = scmp.lt.u32.totalorder %s6629_s26, %s8125_s6 }
  0x38   :  { %p6635_p12 = pnand %p6633_p11, %p6630_p10 }
  0x3a   :  { %6638 = shalt.err (!%p6635_p12)
}
  0x3b   :  { %s6639_s25 = scalar_lea.vmem %s6824_s22, 6144  ;;  %p6644_p0 = scmp.lt.s32.totalorder %s6824_s22, %s6824_s22 }
  0x3c   :  { %p6640_p13 = scmp.ne.s32.totalorder %s6824_s22, %s6639_s25  ;;  %p6645_p1 = scmp.lt.s32.totalorder %s6639_s25, %s6639_s25 }
  0x3e   :  { %p6646_p2 = por %p6645_p1, %p6644_p0 }
  0x40   :  { %p6647_p3 = pnand %p6646_p2, %p6640_p13 }
  0x42   :  { %6650 = shalt.err (!%p6647_p3)
}
  0x43   :  { %65 = dma.hbm_to_vmem [thread:$0]  %s8125_s6, 6144, %s6824_s22, [#allocation10], %s6705_s20, %s6705_s20, %s6706_s21  }
  0x44   :  { %s6709_s27 = smov [#allocation14]   ;;  %s6651_s7 = scalar_lea.hbm %s8129_s10, 4096 }
  0x45   :  { %s87_s29 = sshll.u32 %s6709_s27, 4  ;;  %p6652_p4 = scmp.ne.s32.totalorder %s8129_s10, %s6651_s7  ;;  %s88_s29 = int_to_ptr.vmem [resolvable:$true] %s87_s29 }
  0x46   :  { %p6655_p5 = scmp.lt.u32.totalorder %s6651_s7, %s8129_s10 }
  0x48   :  { %p6657_p6 = pnand %p6655_p5, %p6652_p4 }
  0x4a   :  { %6660 = shalt.err (!%p6657_p6)
}
  0x4b   :  { %s6661_s26 = scalar_lea.vmem %s88_s29, 4096  ;;  %p6666_p8 = scmp.lt.s32.totalorder %s88_s29, %s88_s29 }
  0x4c   :  { %p6662_p7 = scmp.ne.s32.totalorder %s88_s29, %s6661_s26  ;;  %p6667_p9 = scmp.lt.s32.totalorder %s6661_s26, %s6661_s26 }
  0x4e   :  { %p6668_p10 = por %p6667_p9, %p6666_p8 }
  0x50   :  { %p6669_p11 = pnand %p6668_p10, %p6662_p7 }
  0x52   :  { %6672 = shalt.err (!%p6669_p11)
}
  0x53   :  { %s6710_s6 = smov 128   ;;  %s6711_s20 = smov 8  }
  0x54   :  { %93 = dma.hbm_to_vmem [thread:$0]  %s8129_s10, 4096, %s88_s29, [#allocation13], %s6710_s6, %s6710_s6, %s6711_s20  }
  0x55   :  { %6695 = dma.done.wait [#allocation7], 6144  }
  0x56   :  { %6696 = vsyncadd [#allocation7], 4294961152 }
  0x57   :  { %6697 = dma.done.wait [#allocation10], 12288  }
  0x58   :  { %6698 = vsyncadd [#allocation10], 4294955008 }
  0x59   :  { %6699 = dma.done.wait [#allocation13], 10240  }
  0x5a   :  { %6700 = vsyncadd [#allocation13], 4294957056  ;;  %v8134_v0 = vmov 0.0   ;;  %v122_v1 = vld [vmem:[#allocation6 + $0x8] sm:$0xff]  ;;  %v125_v2 = vld [vmem:[#allocation6 + $0x20] sm:$0xff]  ;;  %vm6715_vm7 = vmmov 0  }
  0x5b   :  { %250 = vmatprep.mubr.f32.mxu1 %v8134_v0  ;;  %557 = vmatprep.mubr.f32.mxu0 %v8134_v0  ;;  %v429_v3 = vld [vmem:[#allocation11 + $0x8] sm:$0xff]  ;;  %v5201_v4 = vpack.c.bf16 %v125_v2, %v122_v1  ;;  %v432_v5 = vld [vmem:[#allocation11 + $0x20] sm:$0xff]  ;;  %v124_v7 = vld [vmem:[#allocation6 + $0x18] sm:$0xff] }
  0x5c   :  { %v121_v6 = vld [vmem:[#allocation6] sm:$0xff]  ;;  %v5265_v8 = vpack.c.bf16 %v432_v5, %v429_v3  ;;  %v431_v11 = vld [vmem:[#allocation11 + $0x18] sm:$0xff]  ;;  %v131_v14 = vld [vmem:[#allocation6 + $0x50] sm:$0xff] }
  0x5d   :  { %v5203_v9 = vpack.c.bf16 %v124_v7, %v121_v6  ;;  %v428_v10 = vld [vmem:[#allocation11] sm:$0xff]  ;;  %v128_v12 = vld [vmem:[#allocation6 + $0x38] sm:$0xff]  ;;  %5202 = vmatprep.subr.bf16.mxu1 %v5201_v4  ;;  %v438_v16 = vld [vmem:[#allocation11 + $0x50] sm:$0xff] }
  0x5e   :  { %v5267_v13 = vpack.c.bf16 %v431_v11, %v428_v10  ;;  %v435_v15 = vld [vmem:[#allocation11 + $0x38] sm:$0xff]  ;;  %5266 = vmatprep.subr.bf16.mxu0 %v5265_v8  ;;  %v5205_v17 = vpack.c.bf16 %v131_v14, %v128_v12  ;;  %v127_v19 = vld [vmem:[#allocation6 + $0x30] sm:$0xff]  ;;  %v130_v20 = vld [vmem:[#allocation6 + $0x48] sm:$0xff] }
  0x5f   :  { %5204 = vmatpush1.bf16.msra.mxu1 %v5203_v9  ;;  %v5269_v18 = vpack.c.bf16 %v438_v16, %v435_v15  ;;  %v434_v21 = vld [vmem:[#allocation11 + $0x30] sm:$0xff]  ;;  %v5207_v22 = vpack.c.bf16 %v130_v20, %v127_v19  ;;  %v437_v23 = vld [vmem:[#allocation11 + $0x48] sm:$0xff]  ;;  %v137_v25 = vld [vmem:[#allocation6 + $0x80] sm:$0xff] }
  0x60   :  { %5268 = vmatpush1.bf16.msra.mxu0 %v5267_v13  ;;  %v134_v24 = vld [vmem:[#allocation6 + $0x68] sm:$0xff]  ;;  %5206 = vmatprep.subr.bf16.mxu1 %v5205_v17  ;;  %v5271_v26 = vpack.c.bf16 %v437_v23, %v434_v21  ;;  %v444_v29 = vld [vmem:[#allocation11 + $0x80] sm:$0xff]  ;;  %v136_v32 = vld [vmem:[#allocation6 + $0x78] sm:$0xff] }
  0x61   :  { %5270 = vmatprep.subr.bf16.mxu0 %v5269_v18  ;;  %v5209_v27 = vpack.c.bf16 %v137_v25, %v134_v24  ;;  %v441_v28 = vld [vmem:[#allocation11 + $0x68] sm:$0xff]  ;;  %v133_v30 = vld [vmem:[#allocation6 + $0x60] sm:$0xff]  ;;  %v443_v34 = vld [vmem:[#allocation11 + $0x78] sm:$0xff] }
  0x62   :  { %v5273_v31 = vpack.c.bf16 %v444_v29, %v441_v28  ;;  %v440_v33 = vld [vmem:[#allocation11 + $0x60] sm:$0xff]  ;;  %v5211_v35 = vpack.c.bf16 %v136_v32, %v133_v30  ;;  %v140_v36 = vld [vmem:[#allocation6 + $0x98] sm:$0xff]  ;;  %v143_v37 = vld [vmem:[#allocation6 + $0xb0] sm:$0xff] }
  0x63   :  { %5208 = vmatpush1.bf16.msra.mxu1 %v5207_v22  ;;  %v447_v38 = vld [vmem:[#allocation11 + $0x98] sm:$0xff]  ;;  %v5275_v39 = vpack.c.bf16 %v443_v34, %v440_v33  ;;  %v5213_v40 = vpack.c.bf16 %v143_v37, %v140_v36  ;;  %v450_v41 = vld [vmem:[#allocation11 + $0xb0] sm:$0xff]  ;;  %v142_v43 = vld [vmem:[#allocation6 + $0xa8] sm:$0xff] }
  0x64   :  { %5272 = vmatpush1.bf16.msra.mxu0 %v5271_v26  ;;  %5210 = vmatprep.subr.bf16.mxu1 %v5209_v27  ;;  %v139_v42 = vld [vmem:[#allocation6 + $0x90] sm:$0xff]  ;;  %v5277_v44 = vpack.c.bf16 %v450_v41, %v447_v38  ;;  %v449_v46 = vld [vmem:[#allocation11 + $0xa8] sm:$0xff]  ;;  %v149_v48 = vld [vmem:[#allocation6 + $0xe0] sm:$0xff] }
  0x65   :  { %5274 = vmatprep.subr.bf16.mxu0 %v5273_v31  ;;  %v446_v45 = vld [vmem:[#allocation11 + $0x90] sm:$0xff]  ;;  %v146_v47 = vld [vmem:[#allocation6 + $0xc8] sm:$0xff]  ;;  %v456_v50 = vld [vmem:[#allocation11 + $0xe0] sm:$0xff]  ;;  %v5215_v51 = vpack.c.bf16 %v142_v43, %v139_v42 }
  0x66   :  { %v453_v49 = vld [vmem:[#allocation11 + $0xc8] sm:$0xff]  ;;  %v5279_v52 = vpack.c.bf16 %v449_v46, %v446_v45  ;;  %v5217_v53 = vpack.c.bf16 %v149_v48, %v146_v47  ;;  %v145_v54 = vld [vmem:[#allocation6 + $0xc0] sm:$0xff]  ;;  %v148_v55 = vld [vmem:[#allocation6 + $0xd8] sm:$0xff] }
  0x67   :  { %5212 = vmatpush1.bf16.msra.mxu1 %v5211_v35  ;;  %v452_v56 = vld [vmem:[#allocation11 + $0xc0] sm:$0xff]  ;;  %v5281_v57 = vpack.c.bf16 %v456_v50, %v453_v49  ;;  %v455_v58 = vld [vmem:[#allocation11 + $0xd8] sm:$0xff]  ;;  %v155_v60 = vld [vmem:[#allocation6 + $0x110] sm:$0xff]  ;;  %v5219_v63 = vpack.c.bf16 %v148_v55, %v145_v54 }
  0x68   :  { %5276 = vmatpush1.bf16.msra.mxu0 %v5275_v39  ;;  %5214 = vmatprep.subr.bf16.mxu1 %v5213_v40  ;;  %v152_v59 = vld [vmem:[#allocation6 + $0xf8] sm:$0xff]  ;;  %v462_v62 = vld [vmem:[#allocation11 + $0x110] sm:$0xff]  ;;  %v5283_v1 = vpack.c.bf16 %v455_v58, %v452_v56  ;;  %v154_v4 = vld [vmem:[#allocation6 + $0x108] sm:$0xff] }
  0x69   :  { %5278 = vmatprep.subr.bf16.mxu0 %v5277_v44  ;;  %v459_v61 = vld [vmem:[#allocation11 + $0xf8] sm:$0xff]  ;;  %v5221_v2 = vpack.c.bf16 %v155_v60, %v152_v59  ;;  %v151_v3 = vld [vmem:[#allocation6 + $0xf0] sm:$0xff]  ;;  %v461_v7 = vld [vmem:[#allocation11 + $0x108] sm:$0xff] }
  0x6a   :  { %v458_v5 = vld [vmem:[#allocation11 + $0xf0] sm:$0xff]  ;;  %v5285_v6 = vpack.c.bf16 %v462_v62, %v459_v61  ;;  %v158_v8 = vld [vmem:[#allocation6 + $0x128] sm:$0xff]  ;;  %v161_v9 = vld [vmem:[#allocation6 + $0x140] sm:$0xff]  ;;  %v5223_v12 = vpack.c.bf16 %v154_v4, %v151_v3 }
  0x6b   :  { %5216 = vmatpush1.bf16.msra.mxu1 %v5215_v51  ;;  %v465_v10 = vld [vmem:[#allocation11 + $0x128] sm:$0xff]  ;;  %v468_v11 = vld [vmem:[#allocation11 + $0x140] sm:$0xff]  ;;  %v5287_v13 = vpack.c.bf16 %v461_v7, %v458_v5  ;;  %v5225_v14 = vpack.c.bf16 %v161_v9, %v158_v8  ;;  %v160_v16 = vld [vmem:[#allocation6 + $0x138] sm:$0xff] }
  0x6c   :  { %5280 = vmatpush1.bf16.msra.mxu0 %v5279_v52  ;;  %5218 = vmatprep.subr.bf16.mxu1 %v5217_v53  ;;  %v157_v15 = vld [vmem:[#allocation6 + $0x120] sm:$0xff]  ;;  %v5289_v18 = vpack.c.bf16 %v468_v11, %v465_v10  ;;  %v467_v19 = vld [vmem:[#allocation11 + $0x138] sm:$0xff]  ;;  %v167_v21 = vld [vmem:[#allocation6 + $0x170] sm:$0xff] }
  0x6d   :  { %5282 = vmatprep.subr.bf16.mxu0 %v5281_v57  ;;  %v464_v17 = vld [vmem:[#allocation11 + $0x120] sm:$0xff]  ;;  %v164_v20 = vld [vmem:[#allocation6 + $0x158] sm:$0xff]  ;;  %v474_v23 = vld [vmem:[#allocation11 + $0x170] sm:$0xff]  ;;  %v5227_v24 = vpack.c.bf16 %v160_v16, %v157_v15 }
  0x6e   :  { %v471_v22 = vld [vmem:[#allocation11 + $0x158] sm:$0xff]  ;;  %v5291_v25 = vpack.c.bf16 %v467_v19, %v464_v17  ;;  %v5229_v26 = vpack.c.bf16 %v167_v21, %v164_v20  ;;  %v163_v27 = vld [vmem:[#allocation6 + $0x150] sm:$0xff]  ;;  %v166_v28 = vld [vmem:[#allocation6 + $0x168] sm:$0xff] }
  0x6f   :  { %5220 = vmatpush1.bf16.msra.mxu1 %v5219_v63  ;;  %v470_v29 = vld [vmem:[#allocation11 + $0x150] sm:$0xff]  ;;  %v5293_v30 = vpack.c.bf16 %v474_v23, %v471_v22  ;;  %v473_v31 = vld [vmem:[#allocation11 + $0x168] sm:$0xff]  ;;  %v739_v35 = vld [vmem:[#allocation9 + $0x20] sm:$0xff]  ;;  %v5231_v36 = vpack.c.bf16 %v166_v28, %v163_v27 }
  0x70   :  { %5284 = vmatpush1.bf16.msra.mxu0 %v5283_v1  ;;  %5222 = vmatprep.subr.bf16.mxu1 %v5221_v2  ;;  %v123_v32 = vld [vmem:[#allocation6 + $0x10] sm:$0xff]  ;;  %v126_v33 = vld [vmem:[#allocation6 + $0x28] sm:$0xff]  ;;  %v5295_v37 = vpack.c.bf16 %v473_v31, %v470_v29  ;;  %v735_v40 = vld [vmem:[#allocation9] sm:$0xff] }
  0x71   :  { %5286 = vmatprep.subr.bf16.mxu0 %v5285_v6  ;;  %v736_v34 = vld [vmem:[#allocation9 + $0x8] sm:$0xff]  ;;  %v5233_v38 = vpack.c.bf16 %v126_v33, %v123_v32  ;;  %v738_v41 = vld [vmem:[#allocation9 + $0x18] sm:$0xff]  ;;  %v129_v42 = vld [vmem:[#allocation6 + $0x40] sm:$0xff] }
  0x72   :  { %v6875_v39 = vpack.c.bf16 %v739_v35, %v736_v34  ;;  %v132_v43 = vld [vmem:[#allocation6 + $0x58] sm:$0xff]  ;;  %v6880_v44 = vld [vmem:[%s8119_s0] sm:$0xff]  ;;  %v745_v46 = vld [vmem:[#allocation9 + $0x50] sm:$0xff]  ;;  %v6882_v47 = vpack.c.bf16 %v738_v41, %v735_v40 }
  0x73   :  { %5224 = vmatpush1.bf16.msra.mxu1 %v5223_v12  ;;  %v742_v45 = vld [vmem:[#allocation9 + $0x38] sm:$0xff]  ;;  %v5237_v48 = vpack.c.bf16 %v132_v43, %v129_v42  ;;  %v741_v49 = vld [vmem:[#allocation9 + $0x30] sm:$0xff]  ;;  %v744_v50 = vld [vmem:[#allocation9 + $0x48] sm:$0xff] }
  0x74   :  { %5288 = vmatpush1.bf16.msra.mxu0 %v5287_v13  ;;  %5226 = vmatprep.subr.bf16.mxu1 %v5225_v14  ;;  %8200 = vst [vmem:[#allocation20_spill] sm:$0xff] %v6875_v39  ;;  %8201 = vst [vmem:[#allocation21_spill] sm:$0xff] %v6882_v47  ;;  %v6886_v51 = vpack.c.bf16 %v745_v46, %v742_v45  ;;  %v135_v52 = vld [vmem:[#allocation6 + $0x70] sm:$0xff]  ;;  %v138_v53 = vld [vmem:[#allocation6 + $0x88] sm:$0xff]  ;;  %v6896_v57 = vpack.c.bf16 %v744_v50, %v741_v49 }
  0x75   :  { %5290 = vmatprep.subr.bf16.mxu0 %v5289_v18  ;;  %v6892_v54 = vld [vmem:[%s8119_s0 + $0x8] sm:$0xff]  ;;  %v751_v56 = vld [vmem:[#allocation9 + $0x80] sm:$0xff]  ;;  %v5241_v58 = vpack.c.bf16 %v138_v53, %v135_v52  ;;  %v750_v60 = vld [vmem:[#allocation9 + $0x78] sm:$0xff] }
  0x76   :  { %8202 = vst [vmem:[#allocation22_spill] sm:$0xff] %v6886_v51  ;;  %v748_v55 = vld [vmem:[#allocation9 + $0x68] sm:$0xff]  ;;  %8203 = vst [vmem:[#allocation23_spill] sm:$0xff] %v6896_v57  ;;  %v747_v59 = vld [vmem:[#allocation9 + $0x60] sm:$0xff] }
  0x77   :  { %5228 = vmatpush1.bf16.msra.mxu1 %v5227_v24  ;;  %v6901_v61 = vpack.c.bf16 %v751_v56, %v748_v55  ;;  %v141_v62 = vld [vmem:[#allocation6 + $0xa0] sm:$0xff]  ;;  %v144_v63 = vld [vmem:[#allocation6 + $0xb8] sm:$0xff]  ;;  %v6907_v1 = vld [vmem:[%s8119_s0 + $0x10] sm:$0xff]  ;;  %v6911_v4 = vpack.c.bf16 %v750_v60, %v747_v59 }
  0x78   :  { %5292 = vmatpush1.bf16.msra.mxu0 %v5291_v25  ;;  %5230 = vmatprep.subr.bf16.mxu1 %v5229_v26  ;;  %v754_v2 = vld [vmem:[#allocation9 + $0x98] sm:$0xff]  ;;  %v757_v3 = vld [vmem:[#allocation9 + $0xb0] sm:$0xff]  ;;  %v5245_v5 = vpack.c.bf16 %v144_v63, %v141_v62  ;;  %v756_v7 = vld [vmem:[#allocation9 + $0xa8] sm:$0xff] }
  0x79   :  { %5294 = vmatprep.subr.bf16.mxu0 %v5293_v30  ;;  %8204 = vst [vmem:[#allocation24_spill] sm:$0xff] %v6901_v61  ;;  %8205 = vst [vmem:[#allocation25_spill] sm:$0xff] %v6911_v4  ;;  %v753_v6 = vld [vmem:[#allocation9 + $0x90] sm:$0xff]  ;;  %v6916_v8 = vpack.c.bf16 %v757_v3, %v754_v2  ;;  %v150_v10 = vld [vmem:[#allocation6 + $0xe8] sm:$0xff] }
  0x7a   :  { %v147_v9 = vld [vmem:[#allocation6 + $0xd0] sm:$0xff]  ;;  %v6922_v11 = vld [vmem:[%s8119_s0 + $0x18] sm:$0xff]  ;;  %v760_v12 = vld [vmem:[#allocation9 + $0xc8] sm:$0xff]  ;;  %v6926_v14 = vpack.c.bf16 %v756_v7, %v753_v6 }
  0x7b   :  { %5232 = vmatpush1.bf16.msra.mxu1 %v5231_v36  ;;  %8206 = vst [vmem:[#allocation26_spill] sm:$0xff] %v6916_v8  ;;  %v763_v13 = vld [vmem:[#allocation9 + $0xe0] sm:$0xff]  ;;  %v5249_v15 = vpack.c.bf16 %v150_v10, %v147_v9  ;;  %v762_v17 = vld [vmem:[#allocation9 + $0xd8] sm:$0xff]  ;;  %v769_v23 = vld [vmem:[#allocation9 + $0x110] sm:$0xff] }
  0x7c   :  { %5296 = vmatpush1.bf16.msra.mxu0 %v5295_v37  ;;  %5234 = vmatprep.subr.bf16.mxu1 %v5233_v38  ;;  %8207 = vst [vmem:[#allocation27_spill] sm:$0xff] %v6926_v14  ;;  %v759_v16 = vld [vmem:[#allocation9 + $0xc0] sm:$0xff]  ;;  %v6931_v18 = vpack.c.bf16 %v763_v13, %v760_v12  ;;  %v156_v20 = vld [vmem:[#allocation6 + $0x118] sm:$0xff]  ;;  %v765_v26 = vld [vmem:[#allocation9 + $0xf0] sm:$0xff] }
  0x7d   :  { %5330 = vmatprep.subr.bf16.mxu0 %v6875_v39  ;;  %v153_v19 = vld [vmem:[#allocation6 + $0x100] sm:$0xff]  ;;  %v766_v22 = vld [vmem:[#allocation9 + $0xf8] sm:$0xff]  ;;  %v6941_v24 = vpack.c.bf16 %v762_v17, %v759_v16  ;;  %v768_v27 = vld [vmem:[#allocation9 + $0x108] sm:$0xff] }
  0x7e   :  { %251 = vmatmul.mubr.f32.vlgmr.msra.gmra.mrb[0].mxu1 %v6880_v44  ;;  %8208 = vst [vmem:[#allocation28_spill] sm:$0xff] %v6931_v18  ;;  %v6937_v21 = vld [vmem:[%s8119_s0 + $0x20] sm:$0xff]  ;;  %v5253_v25 = vpack.c.bf16 %v156_v20, %v153_v19  ;;  %v6946_v28 = vpack.c.bf16 %v769_v23, %v766_v22  ;;  %v159_v29 = vld [vmem:[#allocation6 + $0x130] sm:$0xff]  ;;  %v162_v30 = vld [vmem:[#allocation6 + $0x148] sm:$0xff]  ;;  %v6956_v34 = vpack.c.bf16 %v768_v27, %v765_v26 }
  0x7f   :  { %558 = vmatmul.mubr.f32.vlgmr.msra.gmra.mrb[0].mxu0 %v6880_v44  ;;  %5236 = vmatpush3.bf16.msra.mxu1 %v5233_v38  ;;  %8209 = vst [vmem:[#allocation29_spill] sm:$0xff] %v6941_v24  ;;  %v6952_v31 = vld [vmem:[%s8119_s0 + $0x28] sm:$0xff]  ;;  %v775_v33 = vld [vmem:[#allocation9 + $0x140] sm:$0xff]  ;;  %v5257_v35 = vpack.c.bf16 %v162_v30, %v159_v29  ;;  %v774_v37 = vld [vmem:[#allocation9 + $0x138] sm:$0xff] }
  0x80   :  { %5332 = vmatpush1.bf16.msra.mxu0 %v6882_v47  ;;  %256 = vmatprep.mubr.f32.mxu1 %v8134_v0  ;;  %8210 = vst [vmem:[#allocation30_spill] sm:$0xff] %v6946_v28  ;;  %v772_v32 = vld [vmem:[#allocation9 + $0x128] sm:$0xff]  ;;  %8211 = vst [vmem:[#allocation31_spill] sm:$0xff] %v6956_v34  ;;  %v771_v36 = vld [vmem:[#allocation9 + $0x120] sm:$0xff] }
  0x81   :  { %563 = vmatprep.mubr.f32.mxu0 %v8134_v0  ;;  %5238 = vmatprep.subr.bf16.mxu1 %v5237_v48  ;;  %v6961_v38 = vpack.c.bf16 %v775_v33, %v772_v32  ;;  %v165_v40 = vld [vmem:[#allocation6 + $0x160] sm:$0xff]  ;;  %v168_v41 = vld [vmem:[#allocation6 + $0x178] sm:$0xff]  ;;  %v6967_v42 = vld [vmem:[%s8119_s0 + $0x30] sm:$0xff]  ;;  %v6971_v46 = vpack.c.bf16 %v774_v37, %v771_v36 }
  0x82   :  { %257 = vmatmul.mubr.f32.gmra.mrb[2].mxu1 %v6892_v54  ;;  %5334 = vmatprep.subr.bf16.mxu0 %v6886_v51  ;;  %v778_v43 = vld [vmem:[#allocation9 + $0x158] sm:$0xff]  ;;  %v781_v45 = vld [vmem:[#allocation9 + $0x170] sm:$0xff]  ;;  %v780_v50 = vld [vmem:[#allocation9 + $0x168] sm:$0xff] }
  0x83   :  { %564 = vmatmul.mubr.f32.gmra.mrb[2].mxu0 %v6892_v54  ;;  %5240 = vmatpush3.bf16.msra.mxu1 %v5237_v48  ;;  %8212 = vst [vmem:[#allocation32_spill] sm:$0xff] %v6961_v38  ;;  %8213 = vst [vmem:[#allocation33_spill] sm:$0xff] %v6971_v46  ;;  %v5261_v48 = vpack.c.bf16 %v168_v41, %v165_v40  ;;  %v777_v49 = vld [vmem:[#allocation9 + $0x150] sm:$0xff]  ;;  %v6976_v52 = vpack.c.bf16 %v781_v45, %v778_v43  ;;  %v433_v55 = vld [vmem:[#allocation11 + $0x28] sm:$0xff]  ;;  %v8133_v40 = vmov 0  }
  0x84   :  { %5336 = vmatpush1.bf16.msra.mxu0 %v6896_v57  ;;  %262 = vmatprep.mubr.f32.mxu1 %v8134_v0  ;;  %v430_v53 = vld [vmem:[#allocation11 + $0x10] sm:$0xff]  ;;  %v6982_v56 = vld [vmem:[%s8119_s0 + $0x38] sm:$0xff]  ;;  %v787_v59 = vld [vmem:[#allocation12 + $0x20] sm:$0xff]  ;;  %v6986_v60 = vpack.c.bf16 %v780_v50, %v777_v49 }
  0x85   :  { %569 = vmatprep.mubr.f32.mxu0 %v8134_v0  ;;  %5242 = vmatprep.subr.bf16.mxu1 %v5241_v58  ;;  %8214 = vst [vmem:[#allocation34_spill] sm:$0xff] %v6976_v52  ;;  %v783_v62 = vld [vmem:[#allocation12] sm:$0xff]  ;;  %v5297_v63 = vpack.c.bf16 %v433_v55, %v430_v53  ;;  %v786_v2 = vld [vmem:[#allocation12 + $0x18] sm:$0xff]  ;;  %v793_v9 = vld [vmem:[#allocation12 + $0x50] sm:$0xff] }
  0x86   :  { %263 = vmatmul.mubr.f32.gmra.mrb[4].mxu1 %v6907_v1  ;;  %5338 = vmatprep.subr.bf16.mxu0 %v6901_v61  ;;  %8215 = vst [vmem:[#allocation35_spill] sm:$0xff] %v6986_v60  ;;  %v436_v3 = vld [vmem:[#allocation11 + $0x40] sm:$0xff]  ;;  %v790_v7 = vld [vmem:[#allocation12 + $0x38] sm:$0xff]  ;;  %v6996_v10 = vpack.c.bf16 %v786_v2, %v783_v62  ;;  %v789_v13 = vld [vmem:[#allocation12 + $0x30] sm:$0xff] }
  0x87   :  { %570 = vmatmul.mubr.f32.gmra.mrb[4].mxu0 %v6907_v1  ;;  %5244 = vmatpush3.bf16.msra.mxu1 %v5241_v58  ;;  %v784_v58 = vld [vmem:[#allocation12 + $0x8] sm:$0xff]  ;;  %v6999_v16 = vpack.c.bf16 %v793_v9, %v790_v7  ;;  %v442_v17 = vld [vmem:[#allocation11 + $0x70] sm:$0xff]  ;;  %v7004_v20 = vld [vmem:[%s8120_s1] sm:$0xff] }
  0x88   :  { %5340 = vmatpush1.bf16.msra.mxu0 %v6911_v4  ;;  %268 = vmatprep.mubr.f32.mxu1 %v8134_v0  ;;  %v6991_v6 = vpack.c.bf16 %v787_v59, %v784_v58  ;;  %v445_v19 = vld [vmem:[#allocation11 + $0x88] sm:$0xff]  ;;  %v799_v23 = vld [vmem:[#allocation12 + $0x80] sm:$0xff]  ;;  %v798_v29 = vld [vmem:[#allocation12 + $0x78] sm:$0xff]  ;;  %vm1199_vm0 = vcmp.gt.f32.partialorder %v7004_v20, 0.5 }
  0x89   :  { %575 = vmatprep.mubr.f32.mxu0 %v8134_v0  ;;  %5246 = vmatprep.subr.bf16.mxu1 %v5245_v5  ;;  %v796_v22 = vld [vmem:[#allocation12 + $0x68] sm:$0xff]  ;;  %v5305_v26 = vpack.c.bf16 %v445_v19, %v442_v17  ;;  %v795_v27 = vld [vmem:[#allocation12 + $0x60] sm:$0xff]  ;;  %v451_v33 = vld [vmem:[#allocation11 + $0xb8] sm:$0xff]  ;;  %v7026_v41 = vsel %vm1199_vm0, 1, %v8133_v40 }
  0x8a   :  { %269 = vmatmul.mubr.f32.gmra.mrb[6].mxu1 %v6922_v11  ;;  %5342 = vmatprep.subr.bf16.mxu0 %v6916_v8  ;;  %8216 = vst [vmem:[#allocation36_spill] sm:$0xff] %v6991_v6  ;;  %v7014_v30 = vpack.c.bf16 %v799_v23, %v796_v22  ;;  %v448_v32 = vld [vmem:[#allocation11 + $0xa0] sm:$0xff]  ;;  %v802_v36 = vld [vmem:[#allocation12 + $0x98] sm:$0xff]  ;;  %v805_v37 = vld [vmem:[#allocation12 + $0xb0] sm:$0xff]  ;;  %v7029_v43 = vpack.c.bf16 %v798_v29, %v795_v27 }
  0x8b   :  { %576 = vmatmul.mubr.f32.gmra.mrb[6].mxu0 %v6922_v11  ;;  %5248 = vmatpush3.bf16.msra.mxu1 %v5245_v5  ;;  %v439_v5 = vld [vmem:[#allocation11 + $0x58] sm:$0xff]  ;;  %v5309_v45 = vpack.c.bf16 %v451_v33, %v448_v32  ;;  %v804_v49 = vld [vmem:[#allocation12 + $0xa8] sm:$0xff]  ;;  %v7033_v50 = vpack.c.bf16 %v805_v37, %v802_v36  ;;  %v454_v53 = vld [vmem:[#allocation11 + $0xd0] sm:$0xff] }
  0x8c   :  { %5344 = vmatpush1.bf16.msra.mxu0 %v6926_v14  ;;  %274 = vmatprep.mubr.f32.mxu1 %v8134_v0  ;;  %v5301_v12 = vpack.c.bf16 %v439_v5, %v436_v3  ;;  %v457_v55 = vld [vmem:[#allocation11 + $0xe8] sm:$0xff]  ;;  %v7039_v58 = vld [vmem:[%s8120_s1 + $0x10] sm:$0xff]  ;;  %v811_v62 = vld [vmem:[#allocation12 + $0xe0] sm:$0xff] }
  0x8d   :  { %581 = vmatprep.mubr.f32.mxu0 %v8134_v0  ;;  %5250 = vmatprep.subr.bf16.mxu1 %v5249_v15  ;;  %v808_v59 = vld [vmem:[#allocation12 + $0xc8] sm:$0xff]  ;;  %v5313_v3 = vpack.c.bf16 %v457_v55, %v454_v53  ;;  %v807_v5 = vld [vmem:[#allocation12 + $0xc0] sm:$0xff]  ;;  %v810_v7 = vld [vmem:[#allocation12 + $0xd8] sm:$0xff]  ;;  %vm1930_vm2 = vcmp.gt.f32.partialorder %v7039_v58, 0.5 }
  0x8e   :  { %275 = vmatmul.mubr.f32.gmra.mrb[8].mxu1 %v6937_v21  ;;  %5346 = vmatprep.subr.bf16.mxu0 %v6931_v18  ;;  %v7052_v9 = vpack.c.bf16 %v811_v62, %v808_v59  ;;  %v814_v17 = vld [vmem:[#allocation12 + $0xf8] sm:$0xff]  ;;  %v817_v19 = vld [vmem:[#allocation12 + $0x110] sm:$0xff]  ;;  %v7064_v22 = vsel %vm1930_vm2, 1, %v8133_v40  ;;  %v7067_v23 = vpack.c.bf16 %v810_v7, %v807_v5  ;;  %v816_v29 = vld [vmem:[#allocation12 + $0x108] sm:$0xff] }
  0x8f   :  { %582 = vmatmul.mubr.f32.gmra.mrb[8].mxu0 %v6937_v21  ;;  %5252 = vmatpush3.bf16.msra.mxu1 %v5249_v15  ;;  %v792_v15 = vld [vmem:[#allocation12 + $0x48] sm:$0xff]  ;;  %v813_v27 = vld [vmem:[#allocation12 + $0xf0] sm:$0xff]  ;;  %v7071_v32 = vpack.c.bf16 %v817_v19, %v814_v17  ;;  %v819_v55 = vld [vmem:[#allocation12 + $0x120] sm:$0xff] }
  0x90   :  { %5348 = vmatpush1.bf16.msra.mxu0 %v6941_v24  ;;  %280 = vmatprep.mubr.f32.mxu1 %v8134_v0  ;;  %v466_v33 = vld [vmem:[#allocation11 + $0x130] sm:$0xff]  ;;  %v469_v36 = vld [vmem:[#allocation11 + $0x148] sm:$0xff]  ;;  %v822_v59 = vld [vmem:[#allocation12 + $0x138] sm:$0xff] }
  0x91   :  { %587 = vmatprep.mubr.f32.mxu0 %v8134_v0  ;;  %5254 = vmatprep.subr.bf16.mxu1 %v5253_v25  ;;  %v820_v37 = vld [vmem:[#allocation12 + $0x128] sm:$0xff]  ;;  %v5321_v53 = vpack.c.bf16 %v469_v36, %v466_v33  ;;  %v472_v5 = vld [vmem:[#allocation11 + $0x160] sm:$0xff]  ;;  %v475_v7 = vld [vmem:[#allocation11 + $0x178] sm:$0xff]  ;;  %v7099_v19 = vpack.c.bf16 %v822_v59, %v819_v55 }
  0x92   :  { %281 = vmatmul.mubr.f32.gmra.mrb[10].mxu1 %v6952_v31  ;;  %5350 = vmatprep.subr.bf16.mxu0 %v6946_v28  ;;  %v825_v33 = vld [vmem:[#allocation12 + $0x150] sm:$0xff]  ;;  %v828_v36 = vld [vmem:[#allocation12 + $0x168] sm:$0xff] }
  0x93   :  { %588 = vmatmul.mubr.f32.gmra.mrb[10].mxu0 %v6952_v31  ;;  %5256 = vmatpush3.bf16.msra.mxu1 %v5253_v25  ;;  %v7010_v25 = vpack.c.bf16 %v792_v15, %v789_v13  ;;  %v463_v13 = vld [vmem:[#allocation11 + $0x118] sm:$0xff]  ;;  %v737_v55 = vld [vmem:[#allocation9 + $0x10] sm:$0xff]  ;;  %v740_v59 = vld [vmem:[#allocation9 + $0x28] sm:$0xff] }
  0x94   :  { %5352 = vmatpush1.bf16.msra.mxu0 %v6956_v34  ;;  %286 = vmatprep.mubr.f32.mxu1 %v8134_v0  ;;  %v7057_v15 = vld [vmem:[%s8120_s1 + $0x18] sm:$0xff] }
  0x95   :  { %593 = vmatprep.mubr.f32.mxu0 %v8134_v0  ;;  %5258 = vmatprep.subr.bf16.mxu1 %v5257_v35  ;;  %vm2296_vm3 = vcmp.gt.f32.partialorder %v7057_v15, 0.5 }
  0x96   :  { %287 = vmatmul.mubr.f32.gmra.mrb[12].mxu1 %v6967_v42  ;;  %5354 = vmatprep.subr.bf16.mxu0 %v6961_v38 }
  0x97   :  { %594 = vmatmul.mubr.f32.gmra.mrb[12].mxu0 %v6967_v42  ;;  %5260 = vmatpush3.bf16.msra.mxu1 %v5257_v35  ;;  %v7020_v35 = vld [vmem:[%s8120_s1 + $0x38] sm:$0xff] }
  0x98   :  { %5356 = vmatpush1.bf16.msra.mxu0 %v6971_v46  ;;  %292 = vmatprep.mubr.f32.mxu1 %v8134_v0  ;;  %vm1206_vm1 = vcmp.gt.f32.partialorder %v7020_v35, 0.5 }
  0x99   :  { %599 = vmatprep.mubr.f32.mxu0 %v8134_v0  ;;  %5262 = vmatprep.subr.bf16.mxu1 %v5261_v48 }
  0x9a   :  { %293 = vmatmul.mubr.f32.gmra.mrb[14].mxu1 %v6982_v56  ;;  %5358 = vmatprep.subr.bf16.mxu0 %v6976_v52 }
  0x9b   :  { %600 = vmatmul.mubr.f32.gmra.mrb[14].mxu0 %v6982_v56  ;;  %5264 = vmatpush3.bf16.msra.mxu1 %v5261_v48  ;;  %v801_v48 = vld [vmem:[#allocation12 + $0x90] sm:$0xff] }
  0x9c   :  { %5360 = vmatpush1.bf16.msra.mxu0 %v6986_v60  ;;  %4585 = vmatprep.mubr.f32.mxu1 %v6880_v44  ;;  %v7048_v2 = vpack.c.bf16 %v804_v49, %v801_v48  ;;  %v7080_v48 = vsel %vm2296_vm3, 1, %v8133_v40  ;;  %v7083_v49 = vpack.c.bf16 %v816_v29, %v813_v27  ;;  %v5325_v27 = vpack.c.bf16 %v475_v7, %v472_v5 }
  0x9d   :  { %916 = vmatprep.mubr.f32.mxu0 %v8134_v0  ;;  %5298 = vmatprep.subr.bf16.mxu1 %v5297_v63  ;;  %v7120_v5 = vpack.c.bf16 %v740_v59, %v737_v55  ;;  %v8154_v7 = vmov 0.0|0.0   ;;  %v755_v55 = vld [vmem:[#allocation9 + $0xa0] sm:$0xff]  ;;  %v758_v59 = vld [vmem:[#allocation9 + $0xb8] sm:$0xff] }
  0x9e   :  { %4586 = vmatmul.mubr.f32.vlgmr.msra.gmra.mrb[16].mxu1 %v6892_v54  ;;  %5386 = vmatprep.subr.bf16.mxu0 %v6991_v6 }
  0x9f   :  { %917 = vmatmul.mubr.f32.vlgmr.msra.gmra.mrb[16].mxu0 %v8134_v0  ;;  %5300 = vmatpush3.bf16.msra.mxu1 %v5297_v63  ;;  %v7045_v63 = vsel %vm1206_vm1, 1, %v8133_v40  ;;  %8218 = vst [vmem:[#allocation38_spill] sm:$0xff] %v7120_v5 }
  0xa0   :  { %5388 = vmatpush1.bf16.msra.mxu0 %v6996_v10  ;;  %5302 = vmatprep.subr.bf16.mxu1 %v5301_v12 }
  0xa1   :  { %5390 = vmatprep.subr.bf16.mxu0 %v6999_v16  ;;  %4588 = vmatprep.mubr.f32.mxu1 %v6907_v1 }
  0xa2   :  { %4589 = vmatmul.mubr.f32.gmra.mrb[18].mxu1 %v6922_v11  ;;  %1073 = vmatprep.mubr.f32.mxu0 %v8134_v0 }
  0xa3   :  { %5304 = vmatpush3.bf16.msra.mxu1 %v5301_v12  ;;  %4591 = vmatprep.mubr.f32.mxu1 %v6937_v21  ;;  %v460_v12 = vld [vmem:[#allocation11 + $0x100] sm:$0xff] }
  0xa4   :  { %5392 = vmatpush1.bf16.msra.mxu0 %v7010_v25  ;;  %5306 = vmatprep.subr.bf16.mxu1 %v5305_v26 }
  0xa5   :  { %5394 = vmatprep.subr.bf16.mxu0 %v7014_v30  ;;  %6367 = vset.pattern.permute.xlu0 %v8133_v40 }
  0xa6   :  { %4592 = vmatmul.mubr.f32.gmra.mrb[20].mxu1 %v6952_v31  ;;  %1202 = vperm.xlu0 %6367, %v7026_v41  }
  0xa7   :  { %5308 = vmatpush3.bf16.msra.mxu1 %v5305_v26  ;;  %4594 = vmatprep.mubr.f32.mxu1 %v6967_v42  ;;  %v5317_v26 = vpack.c.bf16 %v463_v13, %v460_v12  ;;  %v826_v12 = vld [vmem:[#allocation12 + $0x158] sm:$0xff]  ;;  %v829_v13 = vld [vmem:[#allocation12 + $0x170] sm:$0xff] }
  0xa8   :  { %5396 = vmatpush1.bf16.msra.mxu0 %v7029_v43  ;;  %5310 = vmatprep.subr.bf16.mxu1 %v5309_v45  ;;  %v7103_v29 = vpack.c.bf16 %v829_v13, %v826_v12  ;;  %v743_v12 = vld [vmem:[#allocation9 + $0x40] sm:$0xff]  ;;  %v746_v13 = vld [vmem:[#allocation9 + $0x58] sm:$0xff] }
  0xa9   :  { %5398 = vmatprep.subr.bf16.mxu0 %v7033_v50  ;;  %6368 = vset.pattern.permute.xlu1 %v8133_v40 }
  0xaa   :  { %4595 = vmatmul.mubr.f32.gmra.mrb[22].mxu1 %v6982_v56  ;;  %1209 = vperm.xlu0 %6367, %v7045_v63  }
  0xab   :  { %5312 = vmatpush3.bf16.msra.mxu1 %v5309_v45  ;;  %4629 = vmatprep.mubr.f32.mxu1 %v6880_v44  ;;  %v7076_v44 = vld [vmem:[%s8120_s1 + $0x20] sm:$0xff] }
  0xac   :  { %5400 = vmatpush1.bf16.msra.mxu0 %v7048_v2  ;;  %5314 = vmatprep.subr.bf16.mxu1 %v5313_v3  ;;  %v823_v45 = vld [vmem:[#allocation12 + $0x140] sm:$0xff]  ;;  %vm2660_vm4 = vcmp.gt.f32.partialorder %v7076_v44, 0.5 }
  0xad   :  { %5402 = vmatprep.subr.bf16.mxu0 %v7052_v9  ;;  %v7087_v62 = vpack.c.bf16 %v823_v45, %v820_v37  ;;  %v7096_v17 = vsel %vm2660_vm4, 1, %v8133_v40  ;;  %v7115_v45 = vpack.c.bf16 %v828_v36, %v825_v33  ;;  %v749_v33 = vld [vmem:[#allocation9 + $0x70] sm:$0xff]  ;;  %v752_v36 = vld [vmem:[#allocation9 + $0x88] sm:$0xff] }
  0xae   :  { %1933 = vperm.xlu0 %6367, %v7064_v22  }
  0xaf   :  { %5316 = vmatpush3.bf16.msra.mxu1 %v5313_v3  ;;  %v7092_v3 = vld [vmem:[%s8120_s1 + $0x28] sm:$0xff]  ;;  %8217 = vst [vmem:[#allocation37_spill] sm:$0xff] %v7115_v45 }
  0xb0   :  { %5404 = vmatpush1.bf16.msra.mxu0 %v7067_v23  ;;  %5318 = vmatprep.subr.bf16.mxu1 %v5317_v26  ;;  %vm3024_vm5 = vcmp.gt.f32.partialorder %v7092_v3, 0.5 }
  0xb1   :  { %5406 = vmatprep.subr.bf16.mxu0 %v7071_v32  ;;  %v7112_v37 = vsel %vm3024_vm5, 1, %v8133_v40 }
  0xb2   :  { %2299 = vperm.xlu0 %6367, %v7080_v48  }
  0xb3   :  { %5320 = vmatpush3.bf16.msra.mxu1 %v5317_v26  ;;  %v7108_v26 = vld [vmem:[%s8120_s1 + $0x30] sm:$0xff] }
  0xb4   :  { %5408 = vmatpush1.bf16.msra.mxu0 %v7083_v49  ;;  %5322 = vmatprep.subr.bf16.mxu1 %v5321_v53  ;;  %vm3388_vm6 = vcmp.gt.f32.partialorder %v7108_v26, 0.5 }
  0xb5   :  { %5410 = vmatprep.subr.bf16.mxu0 %v7087_v62 }
  0xb6   :  { %2663 = vperm.xlu0 %6367, %v7096_v17  }
  0xb7   :  { %5324 = vmatpush3.bf16.msra.mxu1 %v5321_v53  ;;  %v7123_v53 = vsel %vm3388_vm6, 1, %v8133_v40  ;;  %v803_v40 = vld [vmem:[#allocation12 + $0xa0] sm:$0xff] }
  0xb8   :  { %5412 = vmatpush1.bf16.msra.mxu0 %v7099_v19  ;;  %5326 = vmatprep.subr.bf16.mxu1 %v5325_v27 }
  0xb9   :  { %5414 = vmatprep.subr.bf16.mxu0 %v7103_v29 }
  0xba   :  { %3027 = vperm.xlu0 %6367, %v7112_v37  }
  0xbb   :  { %5328 = vmatpush3.bf16.msra.mxu1 %v5325_v27  ;;  %v7132_v27 = vpack.c.bf16 %v746_v13, %v743_v12  ;;  %v770_v12 = vld [vmem:[#allocation9 + $0x118] sm:$0xff]  ;;  %v773_v13 = vld [vmem:[#allocation9 + $0x130] sm:$0xff] }
  0xbc   :  { %5416 = vmatpush1.bf16.msra.mxu0 %v7115_v45  ;;  %5361 = vmatprep.subr.bf16.mxu1 %v8154_v7 }
  0xbd   :  { %5442 = vmatprep.subr.bf16.mxu0 %v6875_v39  ;;  %8219 = vst [vmem:[#allocation39_spill] sm:$0xff] %v7132_v27 }
  0xbe   :  { %4630 = vmatmul.mubr.f32.vlgmr.msra.gmra.mrb[24].mxu1 %v6892_v54  ;;  %3391 = vperm.xlu0 %6367, %v7123_v53   ;;  %v7141_v54 = vpack.c.bf16 %v752_v36, %v749_v33  ;;  %v776_v33 = vld [vmem:[#allocation9 + $0x148] sm:$0xff] }
  0xbf   :  { %5363 = vmatpush3.bf16.msra.mxu1 %v7120_v5  ;;  %1074 = vmatmul.mubr.f32.vlgmr.msra.gmra.mrb[14].mxu0 %v8134_v0  ;;  %v7181_v36 = vpack.c.bf16 %v776_v33, %v773_v13  ;;  %v791_v13 = vld [vmem:[#allocation12 + $0x40] sm:$0xff]  ;;  %v794_v33 = vld [vmem:[#allocation12 + $0x58] sm:$0xff] }
  0xc0   :  { %5364 = vmatprep.subr.bf16.mxu1 %v8154_v7  ;;  %4632 = vmatprep.mubr.f32.mxu1 %v6907_v1  ;;  %8220 = vst [vmem:[#allocation40_spill] sm:$0xff] %v7141_v54  ;;  %v7150_v1 = vpack.c.bf16 %v758_v59, %v755_v55  ;;  %v779_v55 = vld [vmem:[#allocation9 + $0x160] sm:$0xff]  ;;  %v782_v59 = vld [vmem:[#allocation9 + $0x178] sm:$0xff] }
  0xc1   :  { %5444 = vmatpush1.bf16.msra.mxu0 %v6882_v47  ;;  %1296 = vmatprep.mubr.f32.mxu0 %v8134_v0  ;;  %8224 = vst [vmem:[#allocation44_spill] sm:$0xff] %v7181_v36 }
  0xc2   :  { %4633 = vmatmul.mubr.f32.gmra.mrb[26].mxu1 %v6922_v11  ;;  %3761 = vperm.xlu0 %6367, %v7026_v41   ;;  %8221 = vst [vmem:[#allocation41_spill] sm:$0xff] %v7150_v1  ;;  %v7156_v11 = vld [vmem:[%s8120_s1 + $0x8] sm:$0xff] }
  0xc3   :  { %5366 = vmatpush3.bf16.msra.mxu1 %v7132_v27  ;;  %4635 = vmatprep.mubr.f32.mxu1 %v6937_v21  ;;  %v761_v21 = vld [vmem:[#allocation9 + $0xd0] sm:$0xff]  ;;  %v764_v41 = vld [vmem:[#allocation9 + $0xe8] sm:$0xff]  ;;  %vm1564_vm8 = vcmp.gt.f32.partialorder %v7156_v11, 0.5 }
  0xc4   :  { %5367 = vmatprep.subr.bf16.mxu1 %v8154_v7  ;;  %5446 = vmatprep.subr.bf16.mxu0 %v6886_v51 }
  0xc5   :  { %5448 = vmatpush1.bf16.msra.mxu0 %v6896_v57 }
  0xc6   :  { %4636 = vmatmul.mubr.f32.gmra.mrb[28].mxu1 %v6952_v31  ;;  %1215 = vperm.xlu0 %6367, %v7004_v20   ;;  %v7164_v31 = vpack.c.bf16 %v764_v41, %v761_v21  ;;  %v7188_v21 = vpack.c.bf16 %v782_v59, %v779_v55  ;;  %v785_v41 = vld [vmem:[#allocation12 + $0x10] sm:$0xff]  ;;  %v7202_v55 = vpack.c.bf16 %v794_v33, %v791_v13  ;;  %v806_v13 = vld [vmem:[#allocation12 + $0xb8] sm:$0xff] }
  0xc7   :  { %5369 = vmatpush3.bf16.msra.mxu1 %v7141_v54  ;;  %4638 = vmatprep.mubr.f32.mxu1 %v6967_v42  ;;  %v767_v42 = vld [vmem:[#allocation9 + $0x100] sm:$0xff]  ;;  %v797_v59 = vld [vmem:[#allocation12 + $0x70] sm:$0xff]  ;;  %v7214_v33 = vpack.c.bf16 %v806_v13, %v803_v40  ;;  %v824_v13 = vld [vmem:[#allocation12 + $0x148] sm:$0xff] }
  0xc8   :  { %5370 = vmatprep.subr.bf16.mxu1 %v8154_v7  ;;  %5450 = vmatprep.subr.bf16.mxu0 %v6901_v61  ;;  %8222 = vst [vmem:[#allocation42_spill] sm:$0xff] %v7164_v31  ;;  %8225 = vst [vmem:[#allocation45_spill] sm:$0xff] %v7188_v21  ;;  %v821_v40 = vld [vmem:[#allocation12 + $0x130] sm:$0xff] }
  0xc9   :  { %5452 = vmatpush1.bf16.msra.mxu0 %v6911_v4 }
  0xca   :  { %4639 = vmatmul.mubr.f32.gmra.mrb[30].mxu1 %v6982_v56  ;;  %1580 = vperm.xlu0 %6367, %v7156_v11   ;;  %v7174_v56 = vpack.c.bf16 %v770_v12, %v767_v42  ;;  %v788_v42 = vld [vmem:[#allocation12 + $0x28] sm:$0xff] }
  0xcb   :  { %5372 = vmatpush3.bf16.msra.mxu1 %v7150_v1  ;;  %4673 = vmatprep.mubr.msk.f32.mxu1 %vm6715_vm7, %v8134_v0  ;;  %v7195_v12 = vpack.c.bf16 %v788_v42, %v785_v41  ;;  %v800_v41 = vld [vmem:[#allocation12 + $0x88] sm:$0xff] }
  0xcc   :  { %5373 = vmatprep.subr.bf16.mxu1 %v8154_v7  ;;  %5454 = vmatprep.subr.bf16.mxu0 %v6916_v8  ;;  %8223 = vst [vmem:[#allocation43_spill] sm:$0xff] %v7174_v56  ;;  %v7210_v42 = vpack.c.bf16 %v800_v41, %v797_v59  ;;  %v815_v59 = vld [vmem:[#allocation12 + $0x100] sm:$0xff]  ;;  %v818_v41 = vld [vmem:[#allocation12 + $0x118] sm:$0xff] }
  0xcd   :  { %5456 = vmatpush1.bf16.msra.mxu0 %v6926_v14 }
  0xce   :  { %1946 = vperm.xlu0 %6367, %v7039_v58   ;;  %5458 = vmatprep.subr.bf16.mxu0 %v6931_v18 }
  0xcf   :  { %5375 = vmatpush3.bf16.msra.mxu1 %v7164_v31 }
  0xd0   :  { %5376 = vmatprep.subr.bf16.mxu1 %v8154_v7 }
  0xd1   :  { %5460 = vmatpush1.bf16.msra.mxu0 %v6941_v24 }
  0xd2   :  { %2312 = vperm.xlu0 %6367, %v7057_v15   ;;  %5462 = vmatprep.subr.bf16.mxu0 %v6946_v28 }
  0xd3   :  { %5378 = vmatpush3.bf16.msra.mxu1 %v7174_v56 }
  0xd4   :  { %5379 = vmatprep.subr.bf16.mxu1 %v8154_v7 }
  0xd5   :  { %5464 = vmatpush1.bf16.msra.mxu0 %v6956_v34 }
  0xd6   :  { %2676 = vperm.xlu0 %6367, %v7076_v44   ;;  %5466 = vmatprep.subr.bf16.mxu0 %v6961_v38 }
  0xd7   :  { %5381 = vmatpush3.bf16.msra.mxu1 %v7181_v36 }
  0xd8   :  { %5382 = vmatprep.subr.bf16.mxu1 %v8154_v7 }
  0xd9   :  { %5468 = vmatpush1.bf16.msra.mxu0 %v6971_v46  ;;  %v7226_v46 = vpack.c.bf16 %v824_v13, %v821_v40 }
  0xda   :  { %3040 = vperm.xlu0 %6367, %v7092_v3   ;;  %5470 = vmatprep.subr.bf16.mxu0 %v6976_v52  ;;  %v7222_v52 = vpack.c.bf16 %v818_v41, %v815_v59  ;;  %v8227_v59 = vmov 0.0   ;;  %v171_v41 = vlaneseq }
  0xdb   :  { %5384 = vmatpush3.bf16.msra.mxu1 %v7188_v21 }
  0xdc   :  { %5417 = vmatprep.subr.bf16.mxu1 %v8154_v7  ;;  %v172_v40 = vshrl.u32 %v171_v41, 7 }
  0xdd   :  { %5472 = vmatpush1.bf16.msra.mxu0 %v6986_v60  ;;  %v812_v60 = vld [vmem:[#allocation12 + $0xe8] sm:$0xff] }
  0xde   :  { %4674 = vmatmul.mubr.f32.vlgmr.msra.gmra.mrb[32].mxu1 %v8134_v0  ;;  %3404 = vperm.xlu0 %6367, %v7108_v26   ;;  %v7254_v13 = vsub.s32 0, %v172_v40 }
  0xdf   :  { %5419 = vmatpush3.bf16.msra.mxu1 %v7195_v12  ;;  %4708 = vmatprep.mubr.msk.f32.mxu1 %vm6715_vm7, %v8134_v0  ;;  %v809_v0 = vld [vmem:[#allocation12 + $0xd0] sm:$0xff] }
  0xe0   :  { %5420 = vmatprep.subr.bf16.mxu1 %v8154_v7  ;;  %5498 = vmatprep.subr.bf16.mxu0 %v6991_v6  ;;  %v7218_v6 = vpack.c.bf16 %v812_v60, %v809_v0  ;;  %v827_v0 = vld [vmem:[#allocation12 + $0x160] sm:$0xff]  ;;  %v830_v60 = vld [vmem:[#allocation12 + $0x178] sm:$0xff] }
  0xe1   :  { %v7230_v38 = vpack.c.bf16 %v830_v60, %v827_v0  ;;  %v169_v0 = vld [vmem:[%s8123_s4] sm:$0x7] }
  0xe2   :  { %1222 = vperm.xlu0 %6367, %v7020_v35  }
  0xe3   :  { %5422 = vmatpush3.bf16.msra.mxu1 %v7202_v55  ;;  %8226 = vst [vmem:[#allocation46_spill] sm:$0xff] %v7230_v38 }
  0xe4   :  { %5423 = vmatprep.subr.bf16.mxu1 %v8154_v7 }
  0xe7   :  { %5425 = vmatpush3.bf16.msra.mxu1 %v7210_v42 }
  0xe8   :  { %5426 = vmatprep.subr.bf16.mxu1 %v8154_v7 }
  0xeb   :  { %5428 = vmatpush3.bf16.msra.mxu1 %v7214_v33 }
  0xec   :  { %5429 = vmatprep.subr.bf16.mxu1 %v8154_v7 }
  0xef   :  { %5431 = vmatpush3.bf16.msra.mxu1 %v7218_v6 }
  0xf0   :  { %5432 = vmatprep.subr.bf16.mxu1 %v8154_v7 }
  0xf3   :  { %5434 = vmatpush3.bf16.msra.mxu1 %v7222_v52 }
  0xf4   :  { %5435 = vmatprep.subr.bf16.mxu1 %v8154_v7 }
  0xf7   :  { %5437 = vmatpush3.bf16.msra.mxu1 %v7226_v46 }
  0xf8   :  { %5438 = vmatprep.subr.bf16.mxu1 %v8154_v7 }
  0xfb   :  { %5440 = vmatpush3.bf16.msra.mxu1 %v7230_v38 }
  0xfc   :  { %5473 = vmatprep.subr.bf16.mxu1 %v8154_v7 }
  0xfe   :  { %4709 = vmatmul.mubr.f32.vlgmr.msra.gmra.mrb[34].mxu1 %v8227_v59 }
  0xff   :  { %5475 = vmatpush3.bf16.msra.mxu1 %v7120_v5  ;;  %4743 = vmatprep.mubr.msk.f32.mxu1 %vm6715_vm7, %v8227_v59 }
 0x100   :  { %5476 = vmatprep.subr.bf16.mxu1 %v8154_v7 }
 0x103   :  { %5478 = vmatpush3.bf16.msra.mxu1 %v7132_v27 }
 0x104   :  { %5479 = vmatprep.subr.bf16.mxu1 %v8154_v7 }
 0x107   :  { %5481 = vmatpush3.bf16.msra.mxu1 %v7141_v54 }
 0x108   :  { %5482 = vmatprep.subr.bf16.mxu1 %v8154_v7 }
 0x10b   :  { %5484 = vmatpush3.bf16.msra.mxu1 %v7150_v1 }
 0x10c   :  { %5485 = vmatprep.subr.bf16.mxu1 %v8154_v7 }
 0x10f   :  { %5487 = vmatpush3.bf16.msra.mxu1 %v7164_v31 }
 0x110   :  { %5488 = vmatprep.subr.bf16.mxu1 %v8154_v7 }
 0x113   :  { %5490 = vmatpush3.bf16.msra.mxu1 %v7174_v56  ;;  %v7259_v56 = vsub.s32 1, %v172_v40 }
 0x114   :  { %5491 = vmatprep.subr.bf16.mxu1 %v8154_v7 }
 0x117   :  { %5493 = vmatpush3.bf16.msra.mxu1 %v7181_v36  ;;  %v7264_v36 = vld [vmem:[%s8124_s5] sm:$0x7] }
 0x118   :  { %5494 = vmatprep.subr.bf16.mxu1 %v8154_v7  ;;  %v840_v24 = vrot.slane %v7264_v36, %v7254_v13  ;;  %v844_v1 = vrot.slane %v7264_v36, %v7259_v56 }
 0x11b   :  { %5496 = vmatpush3.bf16.msra.mxu1 %v7188_v21  ;;  %v174_v21 = vrot.slane %v169_v0, %v7254_v13 }
 0x11c   :  { %5529 = vmatprep.subr.bf16.mxu1 %v8154_v7  ;;  %v178_v7 = vrot.slane %v169_v0, %v7259_v56 }
 0x151   :  { %v252_v60 = vpop.f32.mrb[0].mxu1 }
 0x152   :  { %v254_v34 = vpop.f32.mrb[1].mxu1 }
 0x155   :  { %v258_v41 = vpop.f32.mrb[2].mxu1 }
 0x156   :  { %v259_v28 = vadd.f32 %v258_v41, %v174_v21  ;;  %v260_v31 = vpop.f32.mrb[3].mxu1 }
 0x157   :  { %v261_v18 = vadd.f32 %v260_v31, %v178_v7 }
 0x158   :  { %v7272_v14 = vadd.f32 %v840_v24, %v259_v28 }
 0x159   :  { %v264_v8 = vpop.f32.mrb[4].mxu1  ;;  %v7274_v54 = vadd.f32 %v844_v1, %v261_v18 }
 0x15a   :  { %8228 = vst [vmem:[#allocation47_spill] sm:$0xff] %v7272_v14  ;;  %v265_v4 = vadd.f32 %v264_v8, %v174_v21  ;;  %v266_v61 = vpop.f32.mrb[5].mxu1 }
 0x15b   :  { %8229 = vst [vmem:[#allocation48_spill] sm:$0xff] %v7274_v54  ;;  %v267_v27 = vadd.f32 %v266_v61, %v178_v7 }
 0x15c   :  { %v7276_v57 = vadd.f32 %v840_v24, %v265_v4 }
 0x15d   :  { %v270_v51 = vpop.f32.mrb[6].mxu1  ;;  %v7278_v41 = vadd.f32 %v844_v1, %v267_v27 }
 0x15e   :  { %8230 = vst [vmem:[#allocation49_spill] sm:$0xff] %v7276_v57  ;;  %v271_v5 = vadd.f32 %v270_v51, %v174_v21  ;;  %v272_v47 = vpop.f32.mrb[7].mxu1  ;;  %v8236_v51 = vmov 0  }
 0x15f   :  { %8231 = vst [vmem:[#allocation50_spill] sm:$0xff] %v7278_v41  ;;  %v273_v39 = vadd.f32 %v272_v47, %v178_v7  ;;  %v1565_v47 = vsel %vm1564_vm8, 1, %v8236_v51  ;;  %v255_v51 = vadd.f32 %v254_v34, %v178_v7 }
 0x160   :  { %v7280_v31 = vadd.f32 %v840_v24, %v271_v5  ;;  %1567 = vperm.xlu1 %6368, %v1565_v47  }
 0x161   :  { %v276_v38 = vpop.f32.mrb[8].mxu1  ;;  %v7282_v45 = vadd.f32 %v844_v1, %v273_v39  ;;  %v6261_v34 = vadd.f32 %v844_v1, %v255_v51 }
 0x162   :  { %8232 = vst [vmem:[#allocation51_spill] sm:$0xff] %v7280_v31  ;;  %v277_v28 = vadd.f32 %v276_v38, %v174_v21  ;;  %v278_v14 = vpop.f32.mrb[9].mxu1 }
 0x163   :  { %8233 = vst [vmem:[#allocation52_spill] sm:$0xff] %v7282_v45  ;;  %v279_v18 = vadd.f32 %v278_v14, %v178_v7 }
 0x164   :  { %v7284_v54 = vadd.f32 %v840_v24, %v277_v28  ;;  %v7294_v28 = vsub.s32 2, %v172_v40  ;;  %1574 = vperm.xlu1 %6368, %v7123_v53  }
 0x165   :  { %v282_v8 = vpop.f32.mrb[10].mxu1  ;;  %v7286_v61 = vadd.f32 %v844_v1, %v279_v18 }
 0x166   :  { %8234 = vst [vmem:[#allocation53_spill] sm:$0xff] %v7284_v54  ;;  %v283_v4 = vadd.f32 %v282_v8, %v174_v21  ;;  %v284_v57 = vpop.f32.mrb[11].mxu1  ;;  %v253_v8 = vadd.f32 %v252_v60, %v174_v21  ;;  %v7302_v45 = vrot.slane %v169_v0, %v7294_v28 }
 0x167   :  { %8235 = vst [vmem:[#allocation54_spill] sm:$0xff] %v7286_v61  ;;  %v285_v27 = vadd.f32 %v284_v57, %v178_v7 }
 0x168   :  { %v7290_v5 = vadd.f32 %v840_v24, %v283_v4  ;;  %1940 = vperm.xlu1 %6368, %v7112_v37  }
 0x169   :  { %v288_v31 = vpop.f32.mrb[12].mxu1  ;;  %v7292_v39 = vadd.f32 %v844_v1, %v285_v27 }
 0x16a   :  { %8237 = vst [vmem:[#allocation55_spill] sm:$0xff] %v7290_v5  ;;  %v289_v38 = vadd.f32 %v288_v31, %v174_v21  ;;  %v290_v14 = vpop.f32.mrb[13].mxu1 }
 0x16b   :  { %8238 = vst [vmem:[#allocation56_spill] sm:$0xff] %v7292_v39  ;;  %v291_v54 = vadd.f32 %v290_v14, %v178_v7  ;;  %v6258_v39 = vadd.f32 %v840_v24, %v253_v8 }
 0x16c   :  { %v7296_v18 = vadd.f32 %v840_v24, %v289_v38  ;;  %2306 = vperm.xlu1 %6368, %v7096_v17  }
 0x16d   :  { %v294_v61 = vpop.f32.mrb[14].mxu1  ;;  %v7299_v57 = vadd.f32 %v844_v1, %v291_v54 }
 0x16e   :  { %8239 = vst [vmem:[#allocation57_spill] sm:$0xff] %v7296_v18  ;;  %v295_v4 = vadd.f32 %v294_v61, %v174_v21  ;;  %v296_v5 = vpop.f32.mrb[15].mxu1  ;;  %v8281_v18 = vld [vmem:[#allocation34_spill] sm:$0xff] }
 0x16f   :  { %8240 = vst [vmem:[#allocation58_spill] sm:$0xff] %v7299_v57  ;;  %v297_v27 = vadd.f32 %v296_v5, %v178_v7  ;;  %v8280_v57 = vld [vmem:[#allocation44_spill] sm:$0xff] }
 0x170   :  { %v7304_v31 = vadd.f32 %v840_v24, %v295_v4  ;;  %2670 = vperm.xlu1 %6368, %v7080_v48   ;;  %v476_v48 = vld [vmem:[%s8127_s8] sm:$0x7] }
 0x171   :  { %v4587_v40 = vpop.f32.mrb[16].mxu1  ;;  %v7307_v38 = vadd.f32 %v844_v1, %v297_v27 }
 0x172   :  { %8241 = vst [vmem:[#allocation59_spill] sm:$0xff] %v7304_v31  ;;  %v7310_v60 = vadd.f32 %v4587_v40, %v7302_v45  ;;  %v918_v53 = vpop.f32.mrb[16].mxu0  ;;  %v7312_v54 = vpop.f32.mrb[17].mxu1 }
 0x173   :  { %8242 = vst [vmem:[#allocation60_spill] sm:$0xff] %v7307_v38  ;;  %v6259_v21 = vadd.f32 %v6258_v39, %v918_v53  ;;  %v920_v61 = vpop.f32.mrb[17].mxu0  ;;  %v485_v38 = vrot.slane %v476_v48, %v7259_v56 }
 0x174   :  { %v6262_v0 = vadd.f32 %v6261_v34, %v920_v61  ;;  %3034 = vperm.xlu1 %6368, %v7064_v22   ;;  %v7342_v22 = vrot.slane %v476_v48, %v7294_v28 }
 0x175   :  { %v4590_v14 = vpop.f32.mrb[18].mxu1  ;;  %v4126_v61 = vmul.f32 -1.442695, %v6259_v21 }
 0x176   :  { %v7316_v7 = vadd.f32 %v4590_v14, %v7302_v45  ;;  %v375_v24 = vpop.f32.mrb[19].mxu1 }
 0x177   :  { %v7319_v37 = vadd.f32 %v375_v24, %v7302_v45  ;;  %6369 = vpow2.f32 %v4126_v61 }
 0x178   :  { %8243 = vst [vmem:[#allocation61_spill] sm:$0xff] %v7316_v7  ;;  %3398 = vperm.xlu1 %6368, %v1565_v47   ;;  %v8285_v7 = vld [vmem:[#allocation47_spill] sm:$0xff] }
 0x179   :  { %8244 = vst [vmem:[#allocation62_spill] sm:$0xff] %v7319_v37  ;;  %v4593_v5 = vpop.f32.mrb[20].mxu1 }
 0x17a   :  { %v7323_v8 = vadd.f32 %v4593_v5, %v7302_v45  ;;  %v385_v1 = vpop.f32.mrb[21].mxu1 }
 0x17b   :  { %v7326_v39 = vadd.f32 %v385_v1, %v7302_v45 }
 0x17c   :  { %8245 = vst [vmem:[#allocation63_spill] sm:$0xff] %v7323_v8  ;;  %3775 = vperm.xlu1 %6368, %v7004_v20   ;;  %v8283_v8 = vld [vmem:[#allocation45_spill] sm:$0xff] }
 0x17d   :  { %8246 = vst [vmem:[#allocation64_spill] sm:$0xff] %v7326_v39  ;;  %v4596_v51 = vpop.f32.mrb[22].mxu1 }
 0x17e   :  { %v7330_v17 = vadd.f32 %v4596_v51, %v7302_v45  ;;  %v395_v4 = vpop.f32.mrb[23].mxu1 }
 0x17f   :  { %v7333_v27 = vadd.f32 %v395_v4, %v7302_v45 }
 0x180   :  { %8247 = vst [vmem:[#allocation65_spill] sm:$0xff] %v7330_v17  ;;  %3412 = vperm.xlu1 %6368, %v7156_v11  }
 0x181   :  { %8248 = vst [vmem:[#allocation66_spill] sm:$0xff] %v7333_v27  ;;  %v6370_v61 = vpop.eup %6369  ;;  %v8279_v27 = vld [vmem:[#allocation33_spill] sm:$0xff] }
 0x184   :  { %3048 = vperm.xlu1 %6368, %v7039_v58  }
 0x188   :  { %2684 = vperm.xlu1 %6368, %v7057_v15  }
 0x18c   :  { %2320 = vperm.xlu1 %6368, %v7076_v44  }
 0x190   :  { %1954 = vperm.xlu1 %6368, %v7092_v3   ;;  %v832_v3 = vld [vmem:[%s8128_s9] sm:$0x7] }
 0x191   :  { %v4631_v40 = vpop.f32.mrb[24].mxu1 }
 0x192   :  { %v7346_v53 = vadd.f32 %v4631_v40, %v7342_v22  ;;  %v672_v47 = vpop.f32.mrb[25].mxu1  ;;  %v1075_v34 = vpop.f32.mrb[14].mxu0  ;;  %v4127_v40 = vmul.f32 -1.442695, %v6262_v0 }
 0x193   :  { %v7349_v20 = vadd.f32 %v672_v47, %v7342_v22  ;;  %v1077_v11 = vpop.f32.mrb[15].mxu0 }
 0x194   :  { %8249 = vst [vmem:[#allocation67_spill] sm:$0xff] %v7346_v53  ;;  %1588 = vperm.xlu1 %6368, %v7108_v26   ;;  %6371 = vpow2.f32 %v4127_v40  ;;  %v997_v26 = vrot.slane %v832_v3, %v7254_v13 }
 0x195   :  { %8250 = vst [vmem:[#allocation68_spill] sm:$0xff] %v7349_v20  ;;  %v4634_v14 = vpop.f32.mrb[26].mxu1 }
 0x196   :  { %v7353_v58 = vadd.f32 %v4634_v14, %v7342_v22  ;;  %v682_v24 = vpop.f32.mrb[27].mxu1  ;;  %v1157_v14 = vadd.f32 1.0, %v6370_v61 }
 0x197   :  { %v7356_v5 = vadd.f32 %v682_v24, %v7342_v22  ;;  %v481_v24 = vrot.slane %v476_v48, %v7254_v13  ;;  %v1001_v13 = vrot.slane %v832_v3, %v7259_v56  ;;  %v1203_v48 = vpop.permute.xlu0 %1202 }
 0x198   :  { %8251 = vst [vmem:[#allocation69_spill] sm:$0xff] %v7353_v58  ;;  %3754 = vperm.xlu1 %6368, %v7045_v63   ;;  %6373 = vrcp.f32 %v1157_v14  ;;  %v7382_v63 = vrot.slane %v7264_v36, %v7294_v28  ;;  %v366_v14 = vadd.f32 %v7312_v54, %v7302_v45  ;;  %vm1204_vm9 = vcmp.eq.s32.totalorder %v1203_v48, 1  ;;  %v8259_v48 = vld [vmem:[#allocation20_spill] sm:$0xff] }
 0x199   :  { %8252 = vst [vmem:[#allocation70_spill] sm:$0xff] %v7356_v5  ;;  %v4637_v15 = vpop.f32.mrb[28].mxu1  ;;  %v7378_v0 = vadd.f32 %v997_v26, %v481_v24  ;;  %v7390_v26 = vadd.f32 %v1001_v13, %v485_v38  ;;  %v8256_v38 = vmov 0.0|0.0   ;;  %v8282_v5 = vld [vmem:[#allocation35_spill] sm:$0xff]  ;;  %v8284_v58 = vld [vmem:[#allocation36_spill] sm:$0xff] }
 0x19a   :  { %v7360_v1 = vadd.f32 %v4637_v15, %v7342_v22  ;;  %v692_v51 = vpop.f32.mrb[29].mxu1 }
 0x19b   :  { %v7363_v21 = vadd.f32 %v692_v51, %v7342_v22  ;;  %v6334_v51 = vadd.f32 %v7378_v0, %v1075_v34  ;;  %v6336_v34 = vadd.f32 %v7390_v26, %v1077_v11 }
 0x19c   :  { %8253 = vst [vmem:[#allocation71_spill] sm:$0xff] %v7360_v1  ;;  %3767 = vperm.xlu1 %6368, %v7020_v35  }
 0x19d   :  { %8254 = vst [vmem:[#allocation72_spill] sm:$0xff] %v7363_v21  ;;  %v7365_v4 = vpop.f32.mrb[30].mxu1  ;;  %v4128_v17 = vmul.f32 -1.442695, %v6334_v51 }
 0x19e   :  { %v702_v44 = vpop.f32.mrb[31].mxu1  ;;  %v6372_v15 = vpop.eup %6371 }
 0x19f   :  { %v7369_v47 = vadd.f32 %v702_v44, %v7342_v22  ;;  %v1164_v44 = vadd.f32 1.0, %v6372_v15 }
 0x1a1   :  { %6375 = vrcp.f32 %v1164_v44 }
 0x1a2   :  { %v6374_v35 = vpop.eup %6373  ;;  %6377 = vpow2.f32 %v4128_v17 }
 0x1ab   :  { %v6376_v15 = vpop.eup %6375 }
 0x1ac   :  { %v1170_v51 = vsub.f32 1.0, %v6376_v15  ;;  %v1172_v53 = vmul.f32 0.0, %v6376_v15  ;;  %v8257_v15 = vld [vmem:[#allocation37_spill] sm:$0xff] }
 0x1b1   :  { %v989_v40 = vpop.f32.mrb[32].mxu1 }
 0x1b2   :  { %v990_v61 = vadd.f32 %v989_v40, %v7382_v63  ;;  %v4675_v20 = vpop.f32.mrb[33].mxu1  ;;  %v6378_v40 = vpop.eup %6377 }
 0x1b3   :  { %v4129_v20 = vmul.f32 -1.442695, %v6336_v34  ;;  %v1182_v45 = vadd.f32 1.0, %v6378_v40  ;;  %v1210_v40 = vpop.permute.xlu0 %1209 }
 0x1b4   :  { %v1167_v24 = vmul.f32 %v6374_v35, %v990_v61  ;;  %vm1211_vm10 = vcmp.eq.s32.totalorder %v1210_v40, 1  ;;  %v8277_v40 = vld [vmem:[#allocation43_spill] sm:$0xff] }
 0x1b6   :  { %v1168_v36 = vadd.f32 %v1167_v24, %v366_v14  ;;  %v708_v14 = vadd.f32 %v7365_v4, %v7342_v22 }
 0x1b8   :  { %6379 = vtanh.f32 %v1168_v36 }
 0x1b9   :  { %6381 = vpow2.f32 %v4129_v20  ;;  %v8258_v20 = vld [vmem:[#allocation46_spill] sm:$0xff] }
 0x1ba   :  { %6383 = vrcp.f32 %v1182_v45  ;;  %v8261_v45 = vld [vmem:[#allocation21_spill] sm:$0xff] }
 0x1c2   :  { %v6380_v31 = vpop.eup %6379 }
 0x1c3   :  { %v1171_v56 = vmul.f32 %v6380_v31, %v1170_v51  ;;  %v6382_v31 = vpop.eup %6381 }
 0x1c4   :  { %v1189_v11 = vadd.f32 1.0, %v6382_v31  ;;  %v6384_v13 = vpop.eup %6383  ;;  %v8263_v31 = vld [vmem:[#allocation22_spill] sm:$0xff] }
 0x1c5   :  { %v1173_v54 = vadd.f32 %v1172_v53, %v1171_v56  ;;  %v7407_v53 = vrot.slane %v832_v3, %v7294_v28 }
 0x1c6   :  { %6385 = vrcp.f32 %v1189_v11  ;;  %v8264_v11 = vld [vmem:[#allocation23_spill] sm:$0xff] }
 0x1c7   :  { %4132 = vmatmul.mubr.msk.f32.vlgmr.msra.gmra.mrb[18].mxu0 %vm1204_vm9, %v1173_v54  ;;  %4744 = vmatmul.mubr.msk.f32.vlgmr.msra.gmra.mrb[36].mxu1 %vm1204_vm9, %v1173_v54  ;;  %v7393_v17 = vsel %vm1204_vm9, %v1173_v54, 0.0  ;;  %v8262_v54 = vld [vmem:[#allocation38_spill] sm:$0xff]  ;;  %vm4081_vm9 = vcmask 7168  }
 0x1c8   :  { %8255 = vst [vmem:[#allocation73_spill] sm:$0xff] %v7393_v17  ;;  %5500 = vmatpush1.bf16.msra.mxu0 %v6996_v10  ;;  %5531 = vmatpush3.bf16.msra.mxu1 %v7195_v12 }
 0x1c9   :  { %5502 = vmatprep.subr.bf16.mxu0 %v6999_v16  ;;  %5532 = vmatprep.subr.bf16.mxu1 %v8256_v38 }
 0x1ca   :  { %1437 = vmatprep.mubr.f32.mxu0 %v8227_v59  ;;  %4778 = vmatprep.mubr.msk.f32.mxu1 %vm6715_vm7, %v8227_v59 }
 0x1cc   :  { %5504 = vmatpush1.bf16.msra.mxu0 %v7010_v25  ;;  %5534 = vmatpush3.bf16.msra.mxu1 %v7202_v55 }
 0x1cd   :  { %5506 = vmatprep.subr.bf16.mxu0 %v7014_v30  ;;  %5535 = vmatprep.subr.bf16.mxu1 %v8256_v38 }
 0x1d0   :  { %5508 = vmatpush1.bf16.msra.mxu0 %v7029_v43  ;;  %5537 = vmatpush3.bf16.msra.mxu1 %v7210_v42  ;;  %v6386_v22 = vpop.eup %6385 }
 0x1d1   :  { %v1146_v44 = vpop.f32.mrb[34].mxu1  ;;  %5510 = vmatprep.subr.bf16.mxu0 %v7033_v50  ;;  %5538 = vmatprep.subr.bf16.mxu1 %v8256_v38  ;;  %v1195_v4 = vsub.f32 1.0, %v6386_v22  ;;  %v1197_v34 = vmul.f32 0.0, %v6386_v22  ;;  %v8272_v22 = vld [vmem:[#allocation28_spill] sm:$0xff] }
 0x1d2   :  { %v1147_v61 = vadd.f32 %v1146_v44, %v7407_v53  ;;  %v4710_v35 = vpop.f32.mrb[35].mxu1  ;;  %v8265_v44 = vld [vmem:[#allocation39_spill] sm:$0xff] }
 0x1d3   :  { %v8267_v35 = vld [vmem:[#allocation25_spill] sm:$0xff] }
 0x1d4   :  { %v1192_v28 = vmul.f32 %v6384_v13, %v1147_v61  ;;  %5512 = vmatpush1.bf16.msra.mxu0 %v7048_v2  ;;  %5540 = vmatpush3.bf16.msra.mxu1 %v7214_v33  ;;  %v8266_v61 = vld [vmem:[#allocation24_spill] sm:$0xff] }
 0x1d5   :  { %5514 = vmatprep.subr.bf16.mxu0 %v7052_v9  ;;  %5541 = vmatprep.subr.bf16.mxu1 %v8256_v38  ;;  %v8268_v13 = vld [vmem:[#allocation40_spill] sm:$0xff] }
 0x1d6   :  { %v1193_v3 = vadd.f32 %v1192_v28, %v708_v14  ;;  %v8269_v14 = vld [vmem:[#allocation26_spill] sm:$0xff]  ;;  %v8270_v28 = vld [vmem:[#allocation27_spill] sm:$0xff] }
 0x1d8   :  { %6387 = vtanh.f32 %v1193_v3  ;;  %5516 = vmatpush1.bf16.msra.mxu0 %v7067_v23  ;;  %5543 = vmatpush3.bf16.msra.mxu1 %v7218_v6  ;;  %v8271_v3 = vld [vmem:[#allocation41_spill] sm:$0xff] }
 0x1d9   :  { %5518 = vmatprep.subr.bf16.mxu0 %v7071_v32  ;;  %5544 = vmatprep.subr.bf16.mxu1 %v8256_v38 }
 0x1dc   :  { %5520 = vmatpush1.bf16.msra.mxu0 %v7083_v49  ;;  %5546 = vmatpush3.bf16.msra.mxu1 %v7222_v52 }
 0x1dd   :  { %5522 = vmatprep.subr.bf16.mxu0 %v7087_v62  ;;  %5547 = vmatprep.subr.bf16.mxu1 %v8256_v38 }
 0x1e0   :  { %5524 = vmatpush1.bf16.msra.mxu0 %v7099_v19  ;;  %5549 = vmatpush3.bf16.msra.mxu1 %v7226_v46 }
 0x1e1   :  { %5526 = vmatprep.subr.bf16.mxu0 %v7103_v29  ;;  %5550 = vmatprep.subr.bf16.mxu1 %v8256_v38 }
 0x1e2   :  { %v6388_v24 = vpop.eup %6387 }
 0x1e3   :  { %v1196_v36 = vmul.f32 %v6388_v24, %v1195_v4  ;;  %v8273_v4 = vld [vmem:[#allocation29_spill] sm:$0xff]  ;;  %v8274_v24 = vld [vmem:[#allocation42_spill] sm:$0xff] }
 0x1e4   :  { %5528 = vmatpush1.bf16.msra.mxu0 %v8257_v15  ;;  %5552 = vmatpush3.bf16.msra.mxu1 %v8258_v20 }
 0x1e5   :  { %v1198_v51 = vadd.f32 %v1197_v34, %v1196_v36  ;;  %5554 = vmatprep.subr.bf16.mxu0 %v8259_v48  ;;  %5585 = vmatprep.subr.bf16.mxu1 %v8256_v38  ;;  %v8275_v36 = vld [vmem:[#allocation30_spill] sm:$0xff]  ;;  %v8276_v34 = vld [vmem:[#allocation31_spill] sm:$0xff] }
 0x1e7   :  { %4134 = vmatmul.mubr.msk.f32.vlgmr.msra.gmra.mrb[12].mxu0 %vm1211_vm10, %v1198_v51  ;;  %4779 = vmatmul.mubr.msk.f32.vlgmr.msra.gmra.mrb[38].mxu1 %vm1211_vm10, %v1198_v51  ;;  %v7436_v56 = vsel %vm1211_vm10, %v1198_v51, 0.0  ;;  %v8278_v51 = vld [vmem:[#allocation32_spill] sm:$0xff] }
 0x1e8   :  { %8260 = vst [vmem:[#allocation37_spill] sm:$0xff] %v7436_v56  ;;  %5556 = vmatpush1.bf16.msra.mxu0 %v8261_v45  ;;  %5587 = vmatpush3.bf16.msra.mxu1 %v8262_v54 }
 0x1e9   :  { %5558 = vmatprep.subr.bf16.mxu0 %v8263_v31  ;;  %5588 = vmatprep.subr.bf16.mxu1 %v8256_v38 }
 0x1ea   :  { %1662 = vmatprep.mubr.f32.mxu0 %v8227_v59  ;;  %4813 = vmatprep.mubr.msk.f32.mxu1 %vm6715_vm7, %v8227_v59 }
 0x1ec   :  { %5560 = vmatpush1.bf16.msra.mxu0 %v8264_v11  ;;  %5590 = vmatpush3.bf16.msra.mxu1 %v8265_v44 }
 0x1ed   :  { %5562 = vmatprep.subr.bf16.mxu0 %v8266_v61  ;;  %5591 = vmatprep.subr.bf16.mxu1 %v8256_v38 }
 0x1f0   :  { %5564 = vmatpush1.bf16.msra.mxu0 %v8267_v35  ;;  %5593 = vmatpush3.bf16.msra.mxu1 %v8268_v13 }
 0x1f1   :  { %5566 = vmatprep.subr.bf16.mxu0 %v8269_v14  ;;  %5594 = vmatprep.subr.bf16.mxu1 %v8256_v38 }
 0x1f4   :  { %5568 = vmatpush1.bf16.msra.mxu0 %v8270_v28  ;;  %5596 = vmatpush3.bf16.msra.mxu1 %v8271_v3 }
 0x1f5   :  { %5570 = vmatprep.subr.bf16.mxu0 %v8272_v22  ;;  %5597 = vmatprep.subr.bf16.mxu1 %v8256_v38 }
 0x1f8   :  { %5572 = vmatpush1.bf16.msra.mxu0 %v8273_v4  ;;  %5599 = vmatpush3.bf16.msra.mxu1 %v8274_v24 }
 0x1f9   :  { %5574 = vmatprep.subr.bf16.mxu0 %v8275_v36  ;;  %5600 = vmatprep.subr.bf16.mxu1 %v8256_v38 }
 0x1fc   :  { %5576 = vmatpush1.bf16.msra.mxu0 %v8276_v34  ;;  %5602 = vmatpush3.bf16.msra.mxu1 %v8277_v40 }
 0x1fd   :  { %5578 = vmatprep.subr.bf16.mxu0 %v8278_v51  ;;  %5603 = vmatprep.subr.bf16.mxu1 %v8256_v38 }
 0x200   :  { %5580 = vmatpush1.bf16.msra.mxu0 %v8279_v27  ;;  %5605 = vmatpush3.bf16.msra.mxu1 %v8280_v57  ;;  %v8286_v27 = vld [vmem:[#allocation48_spill] sm:$0xff] }
 0x201   :  { %5582 = vmatprep.subr.bf16.mxu0 %v8281_v18  ;;  %5606 = vmatprep.subr.bf16.mxu1 %v8256_v38 }
 0x204   :  { %5584 = vmatpush1.bf16.msra.mxu0 %v8282_v5  ;;  %5608 = vmatpush3.bf16.msra.mxu1 %v8283_v8 }
 0x205   :  { %5610 = vmatprep.subr.bf16.mxu0 %v8284_v58  ;;  %5641 = vmatprep.subr.bf16.mxu1 %v8256_v38 }
 0x29a   :  { %v1298_v39 = vpop.f32.mrb[18].mxu0  ;;  %v1369_v21 = vpop.f32.mrb[36].mxu1 }
 0x29b   :  { %v6265_v1 = vadd.f32 %v8285_v7, %v1298_v39  ;;  %v1300_v37 = vpop.f32.mrb[19].mxu0  ;;  %v4745_v41 = vpop.f32.mrb[37].mxu1  ;;  %v1370_v58 = vadd.f32 %v1369_v21, %v7382_v63 }
 0x29c   :  { %v6268_v57 = vadd.f32 %v8286_v27, %v1300_v37 }
 0x29d   :  { %v4136_v51 = vmul.f32 -1.442695, %v6265_v1 }
 0x29e   :  { %v4137_v18 = vmul.f32 -1.442695, %v6268_v57 }
 0x29f   :  { %6389 = vpow2.f32 %v4136_v51  ;;  %v1568_v51 = vpop.permute.xlu1 %1567 }
 0x2a0   :  { %6391 = vpow2.f32 %v4137_v18  ;;  %vm1569_vm11 = vcmp.eq.s32.totalorder %v1568_v51, 1 }
 0x2a9   :  { %v6390_v40 = vpop.eup %6389 }
 0x2aa   :  { %v1522_v5 = vadd.f32 1.0, %v6390_v40  ;;  %v6392_v8 = vpop.eup %6391 }
 0x2ab   :  { %v1529_v34 = vadd.f32 1.0, %v6392_v8 }
 0x2ac   :  { %6393 = vrcp.f32 %v1522_v5 }
 0x2ad   :  { %6395 = vrcp.f32 %v1529_v34 }
 0x2b6   :  { %v6394_v36 = vpop.eup %6393 }
 0x2b7   :  { %v1532_v24 = vmul.f32 %v6394_v36, %v1370_v58  ;;  %v6396_v5 = vpop.eup %6395 }
 0x2b8   :  { %v1535_v40 = vsub.f32 1.0, %v6396_v5 }
 0x2b9   :  { %v1533_v7 = vadd.f32 %v1532_v24, %v7310_v60  ;;  %v1537_v60 = vmul.f32 %v6396_v5, %v7393_v17 }
 0x2ba   :  { %v1439_v39 = vpop.f32.mrb[12].mxu0  ;;  %v1510_v41 = vpop.f32.mrb[38].mxu1 }
 0x2bb   :  { %6397 = vtanh.f32 %v1533_v7  ;;  %v6330_v37 = vadd.f32 %v7378_v0, %v1439_v39  ;;  %v1441_v27 = vpop.f32.mrb[13].mxu0  ;;  %v4780_v57 = vpop.f32.mrb[39].mxu1 }
 0x2bc   :  { %v6332_v1 = vadd.f32 %v7390_v26, %v1441_v27  ;;  %v1511_v27 = vadd.f32 %v1510_v41, %v7407_v53 }
 0x2bd   :  { %v4138_v18 = vmul.f32 -1.442695, %v6330_v37 }
 0x2be   :  { %v4139_v8 = vmul.f32 -1.442695, %v6332_v1 }
 0x2bf   :  { %6399 = vpow2.f32 %v4138_v18 }
 0x2c0   :  { %6401 = vpow2.f32 %v4139_v8 }
 0x2c5   :  { %v6398_v21 = vpop.eup %6397 }
 0x2c6   :  { %v1536_v58 = vmul.f32 %v6398_v21, %v1535_v40  ;;  %v1575_v21 = vpop.permute.xlu1 %1574 }
 0x2c7   :  { %vm1576_vm12 = vcmp.eq.s32.totalorder %v1575_v21, 1 }
 0x2c8   :  { %v1538_v24 = vadd.f32 %v1537_v60, %v1536_v58  ;;  %v8289_v60 = vld [vmem:[#allocation42_spill] sm:$0xff] }
 0x2c9   :  { %v6400_v36 = vpop.eup %6399 }
 0x2ca   :  { %v1547_v34 = vadd.f32 1.0, %v6400_v36  ;;  %v7481_v7 = vsel %vm1569_vm11, %v1538_v24, %v7393_v17  ;;  %v6402_v39 = vpop.eup %6401  ;;  %v8290_v24 = vld [vmem:[#allocation30_spill] sm:$0xff]  ;;  %v8291_v36 = vld [vmem:[#allocation31_spill] sm:$0xff] }
 0x2cb   :  { %8287 = vst [vmem:[#allocation46_spill] sm:$0xff] %v7481_v7  ;;  %1663 = vmatmul.mubr.f32.vlgmr.msra.gmra.mrb[20].mxu0 %v7481_v7  ;;  %4814 = vmatmul.mubr.f32.vlgmr.msra.gmra.mrb[40].mxu1 %v7481_v7  ;;  %v1554_v37 = vadd.f32 1.0, %v6402_v39  ;;  %v8293_v39 = vld [vmem:[#allocation32_spill] sm:$0xff] }
 0x2cc   :  { %6403 = vrcp.f32 %v1547_v34  ;;  %5612 = vmatpush1.bf16.msra.mxu0 %v6996_v10  ;;  %5643 = vmatpush3.bf16.msra.mxu1 %v7195_v12  ;;  %v8292_v34 = vld [vmem:[#allocation43_spill] sm:$0xff] }
 0x2cd   :  { %5614 = vmatprep.subr.bf16.mxu0 %v6999_v16  ;;  %5644 = vmatprep.subr.bf16.mxu1 %v8256_v38  ;;  %6405 = vrcp.f32 %v1554_v37  ;;  %v8294_v37 = vld [vmem:[#allocation33_spill] sm:$0xff] }
 0x2ce   :  { %1803 = vmatprep.mubr.f32.mxu0 %v8227_v59  ;;  %4848 = vmatprep.mubr.msk.f32.mxu1 %vm6715_vm7, %v8227_v59 }
 0x2d0   :  { %5616 = vmatpush1.bf16.msra.mxu0 %v7010_v25  ;;  %5646 = vmatpush3.bf16.msra.mxu1 %v7202_v55 }
 0x2d1   :  { %5618 = vmatprep.subr.bf16.mxu0 %v7014_v30  ;;  %5647 = vmatprep.subr.bf16.mxu1 %v8256_v38 }
 0x2d4   :  { %5620 = vmatpush1.bf16.msra.mxu0 %v7029_v43  ;;  %5649 = vmatpush3.bf16.msra.mxu1 %v7210_v42 }
 0x2d5   :  { %5622 = vmatprep.subr.bf16.mxu0 %v7033_v50  ;;  %5650 = vmatprep.subr.bf16.mxu1 %v8256_v38 }
 0x2d6   :  { %v6404_v57 = vpop.eup %6403 }
 0x2d7   :  { %v1557_v18 = vmul.f32 %v6404_v57, %v1511_v27  ;;  %v6406_v41 = vpop.eup %6405  ;;  %v8295_v27 = vld [vmem:[#allocation44_spill] sm:$0xff]  ;;  %v8296_v57 = vld [vmem:[#allocation34_spill] sm:$0xff] }
 0x2d8   :  { %5624 = vmatpush1.bf16.msra.mxu0 %v7048_v2  ;;  %5652 = vmatpush3.bf16.msra.mxu1 %v7214_v33  ;;  %v1562_v40 = vmul.f32 %v6406_v41, %v7436_v56 }
 0x2d9   :  { %v1558_v1 = vadd.f32 %v1557_v18, %v7369_v47  ;;  %5626 = vmatprep.subr.bf16.mxu0 %v7052_v9  ;;  %5653 = vmatprep.subr.bf16.mxu1 %v8256_v38  ;;  %v1560_v47 = vsub.f32 1.0, %v6406_v41  ;;  %v8297_v18 = vld [vmem:[#allocation35_spill] sm:$0xff]  ;;  %v8299_v41 = vld [vmem:[#allocation36_spill] sm:$0xff] }
 0x2db   :  { %6407 = vtanh.f32 %v1558_v1  ;;  %v8298_v1 = vld [vmem:[#allocation45_spill] sm:$0xff] }
 0x2dc   :  { %5628 = vmatpush1.bf16.msra.mxu0 %v7067_v23  ;;  %5655 = vmatpush3.bf16.msra.mxu1 %v7218_v6 }
 0x2dd   :  { %5630 = vmatprep.subr.bf16.mxu0 %v7071_v32  ;;  %5656 = vmatprep.subr.bf16.mxu1 %v8256_v38 }
 0x2e0   :  { %5632 = vmatpush1.bf16.msra.mxu0 %v7083_v49  ;;  %5658 = vmatpush3.bf16.msra.mxu1 %v7222_v52 }
 0x2e1   :  { %5634 = vmatprep.subr.bf16.mxu0 %v7087_v62  ;;  %5659 = vmatprep.subr.bf16.mxu1 %v8256_v38 }
 0x2e4   :  { %5636 = vmatpush1.bf16.msra.mxu0 %v7099_v19  ;;  %5661 = vmatpush3.bf16.msra.mxu1 %v7226_v46 }
 0x2e5   :  { %v6408_v5 = vpop.eup %6407  ;;  %5638 = vmatprep.subr.bf16.mxu0 %v7103_v29  ;;  %5662 = vmatprep.subr.bf16.mxu1 %v8256_v38 }
 0x2e6   :  { %v1561_v8 = vmul.f32 %v6408_v5, %v1560_v47 }
 0x2e8   :  { %v1563_v51 = vadd.f32 %v1562_v40, %v1561_v8  ;;  %5640 = vmatpush1.bf16.msra.mxu0 %v8257_v15  ;;  %5664 = vmatpush3.bf16.msra.mxu1 %v8258_v20  ;;  %v8300_v8 = vld [vmem:[#allocation49_spill] sm:$0xff] }
 0x2e9   :  { %5666 = vmatprep.subr.bf16.mxu0 %v8259_v48  ;;  %5697 = vmatprep.subr.bf16.mxu1 %v8256_v38 }
 0x2ea   :  { %v7524_v58 = vsel %vm1576_vm12, %v1563_v51, %v7436_v56  ;;  %v8301_v56 = vld [vmem:[#allocation50_spill] sm:$0xff] }
 0x2eb   :  { %8288 = vst [vmem:[#allocation20_spill] sm:$0xff] %v7524_v58  ;;  %1804 = vmatmul.mubr.f32.vlgmr.msra.gmra.mrb[10].mxu0 %v7524_v58  ;;  %4849 = vmatmul.mubr.f32.vlgmr.msra.gmra.mrb[42].mxu1 %v7524_v58 }
 0x2ec   :  { %5668 = vmatpush1.bf16.msra.mxu0 %v8261_v45  ;;  %5699 = vmatpush3.bf16.msra.mxu1 %v8262_v54 }
 0x2ed   :  { %5670 = vmatprep.subr.bf16.mxu0 %v8263_v31  ;;  %5700 = vmatprep.subr.bf16.mxu1 %v8256_v38 }
 0x2ee   :  { %2028 = vmatprep.mubr.f32.mxu0 %v8227_v59  ;;  %4883 = vmatprep.mubr.msk.f32.mxu1 %vm6715_vm7, %v8227_v59 }
 0x2f0   :  { %5672 = vmatpush1.bf16.msra.mxu0 %v8264_v11  ;;  %5702 = vmatpush3.bf16.msra.mxu1 %v8265_v44 }
 0x2f1   :  { %5674 = vmatprep.subr.bf16.mxu0 %v8266_v61  ;;  %5703 = vmatprep.subr.bf16.mxu1 %v8256_v38 }
 0x2f4   :  { %5676 = vmatpush1.bf16.msra.mxu0 %v8267_v35  ;;  %5705 = vmatpush3.bf16.msra.mxu1 %v8268_v13 }
 0x2f5   :  { %5678 = vmatprep.subr.bf16.mxu0 %v8269_v14  ;;  %5706 = vmatprep.subr.bf16.mxu1 %v8256_v38 }
 0x2f8   :  { %5680 = vmatpush1.bf16.msra.mxu0 %v8270_v28  ;;  %5708 = vmatpush3.bf16.msra.mxu1 %v8271_v3 }
 0x2f9   :  { %5682 = vmatprep.subr.bf16.mxu0 %v8272_v22  ;;  %5709 = vmatprep.subr.bf16.mxu1 %v8256_v38 }
 0x2fc   :  { %5684 = vmatpush1.bf16.msra.mxu0 %v8273_v4  ;;  %5711 = vmatpush3.bf16.msra.mxu1 %v8289_v60 }
 0x2fd   :  { %5686 = vmatprep.subr.bf16.mxu0 %v8290_v24  ;;  %5712 = vmatprep.subr.bf16.mxu1 %v8256_v38  ;;  %v8302_v24 = vld [vmem:[#allocation62_spill] sm:$0xff] }
 0x300   :  { %5688 = vmatpush1.bf16.msra.mxu0 %v8291_v36  ;;  %5714 = vmatpush3.bf16.msra.mxu1 %v8292_v34 }
 0x301   :  { %5690 = vmatprep.subr.bf16.mxu0 %v8293_v39  ;;  %5715 = vmatprep.subr.bf16.mxu1 %v8256_v38 }
 0x304   :  { %5692 = vmatpush1.bf16.msra.mxu0 %v8294_v37  ;;  %5717 = vmatpush3.bf16.msra.mxu1 %v8295_v27 }
 0x305   :  { %5694 = vmatprep.subr.bf16.mxu0 %v8296_v57  ;;  %5718 = vmatprep.subr.bf16.mxu1 %v8256_v38 }
 0x308   :  { %5696 = vmatpush1.bf16.msra.mxu0 %v8297_v18  ;;  %5720 = vmatpush3.bf16.msra.mxu1 %v8298_v1 }
 0x309   :  { %5722 = vmatprep.subr.bf16.mxu0 %v8299_v41  ;;  %5753 = vmatprep.subr.bf16.mxu1 %v8256_v38 }
 0x39e   :  { %v1664_v47 = vpop.f32.mrb[20].mxu0  ;;  %v1735_v5 = vpop.f32.mrb[40].mxu1 }
 0x39f   :  { %v6271_v40 = vadd.f32 %v8300_v8, %v1664_v47  ;;  %v1666_v21 = vpop.f32.mrb[21].mxu0  ;;  %v4815_v51 = vpop.f32.mrb[41].mxu1  ;;  %v1736_v41 = vadd.f32 %v1735_v5, %v7382_v63 }
 0x3a0   :  { %v6274_v17 = vadd.f32 %v8301_v56, %v1666_v21 }
 0x3a1   :  { %v4142_v27 = vmul.f32 -1.442695, %v6271_v40 }
 0x3a2   :  { %v4143_v57 = vmul.f32 -1.442695, %v6274_v17 }
 0x3a3   :  { %6409 = vpow2.f32 %v4142_v27 }
 0x3a4   :  { %6411 = vpow2.f32 %v4143_v57 }
 0x3ad   :  { %v6410_v37 = vpop.eup %6409 }
 0x3ae   :  { %v1888_v18 = vadd.f32 1.0, %v6410_v37  ;;  %v6412_v1 = vpop.eup %6411 }
 0x3af   :  { %v1895_v39 = vadd.f32 1.0, %v6412_v1 }
 0x3b0   :  { %6413 = vrcp.f32 %v1888_v18 }
 0x3b1   :  { %6415 = vrcp.f32 %v1895_v39 }
 0x3ba   :  { %v6414_v34 = vpop.eup %6413 }
 0x3bb   :  { %v1898_v36 = vmul.f32 %v6414_v34, %v1736_v41  ;;  %v6416_v18 = vpop.eup %6415 }
 0x3bc   :  { %v1901_v40 = vsub.f32 1.0, %v6416_v18  ;;  %v1903_v39 = vmul.f32 %v6416_v18, %v7481_v7 }
 0x3bd   :  { %v1899_v47 = vadd.f32 %v1898_v36, %v8302_v24  ;;  %v1934_v24 = vpop.permute.xlu0 %1933 }
 0x3be   :  { %v1805_v8 = vpop.f32.mrb[10].mxu0  ;;  %v1876_v51 = vpop.f32.mrb[42].mxu1  ;;  %vm1935_vm13 = vcmp.eq.s32.totalorder %v1934_v24, 1 }
 0x3bf   :  { %6417 = vtanh.f32 %v1899_v47  ;;  %v6326_v56 = vadd.f32 %v7378_v0, %v1805_v8  ;;  %v1807_v27 = vpop.f32.mrb[11].mxu0  ;;  %v4850_v17 = vpop.f32.mrb[43].mxu1 }
 0x3c0   :  { %v6328_v37 = vadd.f32 %v7390_v26, %v1807_v27  ;;  %v1877_v27 = vadd.f32 %v1876_v51, %v7407_v53 }
 0x3c1   :  { %v4144_v57 = vmul.f32 -1.442695, %v6326_v56 }
 0x3c2   :  { %v4145_v1 = vmul.f32 -1.442695, %v6328_v37  ;;  %v8304_v37 = vld [vmem:[#allocation71_spill] sm:$0xff] }
 0x3c3   :  { %6419 = vpow2.f32 %v4144_v57 }
 0x3c4   :  { %6421 = vpow2.f32 %v4145_v1 }
 0x3c9   :  { %v6418_v5 = vpop.eup %6417 }
 0x3ca   :  { %v1902_v34 = vmul.f32 %v6418_v5, %v1901_v40 }
 0x3cc   :  { %v1904_v36 = vadd.f32 %v1903_v39, %v1902_v34  ;;  %v1941_v39 = vpop.permute.xlu1 %1940 }
 0x3cd   :  { %v6420_v41 = vpop.eup %6419  ;;  %vm1942_vm14 = vcmp.eq.s32.totalorder %v1941_v39, 1 }
 0x3ce   :  { %v1913_v21 = vadd.f32 1.0, %v6420_v41  ;;  %v7571_v47 = vsel %vm1935_vm13, %v1904_v36, %v7481_v7  ;;  %v6422_v8 = vpop.eup %6421  ;;  %v8306_v41 = vld [vmem:[#allocation30_spill] sm:$0xff] }
 0x3cf   :  { %8303 = vst [vmem:[#allocation21_spill] sm:$0xff] %v7571_v47  ;;  %2029 = vmatmul.mubr.f32.vlgmr.msra.gmra.mrb[22].mxu0 %v7571_v47  ;;  %4884 = vmatmul.mubr.f32.vlgmr.msra.gmra.mrb[44].mxu1 %v7571_v47  ;;  %v1920_v56 = vadd.f32 1.0, %v6422_v8  ;;  %v8308_v8 = vld [vmem:[#allocation43_spill] sm:$0xff] }
 0x3d0   :  { %6423 = vrcp.f32 %v1913_v21  ;;  %5724 = vmatpush1.bf16.msra.mxu0 %v6996_v10  ;;  %5755 = vmatpush3.bf16.msra.mxu1 %v7195_v12  ;;  %v8307_v21 = vld [vmem:[#allocation31_spill] sm:$0xff] }
 0x3d1   :  { %5726 = vmatprep.subr.bf16.mxu0 %v6999_v16  ;;  %5756 = vmatprep.subr.bf16.mxu1 %v8256_v38  ;;  %6425 = vrcp.f32 %v1920_v56  ;;  %v8309_v56 = vld [vmem:[#allocation32_spill] sm:$0xff] }
 0x3d2   :  { %2169 = vmatprep.mubr.f32.mxu0 %v8227_v59  ;;  %4918 = vmatprep.mubr.msk.f32.mxu1 %vm6715_vm7, %v8227_v59 }
 0x3d4   :  { %5728 = vmatpush1.bf16.msra.mxu0 %v7010_v25  ;;  %5758 = vmatpush3.bf16.msra.mxu1 %v7202_v55 }
 0x3d5   :  { %5730 = vmatprep.subr.bf16.mxu0 %v7014_v30  ;;  %5759 = vmatprep.subr.bf16.mxu1 %v8256_v38 }
 0x3d8   :  { %5732 = vmatpush1.bf16.msra.mxu0 %v7029_v43  ;;  %5761 = vmatpush3.bf16.msra.mxu1 %v7210_v42 }
 0x3d9   :  { %5734 = vmatprep.subr.bf16.mxu0 %v7033_v50  ;;  %5762 = vmatprep.subr.bf16.mxu1 %v8256_v38 }
 0x3da   :  { %v6424_v17 = vpop.eup %6423 }
 0x3db   :  { %v1923_v57 = vmul.f32 %v6424_v17, %v1877_v27  ;;  %v6426_v51 = vpop.eup %6425  ;;  %v8310_v27 = vld [vmem:[#allocation33_spill] sm:$0xff]  ;;  %v8311_v17 = vld [vmem:[#allocation44_spill] sm:$0xff] }
 0x3dc   :  { %5736 = vmatpush1.bf16.msra.mxu0 %v7048_v2  ;;  %5764 = vmatpush3.bf16.msra.mxu1 %v7214_v33  ;;  %v1926_v1 = vsub.f32 1.0, %v6426_v51  ;;  %v1928_v34 = vmul.f32 %v6426_v51, %v7524_v58  ;;  %v8315_v51 = vld [vmem:[#allocation36_spill] sm:$0xff] }
 0x3dd   :  { %v1924_v18 = vadd.f32 %v1923_v57, %v8304_v37  ;;  %5738 = vmatprep.subr.bf16.mxu0 %v7052_v9  ;;  %5765 = vmatprep.subr.bf16.mxu1 %v8256_v38  ;;  %v8312_v57 = vld [vmem:[#allocation34_spill] sm:$0xff]  ;;  %v8313_v37 = vld [vmem:[#allocation35_spill] sm:$0xff] }
 0x3df   :  { %6427 = vtanh.f32 %v1924_v18  ;;  %v8314_v18 = vld [vmem:[#allocation45_spill] sm:$0xff] }
 0x3e0   :  { %5740 = vmatpush1.bf16.msra.mxu0 %v7067_v23  ;;  %5767 = vmatpush3.bf16.msra.mxu1 %v7218_v6 }
 0x3e1   :  { %5742 = vmatprep.subr.bf16.mxu0 %v7071_v32  ;;  %5768 = vmatprep.subr.bf16.mxu1 %v8256_v38 }
 0x3e4   :  { %5744 = vmatpush1.bf16.msra.mxu0 %v7083_v49  ;;  %5770 = vmatpush3.bf16.msra.mxu1 %v7222_v52 }
 0x3e5   :  { %5746 = vmatprep.subr.bf16.mxu0 %v7087_v62  ;;  %5771 = vmatprep.subr.bf16.mxu1 %v8256_v38 }
 0x3e8   :  { %5748 = vmatpush1.bf16.msra.mxu0 %v7099_v19  ;;  %5773 = vmatpush3.bf16.msra.mxu1 %v7226_v46 }
 0x3e9   :  { %v6428_v40 = vpop.eup %6427  ;;  %5750 = vmatprep.subr.bf16.mxu0 %v7103_v29  ;;  %5774 = vmatprep.subr.bf16.mxu1 %v8256_v38 }
 0x3ea   :  { %v1927_v5 = vmul.f32 %v6428_v40, %v1926_v1 }
 0x3ec   :  { %5752 = vmatpush1.bf16.msra.mxu0 %v8257_v15  ;;  %5776 = vmatpush3.bf16.msra.mxu1 %v8258_v20  ;;  %v1929_v24 = vadd.f32 %v1928_v34, %v1927_v5  ;;  %v8316_v5 = vld [vmem:[#allocation51_spill] sm:$0xff] }
 0x3ed   :  { %5778 = vmatprep.subr.bf16.mxu0 %v8259_v48  ;;  %5809 = vmatprep.subr.bf16.mxu1 %v8256_v38 }
 0x3ee   :  { %v7614_v36 = vsel %vm1942_vm14, %v1929_v24, %v7524_v58  ;;  %v8317_v58 = vld [vmem:[#allocation52_spill] sm:$0xff] }
 0x3ef   :  { %8305 = vst [vmem:[#allocation38_spill] sm:$0xff] %v7614_v36  ;;  %2170 = vmatmul.mubr.f32.vlgmr.msra.gmra.mrb[8].mxu0 %v7614_v36  ;;  %4919 = vmatmul.mubr.f32.vlgmr.msra.gmra.mrb[46].mxu1 %v7614_v36 }
 0x3f0   :  { %5780 = vmatpush1.bf16.msra.mxu0 %v8261_v45  ;;  %5811 = vmatpush3.bf16.msra.mxu1 %v8262_v54 }
 0x3f1   :  { %5782 = vmatprep.subr.bf16.mxu0 %v8263_v31  ;;  %5812 = vmatprep.subr.bf16.mxu1 %v8256_v38 }
 0x3f2   :  { %2392 = vmatprep.mubr.f32.mxu0 %v8227_v59  ;;  %4953 = vmatprep.mubr.msk.f32.mxu1 %vm6715_vm7, %v8227_v59 }
 0x3f4   :  { %5784 = vmatpush1.bf16.msra.mxu0 %v8264_v11  ;;  %5814 = vmatpush3.bf16.msra.mxu1 %v8265_v44 }
 0x3f5   :  { %5786 = vmatprep.subr.bf16.mxu0 %v8266_v61  ;;  %5815 = vmatprep.subr.bf16.mxu1 %v8256_v38 }
 0x3f8   :  { %5788 = vmatpush1.bf16.msra.mxu0 %v8267_v35  ;;  %5817 = vmatpush3.bf16.msra.mxu1 %v8268_v13 }
 0x3f9   :  { %5790 = vmatprep.subr.bf16.mxu0 %v8269_v14  ;;  %5818 = vmatprep.subr.bf16.mxu1 %v8256_v38 }
 0x3fc   :  { %5792 = vmatpush1.bf16.msra.mxu0 %v8270_v28  ;;  %5820 = vmatpush3.bf16.msra.mxu1 %v8271_v3 }
 0x3fd   :  { %5794 = vmatprep.subr.bf16.mxu0 %v8272_v22  ;;  %5821 = vmatprep.subr.bf16.mxu1 %v8256_v38 }
 0x400   :  { %5796 = vmatpush1.bf16.msra.mxu0 %v8273_v4  ;;  %5823 = vmatpush3.bf16.msra.mxu1 %v8289_v60 }
 0x401   :  { %5798 = vmatprep.subr.bf16.mxu0 %v8306_v41  ;;  %5824 = vmatprep.subr.bf16.mxu1 %v8256_v38  ;;  %v8318_v41 = vld [vmem:[#allocation61_spill] sm:$0xff] }
 0x404   :  { %5800 = vmatpush1.bf16.msra.mxu0 %v8307_v21  ;;  %5826 = vmatpush3.bf16.msra.mxu1 %v8308_v8 }
 0x405   :  { %5802 = vmatprep.subr.bf16.mxu0 %v8309_v56  ;;  %5827 = vmatprep.subr.bf16.mxu1 %v8256_v38 }
 0x408   :  { %5804 = vmatpush1.bf16.msra.mxu0 %v8310_v27  ;;  %5829 = vmatpush3.bf16.msra.mxu1 %v8311_v17 }
 0x409   :  { %5806 = vmatprep.subr.bf16.mxu0 %v8312_v57  ;;  %5830 = vmatprep.subr.bf16.mxu1 %v8256_v38 }
 0x40c   :  { %5808 = vmatpush1.bf16.msra.mxu0 %v8313_v37  ;;  %5832 = vmatpush3.bf16.msra.mxu1 %v8314_v18 }
 0x40d   :  { %5834 = vmatprep.subr.bf16.mxu0 %v8315_v51  ;;  %5865 = vmatprep.subr.bf16.mxu1 %v8256_v38 }
 0x4a2   :  { %v2030_v1 = vpop.f32.mrb[22].mxu0  ;;  %v2101_v40 = vpop.f32.mrb[44].mxu1 }
 0x4a3   :  { %v6277_v34 = vadd.f32 %v8316_v5, %v2030_v1  ;;  %v2032_v39 = vpop.f32.mrb[23].mxu0  ;;  %v4885_v24 = vpop.f32.mrb[45].mxu1  ;;  %v2102_v51 = vadd.f32 %v2101_v40, %v7382_v63 }
 0x4a4   :  { %v6280_v7 = vadd.f32 %v8317_v58, %v2032_v39 }
 0x4a5   :  { %v4148_v17 = vmul.f32 -1.442695, %v6277_v34 }
 0x4a6   :  { %v4149_v57 = vmul.f32 -1.442695, %v6280_v7 }
 0x4a7   :  { %6429 = vpow2.f32 %v4148_v17 }
 0x4a8   :  { %6431 = vpow2.f32 %v4149_v57 }
 0x4b1   :  { %v6430_v27 = vpop.eup %6429 }
 0x4b2   :  { %v2254_v37 = vadd.f32 1.0, %v6430_v27  ;;  %v6432_v18 = vpop.eup %6431 }
 0x4b3   :  { %v2261_v56 = vadd.f32 1.0, %v6432_v18 }
 0x4b4   :  { %6433 = vrcp.f32 %v2254_v37 }
 0x4b5   :  { %6435 = vrcp.f32 %v2261_v56 }
 0x4be   :  { %v6434_v8 = vpop.eup %6433 }
 0x4bf   :  { %v2264_v21 = vmul.f32 %v6434_v8, %v2102_v51  ;;  %v6436_v37 = vpop.eup %6435 }
 0x4c0   :  { %v2267_v34 = vsub.f32 1.0, %v6436_v37  ;;  %v2269_v56 = vmul.f32 %v6436_v37, %v7571_v47 }
 0x4c1   :  { %v2265_v1 = vadd.f32 %v2264_v21, %v8318_v41  ;;  %v2300_v41 = vpop.permute.xlu0 %2299 }
 0x4c2   :  { %v2171_v5 = vpop.f32.mrb[8].mxu0  ;;  %v2242_v24 = vpop.f32.mrb[46].mxu1  ;;  %vm2301_vm15 = vcmp.eq.s32.totalorder %v2300_v41, 1 }
 0x4c3   :  { %6437 = vtanh.f32 %v2265_v1  ;;  %v6322_v58 = vadd.f32 %v7378_v0, %v2171_v5  ;;  %v2173_v17 = vpop.f32.mrb[9].mxu0  ;;  %v4920_v7 = vpop.f32.mrb[47].mxu1 }
 0x4c4   :  { %v6324_v27 = vadd.f32 %v7390_v26, %v2173_v17  ;;  %v2243_v17 = vadd.f32 %v2242_v24, %v7407_v53 }
 0x4c5   :  { %v4150_v57 = vmul.f32 -1.442695, %v6322_v58 }
 0x4c6   :  { %v4151_v18 = vmul.f32 -1.442695, %v6324_v27  ;;  %v8320_v27 = vld [vmem:[#allocation72_spill] sm:$0xff] }
 0x4c7   :  { %6439 = vpow2.f32 %v4150_v57 }
 0x4c8   :  { %6441 = vpow2.f32 %v4151_v18 }
 0x4cd   :  { %v6438_v40 = vpop.eup %6437 }
 0x4ce   :  { %v2268_v8 = vmul.f32 %v6438_v40, %v2267_v34 }
 0x4d0   :  { %v2270_v21 = vadd.f32 %v2269_v56, %v2268_v8  ;;  %v2307_v56 = vpop.permute.xlu1 %2306 }
 0x4d1   :  { %v6440_v51 = vpop.eup %6439  ;;  %vm2308_vm0 = vcmp.eq.s32.totalorder %v2307_v56, 1 }
 0x4d2   :  { %v2279_v39 = vadd.f32 1.0, %v6440_v51  ;;  %v7661_v1 = vsel %vm2301_vm15, %v2270_v21, %v7571_v47  ;;  %v6442_v5 = vpop.eup %6441  ;;  %v8322_v51 = vld [vmem:[#allocation30_spill] sm:$0xff] }
 0x4d3   :  { %8319 = vst [vmem:[#allocation22_spill] sm:$0xff] %v7661_v1  ;;  %2393 = vmatmul.mubr.f32.vlgmr.msra.gmra.mrb[24].mxu0 %v7661_v1  ;;  %4954 = vmatmul.mubr.f32.vlgmr.msra.gmra.mrb[48].mxu1 %v7661_v1  ;;  %v2286_v58 = vadd.f32 1.0, %v6442_v5  ;;  %v8324_v5 = vld [vmem:[#allocation43_spill] sm:$0xff] }
 0x4d4   :  { %6443 = vrcp.f32 %v2279_v39  ;;  %5836 = vmatpush1.bf16.msra.mxu0 %v6996_v10  ;;  %5867 = vmatpush3.bf16.msra.mxu1 %v7195_v12  ;;  %v8323_v39 = vld [vmem:[#allocation31_spill] sm:$0xff] }
 0x4d5   :  { %5838 = vmatprep.subr.bf16.mxu0 %v6999_v16  ;;  %5868 = vmatprep.subr.bf16.mxu1 %v8256_v38  ;;  %6445 = vrcp.f32 %v2286_v58  ;;  %v8325_v58 = vld [vmem:[#allocation32_spill] sm:$0xff] }
 0x4d6   :  { %2533 = vmatprep.mubr.f32.mxu0 %v8227_v59  ;;  %4988 = vmatprep.mubr.msk.f32.mxu1 %vm6715_vm7, %v8227_v59 }
 0x4d8   :  { %5840 = vmatpush1.bf16.msra.mxu0 %v7010_v25  ;;  %5870 = vmatpush3.bf16.msra.mxu1 %v7202_v55 }
 0x4d9   :  { %5842 = vmatprep.subr.bf16.mxu0 %v7014_v30  ;;  %5871 = vmatprep.subr.bf16.mxu1 %v8256_v38 }
 0x4dc   :  { %5844 = vmatpush1.bf16.msra.mxu0 %v7029_v43  ;;  %5873 = vmatpush3.bf16.msra.mxu1 %v7210_v42 }
 0x4dd   :  { %5846 = vmatprep.subr.bf16.mxu0 %v7033_v50  ;;  %5874 = vmatprep.subr.bf16.mxu1 %v8256_v38 }
 0x4de   :  { %v6444_v7 = vpop.eup %6443 }
 0x4df   :  { %v2289_v57 = vmul.f32 %v6444_v7, %v2243_v17  ;;  %v6446_v24 = vpop.eup %6445  ;;  %v8326_v17 = vld [vmem:[#allocation33_spill] sm:$0xff]  ;;  %v8327_v7 = vld [vmem:[#allocation44_spill] sm:$0xff] }
 0x4e0   :  { %5848 = vmatpush1.bf16.msra.mxu0 %v7048_v2  ;;  %5876 = vmatpush3.bf16.msra.mxu1 %v7214_v33  ;;  %v2292_v18 = vsub.f32 1.0, %v6446_v24  ;;  %v2294_v8 = vmul.f32 %v6446_v24, %v7614_v36  ;;  %v8331_v24 = vld [vmem:[#allocation36_spill] sm:$0xff] }
 0x4e1   :  { %v2290_v37 = vadd.f32 %v2289_v57, %v8320_v27  ;;  %5850 = vmatprep.subr.bf16.mxu0 %v7052_v9  ;;  %5877 = vmatprep.subr.bf16.mxu1 %v8256_v38  ;;  %v8328_v57 = vld [vmem:[#allocation34_spill] sm:$0xff]  ;;  %v8329_v27 = vld [vmem:[#allocation35_spill] sm:$0xff] }
 0x4e3   :  { %6447 = vtanh.f32 %v2290_v37  ;;  %v8330_v37 = vld [vmem:[#allocation45_spill] sm:$0xff] }
 0x4e4   :  { %5852 = vmatpush1.bf16.msra.mxu0 %v7067_v23  ;;  %5879 = vmatpush3.bf16.msra.mxu1 %v7218_v6 }
 0x4e5   :  { %5854 = vmatprep.subr.bf16.mxu0 %v7071_v32  ;;  %5880 = vmatprep.subr.bf16.mxu1 %v8256_v38 }
 0x4e8   :  { %5856 = vmatpush1.bf16.msra.mxu0 %v7083_v49  ;;  %5882 = vmatpush3.bf16.msra.mxu1 %v7222_v52 }
 0x4e9   :  { %5858 = vmatprep.subr.bf16.mxu0 %v7087_v62  ;;  %5883 = vmatprep.subr.bf16.mxu1 %v8256_v38 }
 0x4ec   :  { %5860 = vmatpush1.bf16.msra.mxu0 %v7099_v19  ;;  %5885 = vmatpush3.bf16.msra.mxu1 %v7226_v46 }
 0x4ed   :  { %v6448_v34 = vpop.eup %6447  ;;  %5862 = vmatprep.subr.bf16.mxu0 %v7103_v29  ;;  %5886 = vmatprep.subr.bf16.mxu1 %v8256_v38 }
 0x4ee   :  { %v2293_v40 = vmul.f32 %v6448_v34, %v2292_v18 }
 0x4f0   :  { %5864 = vmatpush1.bf16.msra.mxu0 %v8257_v15  ;;  %5888 = vmatpush3.bf16.msra.mxu1 %v8258_v20  ;;  %v2295_v41 = vadd.f32 %v2294_v8, %v2293_v40  ;;  %v8332_v40 = vld [vmem:[#allocation53_spill] sm:$0xff] }
 0x4f1   :  { %5890 = vmatprep.subr.bf16.mxu0 %v8259_v48  ;;  %5921 = vmatprep.subr.bf16.mxu1 %v8256_v38 }
 0x4f2   :  { %v7704_v21 = vsel %vm2308_vm0, %v2295_v41, %v7614_v36  ;;  %v8333_v36 = vld [vmem:[#allocation54_spill] sm:$0xff] }
 0x4f3   :  { %8321 = vst [vmem:[#allocation23_spill] sm:$0xff] %v7704_v21  ;;  %2534 = vmatmul.mubr.f32.vlgmr.msra.gmra.mrb[6].mxu0 %v7704_v21  ;;  %4989 = vmatmul.mubr.f32.vlgmr.msra.gmra.mrb[50].mxu1 %v7704_v21 }
 0x4f4   :  { %5892 = vmatpush1.bf16.msra.mxu0 %v8261_v45  ;;  %5923 = vmatpush3.bf16.msra.mxu1 %v8262_v54 }
 0x4f5   :  { %5894 = vmatprep.subr.bf16.mxu0 %v8263_v31  ;;  %5924 = vmatprep.subr.bf16.mxu1 %v8256_v38 }
 0x4f6   :  { %2756 = vmatprep.mubr.f32.mxu0 %v8227_v59  ;;  %5023 = vmatprep.mubr.msk.f32.mxu1 %vm6715_vm7, %v8227_v59 }
 0x4f8   :  { %5896 = vmatpush1.bf16.msra.mxu0 %v8264_v11  ;;  %5926 = vmatpush3.bf16.msra.mxu1 %v8265_v44 }
 0x4f9   :  { %5898 = vmatprep.subr.bf16.mxu0 %v8266_v61  ;;  %5927 = vmatprep.subr.bf16.mxu1 %v8256_v38 }
 0x4fc   :  { %5900 = vmatpush1.bf16.msra.mxu0 %v8267_v35  ;;  %5929 = vmatpush3.bf16.msra.mxu1 %v8268_v13 }
 0x4fd   :  { %5902 = vmatprep.subr.bf16.mxu0 %v8269_v14  ;;  %5930 = vmatprep.subr.bf16.mxu1 %v8256_v38 }
 0x500   :  { %5904 = vmatpush1.bf16.msra.mxu0 %v8270_v28  ;;  %5932 = vmatpush3.bf16.msra.mxu1 %v8271_v3 }
 0x501   :  { %5906 = vmatprep.subr.bf16.mxu0 %v8272_v22  ;;  %5933 = vmatprep.subr.bf16.mxu1 %v8256_v38 }
 0x504   :  { %5908 = vmatpush1.bf16.msra.mxu0 %v8273_v4  ;;  %5935 = vmatpush3.bf16.msra.mxu1 %v8289_v60 }
 0x505   :  { %5910 = vmatprep.subr.bf16.mxu0 %v8322_v51  ;;  %5936 = vmatprep.subr.bf16.mxu1 %v8256_v38  ;;  %v8334_v51 = vld [vmem:[#allocation64_spill] sm:$0xff] }
 0x508   :  { %5912 = vmatpush1.bf16.msra.mxu0 %v8323_v39  ;;  %5938 = vmatpush3.bf16.msra.mxu1 %v8324_v5 }
 0x509   :  { %5914 = vmatprep.subr.bf16.mxu0 %v8325_v58  ;;  %5939 = vmatprep.subr.bf16.mxu1 %v8256_v38 }
 0x50c   :  { %5916 = vmatpush1.bf16.msra.mxu0 %v8326_v17  ;;  %5941 = vmatpush3.bf16.msra.mxu1 %v8327_v7 }
 0x50d   :  { %5918 = vmatprep.subr.bf16.mxu0 %v8328_v57  ;;  %5942 = vmatprep.subr.bf16.mxu1 %v8256_v38 }
 0x510   :  { %5920 = vmatpush1.bf16.msra.mxu0 %v8329_v27  ;;  %5944 = vmatpush3.bf16.msra.mxu1 %v8330_v37 }
 0x511   :  { %5946 = vmatprep.subr.bf16.mxu0 %v8331_v24  ;;  %5977 = vmatprep.subr.bf16.mxu1 %v8256_v38 }
 0x5a6   :  { %v2394_v18 = vpop.f32.mrb[24].mxu0  ;;  %v2465_v34 = vpop.f32.mrb[48].mxu1 }
 0x5a7   :  { %v6283_v8 = vadd.f32 %v8332_v40, %v2394_v18  ;;  %v2396_v56 = vpop.f32.mrb[25].mxu0  ;;  %v4955_v41 = vpop.f32.mrb[49].mxu1  ;;  %v2466_v24 = vadd.f32 %v2465_v34, %v7382_v63 }
 0x5a8   :  { %v6286_v47 = vadd.f32 %v8333_v36, %v2396_v56 }
 0x5a9   :  { %v4154_v7 = vmul.f32 -1.442695, %v6283_v8 }
 0x5aa   :  { %v4155_v57 = vmul.f32 -1.442695, %v6286_v47 }
 0x5ab   :  { %6449 = vpow2.f32 %v4154_v7 }
 0x5ac   :  { %6451 = vpow2.f32 %v4155_v57 }
 0x5b5   :  { %v6450_v17 = vpop.eup %6449 }
 0x5b6   :  { %v2618_v27 = vadd.f32 1.0, %v6450_v17  ;;  %v6452_v37 = vpop.eup %6451 }
 0x5b7   :  { %v2625_v58 = vadd.f32 1.0, %v6452_v37 }
 0x5b8   :  { %6453 = vrcp.f32 %v2618_v27 }
 0x5b9   :  { %6455 = vrcp.f32 %v2625_v58 }
 0x5c2   :  { %v6454_v5 = vpop.eup %6453 }
 0x5c3   :  { %v2628_v39 = vmul.f32 %v6454_v5, %v2466_v24  ;;  %v6456_v27 = vpop.eup %6455 }
 0x5c4   :  { %v2631_v8 = vsub.f32 1.0, %v6456_v27  ;;  %v2633_v58 = vmul.f32 %v6456_v27, %v7661_v1 }
 0x5c5   :  { %v2629_v18 = vadd.f32 %v2628_v39, %v8334_v51  ;;  %v2664_v51 = vpop.permute.xlu0 %2663 }
 0x5c6   :  { %v2535_v40 = vpop.f32.mrb[6].mxu0  ;;  %v2606_v41 = vpop.f32.mrb[50].mxu1  ;;  %vm2665_vm1 = vcmp.eq.s32.totalorder %v2664_v51, 1 }
 0x5c7   :  { %6457 = vtanh.f32 %v2629_v18  ;;  %v6318_v36 = vadd.f32 %v7378_v0, %v2535_v40  ;;  %v2537_v7 = vpop.f32.mrb[7].mxu0  ;;  %v4990_v47 = vpop.f32.mrb[51].mxu1 }
 0x5c8   :  { %v6320_v17 = vadd.f32 %v7390_v26, %v2537_v7  ;;  %v2607_v7 = vadd.f32 %v2606_v41, %v7407_v53 }
 0x5c9   :  { %v4156_v57 = vmul.f32 -1.442695, %v6318_v36 }
 0x5ca   :  { %v4157_v37 = vmul.f32 -1.442695, %v6320_v17  ;;  %v8335_v17 = vld [vmem:[#allocation69_spill] sm:$0xff] }
 0x5cb   :  { %6459 = vpow2.f32 %v4156_v57 }
 0x5cc   :  { %6461 = vpow2.f32 %v4157_v37 }
 0x5d1   :  { %v6458_v34 = vpop.eup %6457 }
 0x5d2   :  { %v2632_v5 = vmul.f32 %v6458_v34, %v2631_v8 }
 0x5d4   :  { %v2634_v39 = vadd.f32 %v2633_v58, %v2632_v5  ;;  %v2671_v58 = vpop.permute.xlu1 %2670 }
 0x5d5   :  { %v6460_v24 = vpop.eup %6459  ;;  %vm2672_vm2 = vcmp.eq.s32.totalorder %v2671_v58, 1 }
 0x5d6   :  { %v2643_v56 = vadd.f32 1.0, %v6460_v24  ;;  %v7751_v18 = vsel %vm2665_vm1, %v2634_v39, %v7661_v1  ;;  %v6462_v40 = vpop.eup %6461  ;;  %v8336_v24 = vld [vmem:[#allocation30_spill] sm:$0xff] }
 0x5d7   :  { %2757 = vmatmul.mubr.f32.vlgmr.msra.gmra.mrb[26].mxu0 %v7751_v18  ;;  %5024 = vmatmul.mubr.f32.vlgmr.msra.gmra.mrb[52].mxu1 %v7751_v18  ;;  %v2650_v36 = vadd.f32 1.0, %v6462_v40  ;;  %v8338_v40 = vld [vmem:[#allocation43_spill] sm:$0xff] }
 0x5d8   :  { %6463 = vrcp.f32 %v2643_v56  ;;  %5948 = vmatpush1.bf16.msra.mxu0 %v6996_v10  ;;  %5979 = vmatpush3.bf16.msra.mxu1 %v7195_v12  ;;  %v8337_v56 = vld [vmem:[#allocation31_spill] sm:$0xff] }
 0x5d9   :  { %5950 = vmatprep.subr.bf16.mxu0 %v6999_v16  ;;  %5980 = vmatprep.subr.bf16.mxu1 %v8256_v38  ;;  %6465 = vrcp.f32 %v2650_v36  ;;  %v8339_v36 = vld [vmem:[#allocation32_spill] sm:$0xff] }
 0x5da   :  { %2897 = vmatprep.mubr.f32.mxu0 %v8227_v59  ;;  %5058 = vmatprep.mubr.msk.f32.mxu1 %vm6715_vm7, %v8227_v59 }
 0x5dc   :  { %5952 = vmatpush1.bf16.msra.mxu0 %v7010_v25  ;;  %5982 = vmatpush3.bf16.msra.mxu1 %v7202_v55 }
 0x5dd   :  { %5954 = vmatprep.subr.bf16.mxu0 %v7014_v30  ;;  %5983 = vmatprep.subr.bf16.mxu1 %v8256_v38 }
 0x5e0   :  { %5956 = vmatpush1.bf16.msra.mxu0 %v7029_v43  ;;  %5985 = vmatpush3.bf16.msra.mxu1 %v7210_v42 }
 0x5e1   :  { %5958 = vmatprep.subr.bf16.mxu0 %v7033_v50  ;;  %5986 = vmatprep.subr.bf16.mxu1 %v8256_v38 }
 0x5e2   :  { %v6464_v47 = vpop.eup %6463 }
 0x5e3   :  { %v2653_v57 = vmul.f32 %v6464_v47, %v2607_v7  ;;  %v6466_v41 = vpop.eup %6465  ;;  %v8340_v7 = vld [vmem:[#allocation33_spill] sm:$0xff]  ;;  %v8341_v47 = vld [vmem:[#allocation44_spill] sm:$0xff] }
 0x5e4   :  { %5960 = vmatpush1.bf16.msra.mxu0 %v7048_v2  ;;  %5988 = vmatpush3.bf16.msra.mxu1 %v7214_v33  ;;  %v2656_v37 = vsub.f32 1.0, %v6466_v41  ;;  %v2658_v5 = vmul.f32 %v6466_v41, %v7704_v21  ;;  %v8345_v41 = vld [vmem:[#allocation36_spill] sm:$0xff] }
 0x5e5   :  { %v2654_v27 = vadd.f32 %v2653_v57, %v8335_v17  ;;  %5962 = vmatprep.subr.bf16.mxu0 %v7052_v9  ;;  %5989 = vmatprep.subr.bf16.mxu1 %v8256_v38  ;;  %v8342_v57 = vld [vmem:[#allocation34_spill] sm:$0xff]  ;;  %v8343_v17 = vld [vmem:[#allocation35_spill] sm:$0xff] }
 0x5e7   :  { %6467 = vtanh.f32 %v2654_v27  ;;  %v8344_v27 = vld [vmem:[#allocation45_spill] sm:$0xff] }
 0x5e8   :  { %5964 = vmatpush1.bf16.msra.mxu0 %v7067_v23  ;;  %5991 = vmatpush3.bf16.msra.mxu1 %v7218_v6 }
 0x5e9   :  { %5966 = vmatprep.subr.bf16.mxu0 %v7071_v32  ;;  %5992 = vmatprep.subr.bf16.mxu1 %v8256_v38 }
 0x5ec   :  { %5968 = vmatpush1.bf16.msra.mxu0 %v7083_v49  ;;  %5994 = vmatpush3.bf16.msra.mxu1 %v7222_v52 }
 0x5ed   :  { %5970 = vmatprep.subr.bf16.mxu0 %v7087_v62  ;;  %5995 = vmatprep.subr.bf16.mxu1 %v8256_v38 }
 0x5f0   :  { %5972 = vmatpush1.bf16.msra.mxu0 %v7099_v19  ;;  %5997 = vmatpush3.bf16.msra.mxu1 %v7226_v46 }
 0x5f1   :  { %v6468_v8 = vpop.eup %6467  ;;  %5974 = vmatprep.subr.bf16.mxu0 %v7103_v29  ;;  %5998 = vmatprep.subr.bf16.mxu1 %v8256_v38 }
 0x5f2   :  { %v2657_v34 = vmul.f32 %v6468_v8, %v2656_v37 }
 0x5f4   :  { %5976 = vmatpush1.bf16.msra.mxu0 %v8257_v15  ;;  %6000 = vmatpush3.bf16.msra.mxu1 %v8258_v20  ;;  %v2659_v51 = vadd.f32 %v2658_v5, %v2657_v34  ;;  %v8346_v34 = vld [vmem:[#allocation55_spill] sm:$0xff] }
 0x5f5   :  { %6002 = vmatprep.subr.bf16.mxu0 %v8259_v48  ;;  %6033 = vmatprep.subr.bf16.mxu1 %v8256_v38 }
 0x5f6   :  { %v7794_v39 = vsel %vm2672_vm2, %v2659_v51, %v7704_v21  ;;  %v8347_v21 = vld [vmem:[#allocation56_spill] sm:$0xff] }
 0x5f7   :  { %2898 = vmatmul.mubr.f32.vlgmr.msra.gmra.mrb[4].mxu0 %v7794_v39  ;;  %5059 = vmatmul.mubr.f32.vlgmr.msra.gmra.mrb[54].mxu1 %v7794_v39 }
 0x5f8   :  { %6004 = vmatpush1.bf16.msra.mxu0 %v8261_v45  ;;  %6035 = vmatpush3.bf16.msra.mxu1 %v8262_v54 }
 0x5f9   :  { %6006 = vmatprep.subr.bf16.mxu0 %v8263_v31  ;;  %6036 = vmatprep.subr.bf16.mxu1 %v8256_v38 }
 0x5fa   :  { %3120 = vmatprep.mubr.f32.mxu0 %v8227_v59  ;;  %5093 = vmatprep.mubr.msk.f32.mxu1 %vm6715_vm7, %v8227_v59 }
 0x5fc   :  { %6008 = vmatpush1.bf16.msra.mxu0 %v8264_v11  ;;  %6038 = vmatpush3.bf16.msra.mxu1 %v8265_v44 }
 0x5fd   :  { %6010 = vmatprep.subr.bf16.mxu0 %v8266_v61  ;;  %6039 = vmatprep.subr.bf16.mxu1 %v8256_v38 }
 0x600   :  { %6012 = vmatpush1.bf16.msra.mxu0 %v8267_v35  ;;  %6041 = vmatpush3.bf16.msra.mxu1 %v8268_v13 }
 0x601   :  { %6014 = vmatprep.subr.bf16.mxu0 %v8269_v14  ;;  %6042 = vmatprep.subr.bf16.mxu1 %v8256_v38 }
 0x604   :  { %6016 = vmatpush1.bf16.msra.mxu0 %v8270_v28  ;;  %6044 = vmatpush3.bf16.msra.mxu1 %v8271_v3 }
 0x605   :  { %6018 = vmatprep.subr.bf16.mxu0 %v8272_v22  ;;  %6045 = vmatprep.subr.bf16.mxu1 %v8256_v38 }
 0x608   :  { %6020 = vmatpush1.bf16.msra.mxu0 %v8273_v4  ;;  %6047 = vmatpush3.bf16.msra.mxu1 %v8289_v60 }
 0x609   :  { %6022 = vmatprep.subr.bf16.mxu0 %v8336_v24  ;;  %6048 = vmatprep.subr.bf16.mxu1 %v8256_v38  ;;  %v8348_v24 = vld [vmem:[#allocation63_spill] sm:$0xff] }
 0x60c   :  { %6024 = vmatpush1.bf16.msra.mxu0 %v8337_v56  ;;  %6050 = vmatpush3.bf16.msra.mxu1 %v8338_v40 }
 0x60d   :  { %6026 = vmatprep.subr.bf16.mxu0 %v8339_v36  ;;  %6051 = vmatprep.subr.bf16.mxu1 %v8256_v38 }
 0x610   :  { %6028 = vmatpush1.bf16.msra.mxu0 %v8340_v7  ;;  %6053 = vmatpush3.bf16.msra.mxu1 %v8341_v47 }
 0x611   :  { %6030 = vmatprep.subr.bf16.mxu0 %v8342_v57  ;;  %6054 = vmatprep.subr.bf16.mxu1 %v8256_v38 }
 0x614   :  { %6032 = vmatpush1.bf16.msra.mxu0 %v8343_v17  ;;  %6056 = vmatpush3.bf16.msra.mxu1 %v8344_v27 }
 0x615   :  { %6058 = vmatprep.subr.bf16.mxu0 %v8345_v41  ;;  %6089 = vmatprep.subr.bf16.mxu1 %v8256_v38 }
 0x6aa   :  { %v2758_v37 = vpop.f32.mrb[26].mxu0  ;;  %v2829_v8 = vpop.f32.mrb[52].mxu1 }
 0x6ab   :  { %v6289_v5 = vadd.f32 %v8346_v34, %v2758_v37  ;;  %v2760_v58 = vpop.f32.mrb[27].mxu0  ;;  %v5025_v51 = vpop.f32.mrb[53].mxu1  ;;  %v2830_v41 = vadd.f32 %v2829_v8, %v7382_v63 }
 0x6ac   :  { %v6292_v1 = vadd.f32 %v8347_v21, %v2760_v58 }
 0x6ad   :  { %v4160_v47 = vmul.f32 -1.442695, %v6289_v5 }
 0x6ae   :  { %v4161_v57 = vmul.f32 -1.442695, %v6292_v1 }
 0x6af   :  { %6469 = vpow2.f32 %v4160_v47 }
 0x6b0   :  { %6471 = vpow2.f32 %v4161_v57 }
 0x6b9   :  { %v6470_v7 = vpop.eup %6469 }
 0x6ba   :  { %v2982_v17 = vadd.f32 1.0, %v6470_v7  ;;  %v6472_v27 = vpop.eup %6471 }
 0x6bb   :  { %v2989_v36 = vadd.f32 1.0, %v6472_v27 }
 0x6bc   :  { %6473 = vrcp.f32 %v2982_v17 }
 0x6bd   :  { %6475 = vrcp.f32 %v2989_v36 }
 0x6c6   :  { %v6474_v40 = vpop.eup %6473 }
 0x6c7   :  { %v2992_v56 = vmul.f32 %v6474_v40, %v2830_v41  ;;  %v6476_v17 = vpop.eup %6475 }
 0x6c8   :  { %v2995_v5 = vsub.f32 1.0, %v6476_v17  ;;  %v2997_v36 = vmul.f32 %v6476_v17, %v7751_v18 }
 0x6c9   :  { %v2993_v37 = vadd.f32 %v2992_v56, %v8348_v24  ;;  %v3028_v24 = vpop.permute.xlu0 %3027 }
 0x6ca   :  { %v2899_v34 = vpop.f32.mrb[4].mxu0  ;;  %v2970_v51 = vpop.f32.mrb[54].mxu1  ;;  %vm3029_vm3 = vcmp.eq.s32.totalorder %v3028_v24, 1 }
 0x6cb   :  { %6477 = vtanh.f32 %v2993_v37  ;;  %v6314_v21 = vadd.f32 %v7378_v0, %v2899_v34  ;;  %v2901_v47 = vpop.f32.mrb[5].mxu0  ;;  %v5060_v1 = vpop.f32.mrb[55].mxu1 }
 0x6cc   :  { %v6316_v7 = vadd.f32 %v7390_v26, %v2901_v47  ;;  %v2971_v47 = vadd.f32 %v2970_v51, %v7407_v53 }
 0x6cd   :  { %v4162_v57 = vmul.f32 -1.442695, %v6314_v21 }
 0x6ce   :  { %v4163_v27 = vmul.f32 -1.442695, %v6316_v7  ;;  %v8349_v7 = vld [vmem:[#allocation70_spill] sm:$0xff] }
 0x6cf   :  { %6479 = vpow2.f32 %v4162_v57 }
 0x6d0   :  { %6481 = vpow2.f32 %v4163_v27 }
 0x6d5   :  { %v6478_v8 = vpop.eup %6477 }
 0x6d6   :  { %v2996_v40 = vmul.f32 %v6478_v8, %v2995_v5 }
 0x6d8   :  { %v2998_v56 = vadd.f32 %v2997_v36, %v2996_v40  ;;  %v3035_v36 = vpop.permute.xlu1 %3034 }
 0x6d9   :  { %v6480_v41 = vpop.eup %6479  ;;  %vm3036_vm4 = vcmp.eq.s32.totalorder %v3035_v36, 1 }
 0x6da   :  { %v3007_v58 = vadd.f32 1.0, %v6480_v41  ;;  %v7841_v37 = vsel %vm3029_vm3, %v2998_v56, %v7751_v18  ;;  %v6482_v34 = vpop.eup %6481 }
 0x6db   :  { %3121 = vmatmul.mubr.f32.vlgmr.msra.gmra.mrb[28].mxu0 %v7841_v37  ;;  %5094 = vmatmul.mubr.f32.vlgmr.msra.gmra.mrb[56].mxu1 %v7841_v37  ;;  %v3014_v21 = vadd.f32 1.0, %v6482_v34 }
 0x6dc   :  { %6483 = vrcp.f32 %v3007_v58  ;;  %6060 = vmatpush1.bf16.msra.mxu0 %v6996_v10  ;;  %6091 = vmatpush3.bf16.msra.mxu1 %v7195_v12  ;;  %v8361_v58 = vld [vmem:[#allocation58_spill] sm:$0xff] }
 0x6dd   :  { %6062 = vmatprep.subr.bf16.mxu0 %v6999_v16  ;;  %6092 = vmatprep.subr.bf16.mxu1 %v8256_v38  ;;  %6485 = vrcp.f32 %v3014_v21 }
 0x6de   :  { %3261 = vmatprep.mubr.f32.mxu0 %v8227_v59  ;;  %5128 = vmatprep.mubr.msk.f32.mxu1 %vm6715_vm7, %v8227_v59 }
 0x6e0   :  { %6064 = vmatpush1.bf16.msra.mxu0 %v7010_v25  ;;  %6094 = vmatpush3.bf16.msra.mxu1 %v7202_v55 }
 0x6e1   :  { %6066 = vmatprep.subr.bf16.mxu0 %v7014_v30  ;;  %6095 = vmatprep.subr.bf16.mxu1 %v8256_v38 }
 0x6e4   :  { %6068 = vmatpush1.bf16.msra.mxu0 %v7029_v43  ;;  %6097 = vmatpush3.bf16.msra.mxu1 %v7210_v42 }
 0x6e5   :  { %6070 = vmatprep.subr.bf16.mxu0 %v7033_v50  ;;  %6098 = vmatprep.subr.bf16.mxu1 %v8256_v38 }
 0x6e6   :  { %v6484_v1 = vpop.eup %6483 }
 0x6e7   :  { %v3017_v57 = vmul.f32 %v6484_v1, %v2971_v47  ;;  %v6486_v51 = vpop.eup %6485 }
 0x6e8   :  { %6072 = vmatpush1.bf16.msra.mxu0 %v7048_v2  ;;  %6100 = vmatpush3.bf16.msra.mxu1 %v7214_v33  ;;  %v3020_v27 = vsub.f32 1.0, %v6486_v51  ;;  %v3022_v40 = vmul.f32 %v6486_v51, %v7794_v39 }
 0x6e9   :  { %v3018_v17 = vadd.f32 %v3017_v57, %v8349_v7  ;;  %6074 = vmatprep.subr.bf16.mxu0 %v7052_v9  ;;  %6101 = vmatprep.subr.bf16.mxu1 %v8256_v38 }
 0x6eb   :  { %6487 = vtanh.f32 %v3018_v17 }
 0x6ec   :  { %6076 = vmatpush1.bf16.msra.mxu0 %v7067_v23  ;;  %6103 = vmatpush3.bf16.msra.mxu1 %v7218_v6 }
 0x6ed   :  { %6078 = vmatprep.subr.bf16.mxu0 %v7071_v32  ;;  %6104 = vmatprep.subr.bf16.mxu1 %v8256_v38 }
 0x6f0   :  { %6080 = vmatpush1.bf16.msra.mxu0 %v7083_v49  ;;  %6106 = vmatpush3.bf16.msra.mxu1 %v7222_v52 }
 0x6f1   :  { %6082 = vmatprep.subr.bf16.mxu0 %v7087_v62  ;;  %6107 = vmatprep.subr.bf16.mxu1 %v8256_v38 }
 0x6f4   :  { %6084 = vmatpush1.bf16.msra.mxu0 %v7099_v19  ;;  %6109 = vmatpush3.bf16.msra.mxu1 %v7226_v46 }
 0x6f5   :  { %v6488_v5 = vpop.eup %6487  ;;  %6086 = vmatprep.subr.bf16.mxu0 %v7103_v29  ;;  %6110 = vmatprep.subr.bf16.mxu1 %v8256_v38 }
 0x6f6   :  { %v3021_v8 = vmul.f32 %v6488_v5, %v3020_v27 }
 0x6f8   :  { %6088 = vmatpush1.bf16.msra.mxu0 %v8257_v15  ;;  %6112 = vmatpush3.bf16.msra.mxu1 %v8258_v20  ;;  %v3023_v24 = vadd.f32 %v3022_v40, %v3021_v8  ;;  %v8362_v8 = vld [vmem:[#allocation66_spill] sm:$0xff] }
 0x6f9   :  { %6114 = vmatprep.subr.bf16.mxu0 %v8259_v48  ;;  %6145 = vmatprep.subr.bf16.mxu1 %v8256_v38  ;;  %v8350_v48 = vld [vmem:[#allocation30_spill] sm:$0xff] }
 0x6fa   :  { %v7884_v56 = vsel %vm3036_vm4, %v3023_v24, %v7794_v39 }
 0x6fb   :  { %3262 = vmatmul.mubr.f32.vlgmr.msra.gmra.mrb[2].mxu0 %v7884_v56  ;;  %5129 = vmatmul.mubr.f32.vlgmr.msra.gmra.mrb[58].mxu1 %v7884_v56 }
 0x6fc   :  { %6116 = vmatpush1.bf16.msra.mxu0 %v8261_v45  ;;  %6147 = vmatpush3.bf16.msra.mxu1 %v8262_v54  ;;  %v8351_v45 = vld [vmem:[#allocation31_spill] sm:$0xff] }
 0x6fd   :  { %6118 = vmatprep.subr.bf16.mxu0 %v8263_v31  ;;  %6148 = vmatprep.subr.bf16.mxu1 %v8256_v38  ;;  %v8352_v54 = vld [vmem:[#allocation43_spill] sm:$0xff]  ;;  %v8353_v31 = vld [vmem:[#allocation32_spill] sm:$0xff] }
 0x6fe   :  { %3484 = vmatprep.mubr.f32.mxu0 %v8227_v59  ;;  %5163 = vmatprep.mubr.msk.f32.mxu1 %vm6715_vm7, %v8227_v59 }
 0x700   :  { %6120 = vmatpush1.bf16.msra.mxu0 %v8264_v11  ;;  %6150 = vmatpush3.bf16.msra.mxu1 %v8265_v44  ;;  %v8354_v11 = vld [vmem:[#allocation33_spill] sm:$0xff]  ;;  %v8355_v44 = vld [vmem:[#allocation44_spill] sm:$0xff] }
 0x701   :  { %6122 = vmatprep.subr.bf16.mxu0 %v8266_v61  ;;  %6151 = vmatprep.subr.bf16.mxu1 %v8256_v38  ;;  %v8356_v61 = vld [vmem:[#allocation34_spill] sm:$0xff] }
 0x704   :  { %6124 = vmatpush1.bf16.msra.mxu0 %v8267_v35  ;;  %6153 = vmatpush3.bf16.msra.mxu1 %v8268_v13  ;;  %v8357_v35 = vld [vmem:[#allocation35_spill] sm:$0xff]  ;;  %v8358_v13 = vld [vmem:[#allocation45_spill] sm:$0xff] }
 0x705   :  { %6126 = vmatprep.subr.bf16.mxu0 %v8269_v14  ;;  %6154 = vmatprep.subr.bf16.mxu1 %v8256_v38  ;;  %v8359_v14 = vld [vmem:[#allocation36_spill] sm:$0xff] }
 0x708   :  { %6128 = vmatpush1.bf16.msra.mxu0 %v8270_v28  ;;  %6156 = vmatpush3.bf16.msra.mxu1 %v8271_v3 }
 0x709   :  { %6130 = vmatprep.subr.bf16.mxu0 %v8272_v22  ;;  %6157 = vmatprep.subr.bf16.mxu1 %v8256_v38  ;;  %v8360_v22 = vld [vmem:[#allocation57_spill] sm:$0xff] }
 0x70c   :  { %6132 = vmatpush1.bf16.msra.mxu0 %v8273_v4  ;;  %6159 = vmatpush3.bf16.msra.mxu1 %v8289_v60 }
 0x70d   :  { %6134 = vmatprep.subr.bf16.mxu0 %v8350_v48  ;;  %6160 = vmatprep.subr.bf16.mxu1 %v8256_v38 }
 0x710   :  { %6136 = vmatpush1.bf16.msra.mxu0 %v8351_v45  ;;  %6162 = vmatpush3.bf16.msra.mxu1 %v8352_v54 }
 0x711   :  { %6138 = vmatprep.subr.bf16.mxu0 %v8353_v31  ;;  %6163 = vmatprep.subr.bf16.mxu1 %v8256_v38 }
 0x714   :  { %6140 = vmatpush1.bf16.msra.mxu0 %v8354_v11  ;;  %6165 = vmatpush3.bf16.msra.mxu1 %v8355_v44 }
 0x715   :  { %6142 = vmatprep.subr.bf16.mxu0 %v8356_v61  ;;  %6166 = vmatprep.subr.bf16.mxu1 %v8256_v38 }
 0x718   :  { %6144 = vmatpush1.bf16.msra.mxu0 %v8357_v35  ;;  %6168 = vmatpush3.bf16.msra.mxu1 %v8358_v13 }
 0x719   :  { %6170 = vmatprep.subr.bf16.mxu0 %v8359_v14  ;;  %6201 = vmatprep.subr.bf16.mxu1 %v8256_v38 }
 0x7ae   :  { %v3122_v28 = vpop.f32.mrb[28].mxu0  ;;  %v3193_v3 = vpop.f32.mrb[56].mxu1 }
 0x7af   :  { %v6295_v4 = vadd.f32 %v8360_v22, %v3122_v28  ;;  %v3124_v60 = vpop.f32.mrb[29].mxu0  ;;  %v5095_v41 = vpop.f32.mrb[57].mxu1  ;;  %v3194_v51 = vadd.f32 %v3193_v3, %v7382_v63 }
 0x7b0   :  { %v6298_v34 = vadd.f32 %v8361_v58, %v3124_v60  ;;  %v3392_v3 = vpop.permute.xlu0 %3391 }
 0x7b1   :  { %v4166_v21 = vmul.f32 -1.442695, %v6295_v4  ;;  %vm3393_vm5 = vcmp.eq.s32.totalorder %v3392_v3, 1  ;;  %v3825_v3 = vld [vmem:[#allocation14 + $0xe8] sm:$0xff] }
 0x7b2   :  { %v4167_v47 = vmul.f32 -1.442695, %v6298_v34 }
 0x7b3   :  { %6489 = vpow2.f32 %v4166_v21  ;;  %v3816_v21 = vld [vmem:[#allocation14 + $0xa0] sm:$0xff] }
 0x7b4   :  { %6491 = vpow2.f32 %v4167_v47  ;;  %v3817_v47 = vld [vmem:[#allocation14 + $0xa8] sm:$0xff] }
 0x7bd   :  { %v6490_v1 = vpop.eup %6489 }
 0x7be   :  { %v3346_v57 = vadd.f32 1.0, %v6490_v1  ;;  %v6492_v7 = vpop.eup %6491  ;;  %v6233_v1 = vpack.c.bf16 %v3817_v47, %v3816_v21 }
 0x7bf   :  { %v3353_v17 = vadd.f32 1.0, %v6492_v7  ;;  %v3801_v7 = vld [vmem:[#allocation14 + $0x28] sm:$0xff] }
 0x7c0   :  { %6493 = vrcp.f32 %v3346_v57  ;;  %v3800_v57 = vld [vmem:[#allocation14 + $0x20] sm:$0xff] }
 0x7c1   :  { %6495 = vrcp.f32 %v3353_v17  ;;  %v6235_v17 = vpack.c.bf16 %v3801_v7, %v3800_v57 }
 0x7ca   :  { %v6494_v27 = vpop.eup %6493 }
 0x7cb   :  { %v3356_v5 = vmul.f32 %v6494_v27, %v3194_v51  ;;  %v6496_v44 = vpop.eup %6495  ;;  %v3818_v51 = vld [vmem:[#allocation14 + $0xb0] sm:$0xff]  ;;  %v3819_v27 = vld [vmem:[#allocation14 + $0xb8] sm:$0xff] }
 0x7cc   :  { %v3359_v35 = vsub.f32 1.0, %v6496_v44  ;;  %v3361_v28 = vmul.f32 %v6496_v44, %v7841_v37  ;;  %v3823_v44 = vld [vmem:[#allocation14 + $0xd8] sm:$0xff] }
 0x7cd   :  { %v3357_v40 = vadd.f32 %v3356_v5, %v8362_v8  ;;  %v6237_v5 = vpack.c.bf16 %v3819_v27, %v3818_v51  ;;  %v3802_v8 = vld [vmem:[#allocation14 + $0x30] sm:$0xff] }
 0x7ce   :  { %v3263_v36 = vpop.f32.mrb[2].mxu0  ;;  %v3334_v24 = vpop.f32.mrb[58].mxu1 }
 0x7cf   :  { %6497 = vtanh.f32 %v3357_v40  ;;  %v6310_v48 = vadd.f32 %v7378_v0, %v3263_v36  ;;  %v3265_v45 = vpop.f32.mrb[3].mxu0  ;;  %v5130_v54 = vpop.f32.mrb[59].mxu1  ;;  %v3803_v40 = vld [vmem:[#allocation14 + $0x38] sm:$0xff] }
 0x7d0   :  { %v6312_v11 = vadd.f32 %v7390_v26, %v3265_v45  ;;  %v6239_v36 = vpack.c.bf16 %v3803_v40, %v3802_v8  ;;  %v3804_v45 = vld [vmem:[#allocation14 + $0x40] sm:$0xff] }
 0x7d1   :  { %v4168_v31 = vmul.f32 -1.442695, %v6310_v48  ;;  %v3821_v48 = vld [vmem:[#allocation14 + $0xc8] sm:$0xff] }
 0x7d2   :  { %v4169_v61 = vmul.f32 -1.442695, %v6312_v11  ;;  %v3822_v11 = vld [vmem:[#allocation14 + $0xd0] sm:$0xff] }
 0x7d3   :  { %6499 = vpow2.f32 %v4168_v31  ;;  %v3805_v31 = vld [vmem:[#allocation14 + $0x48] sm:$0xff] }
 0x7d4   :  { %6501 = vpow2.f32 %v4169_v61  ;;  %v6243_v61 = vpack.c.bf16 %v3805_v31, %v3804_v45 }
 0x7d9   :  { %v6498_v13 = vpop.eup %6497 }
 0x7da   :  { %v3360_v14 = vmul.f32 %v6498_v13, %v3359_v35  ;;  %v6245_v35 = vpack.c.bf16 %v3823_v44, %v3822_v11  ;;  %v3806_v13 = vld [vmem:[#allocation14 + $0x50] sm:$0xff]  ;;  %v3762_v11 = vpop.permute.xlu0 %3761 }
 0x7dc   :  { %v3362_v22 = vadd.f32 %v3361_v28, %v3360_v14  ;;  %v3807_v14 = vld [vmem:[#allocation14 + $0x58] sm:$0xff]  ;;  %v3824_v28 = vld [vmem:[#allocation14 + $0xe0] sm:$0xff] }
 0x7dd   :  { %v6500_v4 = vpop.eup %6499 }
 0x7de   :  { %v3371_v60 = vadd.f32 1.0, %v6500_v4  ;;  %v7931_v41 = vsel %vm3393_vm5, %v3362_v22, %v7841_v37  ;;  %v6502_v58 = vpop.eup %6501  ;;  %v6247_v22 = vpack.c.bf16 %v3807_v14, %v3806_v13  ;;  %v6249_v4 = vpack.c.bf16 %v3825_v3, %v3824_v28  ;;  %v8367_v13 = vld [vmem:[#allocation68_spill] sm:$0xff]  ;;  %v1216_v28 = vpop.permute.xlu0 %1215 }
 0x7df   :  { %3485 = vmatmul.mubr.f32.vlgmr.msra.gmra.mrb[30].mxu0 %v7931_v41  ;;  %5164 = vmatmul.mubr.f32.vlgmr.msra.gmra.mrb[60].mxu1 %v7931_v41 }
 0x7e0   :  { %6503 = vrcp.f32 %v3371_v60  ;;  %6172 = vmatpush1.bf16.msra.mxu0 %v6996_v10  ;;  %6203 = vmatpush3.bf16.msra.mxu1 %v7195_v12  ;;  %v3378_v10 = vadd.f32 1.0, %v6502_v58  ;;  %v3808_v60 = vld [vmem:[#allocation14 + $0x60] sm:$0xff]  ;;  %v3809_v58 = vld [vmem:[#allocation14 + $0x68] sm:$0xff] }
 0x7e1   :  { %6174 = vmatprep.subr.bf16.mxu0 %v6999_v16  ;;  %6204 = vmatprep.subr.bf16.mxu1 %v8256_v38  ;;  %v3335_v16 = vadd.f32 %v3334_v24, %v7407_v53  ;;  %v3820_v24 = vld [vmem:[#allocation14 + $0xc0] sm:$0xff] }
 0x7e2   :  { %3625 = vmatprep.mubr.f32.mxu0 %v8227_v59  ;;  %5198 = vmatprep.mubr.msk.f32.mxu1 %vm6715_vm7, %v8227_v59  ;;  %6505 = vrcp.f32 %v3378_v10  ;;  %v6241_v54 = vpack.c.bf16 %v3821_v48, %v3820_v24  ;;  %v3826_v10 = vld [vmem:[#allocation14 + $0xf0] sm:$0xff]  ;;  %vm3763_vm7 = vcmp.eq.s32.totalorder %v3762_v11, 1 }
 0x7e4   :  { %6176 = vmatpush1.bf16.msra.mxu0 %v7010_v25  ;;  %6206 = vmatpush3.bf16.msra.mxu1 %v7202_v55  ;;  %v8363_v25 = vld [vmem:[#allocation67_spill] sm:$0xff] }
 0x7e5   :  { %6178 = vmatprep.subr.bf16.mxu0 %v7014_v30  ;;  %6207 = vmatprep.subr.bf16.mxu1 %v8256_v38 }
 0x7e8   :  { %6180 = vmatpush1.bf16.msra.mxu0 %v7029_v43  ;;  %6209 = vmatpush3.bf16.msra.mxu1 %v7210_v42  ;;  %v3814_v42 = vld [vmem:[#allocation14 + $0x90] sm:$0xff] }
 0x7e9   :  { %6182 = vmatprep.subr.bf16.mxu0 %v7033_v50  ;;  %6210 = vmatprep.subr.bf16.mxu1 %v8256_v38 }
 0x7ea   :  { %v6504_v12 = vpop.eup %6503 }
 0x7eb   :  { %v3381_v59 = vmul.f32 %v6504_v12, %v3335_v16  ;;  %v3827_v16 = vld [vmem:[#allocation14 + $0xf8] sm:$0xff]  ;;  %v6251_v12 = vpack.c.bf16 %v3809_v58, %v3808_v60 }
 0x7ec   :  { %6184 = vmatpush1.bf16.msra.mxu0 %v7048_v2  ;;  %6212 = vmatpush3.bf16.msra.mxu1 %v7214_v33  ;;  %v6506_v43 = vpop.eup %6505  ;;  %v3815_v33 = vld [vmem:[#allocation14 + $0x98] sm:$0xff] }
 0x7ed   :  { %v3382_v30 = vadd.f32 %v3381_v59, %v8363_v25  ;;  %6186 = vmatprep.subr.bf16.mxu0 %v7052_v9  ;;  %6213 = vmatprep.subr.bf16.mxu1 %v8256_v38  ;;  %v3384_v50 = vsub.f32 1.0, %v6506_v43  ;;  %v3386_v9 = vmul.f32 %v6506_v43, %v7884_v56  ;;  %v6253_v59 = vpack.c.bf16 %v3827_v16, %v3826_v10  ;;  %v3810_v25 = vld [vmem:[#allocation14 + $0x70] sm:$0xff] }
 0x7ef   :  { %6507 = vtanh.f32 %v3382_v30  ;;  %v3811_v30 = vld [vmem:[#allocation14 + $0x78] sm:$0xff] }
 0x7f0   :  { %6188 = vmatpush1.bf16.msra.mxu0 %v7067_v23  ;;  %6215 = vmatpush3.bf16.msra.mxu1 %v7218_v6  ;;  %v3399_v23 = vpop.permute.xlu1 %3398  ;;  %v6255_v43 = vpack.c.bf16 %v3811_v30, %v3810_v25 }
 0x7f1   :  { %6190 = vmatprep.subr.bf16.mxu0 %v7071_v32  ;;  %6216 = vmatprep.subr.bf16.mxu1 %v8256_v38  ;;  %vm3400_vm6 = vcmp.eq.s32.totalorder %v3399_v23, 1 }
 0x7f4   :  { %6192 = vmatpush1.bf16.msra.mxu0 %v7083_v49  ;;  %6218 = vmatpush3.bf16.msra.mxu1 %v7222_v52  ;;  %v3813_v49 = vld [vmem:[#allocation14 + $0x88] sm:$0xff] }
 0x7f5   :  { %6194 = vmatprep.subr.bf16.mxu0 %v7087_v62  ;;  %6219 = vmatprep.subr.bf16.mxu1 %v8256_v38 }
 0x7f8   :  { %6196 = vmatpush1.bf16.msra.mxu0 %v7099_v19  ;;  %6221 = vmatpush3.bf16.msra.mxu1 %v7226_v46  ;;  %v3812_v46 = vld [vmem:[#allocation14 + $0x80] sm:$0xff] }
 0x7f9   :  { %v6508_v2 = vpop.eup %6507  ;;  %6198 = vmatprep.subr.bf16.mxu0 %v7103_v29  ;;  %6222 = vmatprep.subr.bf16.mxu1 %v8256_v38  ;;  %v6225_v62 = vpack.c.bf16 %v3813_v49, %v3812_v46  ;;  %v3796_v19 = vld [vmem:[#allocation14] sm:$0xff]  ;;  %v3797_v29 = vld [vmem:[#allocation14 + $0x8] sm:$0xff]  ;;  %v6229_v38 = vpack.c.bf16 %v3815_v33, %v3814_v42  ;;  %v8365_v46 = vld [vmem:[#allocation60_spill] sm:$0xff] }
 0x7fa   :  { %v3385_v6 = vmul.f32 %v6508_v2, %v3384_v50  ;;  %v6227_v55 = vpack.c.bf16 %v3797_v29, %v3796_v19 }
 0x7fc   :  { %6200 = vmatpush1.bf16.msra.mxu0 %v8257_v15  ;;  %6224 = vmatpush3.bf16.msra.mxu1 %v8258_v20  ;;  %v3387_v52 = vadd.f32 %v3386_v9, %v3385_v6  ;;  %v3798_v15 = vld [vmem:[#allocation14 + $0x10] sm:$0xff]  ;;  %v3799_v20 = vld [vmem:[#allocation14 + $0x18] sm:$0xff]  ;;  %v8364_v6 = vld [vmem:[#allocation59_spill] sm:$0xff] }
 0x7fd   :  { %6226 = vmatprep.subr.bf16.mxu0 %v6225_v62  ;;  %v6231_v34 = vpack.c.bf16 %v3799_v20, %v3798_v15 }
 0x7fe   :  { %v7972_v32 = vsel %vm3400_vm6, %v3387_v52, %v7884_v56 }
 0x7ff   :  { %3626 = vmatmul.mubr.f32.vlgmr.msra.gmra.mrb[0].mxu0 %v7972_v32  ;;  %5199 = vmatmul.mubr.f32.vlgmr.msra.gmra.mrb[62].mxu1 %v7972_v32 }
 0x800   :  { %6228 = vmatpush3.bf16.msra.mxu0 %v6227_v55 }
 0x801   :  { %6230 = vmatprep.subr.bf16.mxu0 %v6229_v38 }
 0x804   :  { %6232 = vmatpush3.bf16.msra.mxu0 %v6231_v34  ;;  %v8366_v34 = vld [vmem:[#allocation65_spill] sm:$0xff] }
 0x805   :  { %6234 = vmatprep.subr.bf16.mxu0 %v6233_v1 }
 0x808   :  { %6236 = vmatpush3.bf16.msra.mxu0 %v6235_v17 }
 0x809   :  { %6238 = vmatprep.subr.bf16.mxu0 %v6237_v5 }
 0x80c   :  { %6240 = vmatpush3.bf16.msra.mxu0 %v6239_v36 }
 0x80d   :  { %6242 = vmatprep.subr.bf16.mxu0 %v6241_v54 }
 0x810   :  { %6244 = vmatpush3.bf16.msra.mxu0 %v6243_v61  ;;  %v3776_v61 = vpop.permute.xlu1 %3775 }
 0x811   :  { %6246 = vmatprep.subr.bf16.mxu0 %v6245_v35 }
 0x814   :  { %6248 = vmatpush3.bf16.msra.mxu0 %v6247_v22  ;;  %v3413_v3 = vpop.permute.xlu1 %3412  ;;  %v1581_v22 = vpop.permute.xlu0 %1580 }
 0x815   :  { %6250 = vmatprep.subr.bf16.mxu0 %v6249_v4 }
 0x818   :  { %6252 = vmatpush3.bf16.msra.mxu0 %v6251_v12  ;;  %v3049_v60 = vpop.permute.xlu1 %3048  ;;  %v1947_v16 = vpop.permute.xlu0 %1946 }
 0x819   :  { %6254 = vmatprep.subr.bf16.mxu0 %v6253_v59 }
 0x81c   :  { %6256 = vmatpush3.bf16.msra.mxu0 %v6255_v43 }
 0x8b2   :  { %v3486_v50 = vpop.f32.mrb[30].mxu0  ;;  %v3557_v2 = vpop.f32.mrb[60].mxu1 }
 0x8b3   :  { %v6301_v9 = vadd.f32 %v8364_v6, %v3486_v50  ;;  %v3488_v23 = vpop.f32.mrb[31].mxu0  ;;  %v5165_v52 = vpop.f32.mrb[61].mxu1  ;;  %v3558_v38 = vadd.f32 %v3557_v2, %v7382_v63  ;;  %v8368_v2 = vld [vmem:[#allocation73_spill] sm:$0xff] }
 0x8b4   :  { %v6304_v49 = vadd.f32 %v8365_v46, %v3488_v23  ;;  %v2313_v50 = vpop.permute.xlu0 %2312  ;;  %v7992_v6 = vmul.f32 %v1216_v28, %v8368_v2  ;;  %v8369_v52 = vld [vmem:[#allocation46_spill] sm:$0xff] }
 0x8b5   :  { %v4171_v62 = vmul.f32 -1.442695, %v6301_v9  ;;  %v7996_v9 = vmul.f32 %v3413_v3, %v7972_v32  ;;  %v8001_v46 = vmul.f32 %v1581_v22, %v8369_v52  ;;  %v4176_v28 = vld [vmem:[%s8131_s12] ss:$0 sm:$0xff] }
 0x8b6   :  { %v4172_v19 = vmul.f32 -1.442695, %v6304_v49  ;;  %v8004_v49 = vmul.f32 %v3049_v60, %v7884_v56 }
 0x8b7   :  { %6509 = vpow2.f32 %v4171_v62 }
 0x8b8   :  { %6511 = vpow2.f32 %v4172_v19  ;;  %v2677_v62 = vpop.permute.xlu0 %2676  ;;  %v8370_v19 = vld [vmem:[#allocation21_spill] sm:$0xff] }
 0x8c1   :  { %v6510_v29 = vpop.eup %6509 }
 0x8c2   :  { %v3710_v55 = vadd.f32 1.0, %v6510_v29  ;;  %v6512_v42 = vpop.eup %6511  ;;  %v8009_v29 = vmul.f32 %v1947_v16, %v8370_v19 }
 0x8c3   :  { %v3717_v33 = vadd.f32 1.0, %v6512_v42  ;;  %v3041_v42 = vpop.permute.xlu0 %3040 }
 0x8c4   :  { %6513 = vrcp.f32 %v3710_v55 }
 0x8c5   :  { %6515 = vrcp.f32 %v3717_v33  ;;  %v8371_v33 = vld [vmem:[#allocation22_spill] sm:$0xff] }
 0x8c6   :  { %v8017_v56 = vmul.f32 %v2313_v50, %v8371_v33 }
 0x8ce   :  { %v6514_v15 = vpop.eup %6513 }
 0x8cf   :  { %v3720_v20 = vmul.f32 %v6514_v15, %v3558_v38  ;;  %v6516_v5 = vpop.eup %6515  ;;  %v8372_v38 = vld [vmem:[#allocation23_spill] sm:$0xff] }
 0x8d0   :  { %v3723_v40 = vsub.f32 1.0, %v6516_v5  ;;  %v3725_v24 = vmul.f32 %v6516_v5, %v7931_v41 }
 0x8d1   :  { %v3721_v21 = vadd.f32 %v3720_v20, %v8366_v34  ;;  %v8025_v34 = vmul.f32 %v2677_v62, %v7751_v18 }
 0x8d2   :  { %v3627_v47 = vpop.f32.mrb[0].mxu0  ;;  %v3698_v1 = vpop.f32.mrb[62].mxu1 }
 0x8d3   :  { %6517 = vtanh.f32 %v3721_v21  ;;  %v6306_v57 = vadd.f32 %v7378_v0, %v3627_v47  ;;  %v3629_v7 = vpop.f32.mrb[1].mxu0  ;;  %v5200_v17 = vpop.f32.mrb[63].mxu1  ;;  %v3699_v44 = vadd.f32 %v3698_v1, %v7407_v53  ;;  %v8033_v1 = vmul.f32 %v3041_v42, %v7841_v37 }
 0x8d4   :  { %v6308_v27 = vadd.f32 %v7390_v26, %v3629_v7  ;;  %v2685_v53 = vpop.permute.xlu1 %2684  ;;  %v3405_v47 = vpop.permute.xlu0 %3404 }
 0x8d5   :  { %v4173_v51 = vmul.f32 -1.442695, %v6306_v57  ;;  %v8012_v55 = vmul.f32 %v2685_v53, %v7794_v39  ;;  %v8373_v39 = vld [vmem:[#allocation38_spill] sm:$0xff]  ;;  %v8374_v57 = vld [vmem:[#allocation20_spill] sm:$0xff] }
 0x8d6   :  { %v4174_v8 = vmul.f32 -1.442695, %v6308_v27  ;;  %v8375_v27 = vld [vmem:[#allocation37_spill] sm:$0xff] }
 0x8d7   :  { %6519 = vpow2.f32 %v4173_v51  ;;  %v8041_v51 = vmul.f32 %v3405_v47, %v7931_v41 }
 0x8d8   :  { %6521 = vpow2.f32 %v4174_v8  ;;  %v2321_v23 = vpop.permute.xlu1 %2320  ;;  %v1223_v18 = vpop.permute.xlu0 %1222 }
 0x8d9   :  { %v8020_v15 = vmul.f32 %v2321_v23, %v8372_v38  ;;  %v8044_v5 = vmul.f32 %v1223_v18, %v8375_v27 }
 0x8dd   :  { %v6518_v63 = vpop.eup %6517 }
 0x8de   :  { %v3724_v36 = vmul.f32 %v6518_v63, %v3723_v40 }
 0x8e0   :  { %v7983_v48 = vadd.f32 %v3725_v24, %v3724_v36  ;;  %v4175_v36 = vld [vmem:[%s8130_s11] ss:$0 sm:$0xff] }
 0x8e1   :  { %v6520_v45 = vpop.eup %6519 }
 0x8e2   :  { %v3734_v54 = vadd.f32 1.0, %v6520_v45  ;;  %v6522_v0 = vpop.eup %6521 }
 0x8e3   :  { %v3741_v31 = vadd.f32 1.0, %v6522_v0 }
 0x8e4   :  { %6523 = vrcp.f32 %v3734_v54 }
 0x8e5   :  { %6525 = vrcp.f32 %v3741_v31 }
 0x8ee   :  { %v6524_v26 = vpop.eup %6523 }
 0x8ef   :  { %v3744_v35 = vmul.f32 %v6524_v26, %v3699_v44  ;;  %v6526_v4 = vpop.eup %6525 }
 0x8f0   :  { %v3747_v58 = vsub.f32 1.0, %v6526_v4  ;;  %v3749_v59 = vmul.f32 %v6526_v4, %v7972_v32 }
 0x8f1   :  { %v3745_v14 = vadd.f32 %v3744_v35, %v8367_v13 }
 0x8f3   :  { %6527 = vtanh.f32 %v3745_v14 }
 0x8fd   :  { %v6528_v10 = vpop.eup %6527 }
 0x8fe   :  { %v3748_v12 = vmul.f32 %v6528_v10, %v3747_v58 }
 0x900   :  { %v3750_v25 = vadd.f32 %v3749_v59, %v3748_v12 }
 0x902   :  { %v3764_v30 = vsel %vm3763_vm7, %v3750_v25, %v7972_v32  ;;  %v1955_v32 = vpop.permute.xlu1 %1954 }
 0x903   :  { %v7989_v43 = vmul.f32 %v3776_v61, %v3764_v30  ;;  %v8028_v21 = vmul.f32 %v1955_v32, %v8373_v39 }
 0x905   :  { %3899 = vmatprep.mubr.f32.mxu0 %v7989_v43 }
 0x906   :  { %3900 = vmatmul.mubr.f32.vlgmr.msra.gmra.mrb[32].mxu0 %v7992_v6  ;;  %v1589_v20 = vpop.permute.xlu1 %1588 }
 0x907   :  { %3904 = vmatprep.mubr.f32.mxu0 %v7996_v9  ;;  %v8036_v7 = vmul.f32 %v1589_v20, %v8374_v57 }
 0x90a   :  { %3905 = vmatmul.mubr.f32.gmra.mrb[34].mxu0 %v8001_v46  ;;  %v3755_v17 = vpop.permute.xlu1 %3754 }
 0x90b   :  { %3909 = vmatprep.mubr.f32.mxu0 %v8004_v49  ;;  %vm3756_vm8 = vcmp.eq.s32.totalorder %v3755_v17, 1 }
 0x90c   :  { %v3757_v37 = vsel %vm3756_vm8, %v7983_v48, %v7931_v41 }
 0x90e   :  { %3910 = vmatmul.mubr.f32.gmra.mrb[36].mxu0 %v8009_v29  ;;  %v3768_v8 = vpop.permute.xlu1 %3767 }
 0x90f   :  { %3914 = vmatprep.mubr.f32.mxu0 %v8012_v55  ;;  %v8050_v40 = vmul.f32 %v3768_v8, %v3757_v37 }
 0x912   :  { %3915 = vmatmul.mubr.f32.gmra.mrb[38].mxu0 %v8017_v56 }
 0x913   :  { %3919 = vmatprep.mubr.f32.mxu0 %v8020_v15 }
 0x916   :  { %3920 = vmatmul.mubr.f32.gmra.mrb[40].mxu0 %v8025_v34 }
 0x917   :  { %3924 = vmatprep.mubr.f32.mxu0 %v8028_v21 }
 0x91a   :  { %3925 = vmatmul.mubr.f32.gmra.mrb[42].mxu0 %v8033_v1 }
 0x91b   :  { %3929 = vmatprep.mubr.f32.mxu0 %v8036_v7 }
 0x91e   :  { %3930 = vmatmul.mubr.f32.gmra.mrb[44].mxu0 %v8041_v51 }
 0x91f   :  { %3934 = vmatprep.mubr.f32.mxu0 %v8044_v5 }
 0x922   :  { %3935 = vmatmul.mubr.f32.gmra.mrb[46].mxu0 %v8050_v40 }
 0x9d9   :  { %v4529_v63 = vpop.f32.mrb[32].mxu0 }
 0x9da   :  { %v4530_v24 = vpop.f32.mrb[33].mxu0 }
 0x9db   :  { %v4531_v45 = vadd.f32 %v4530_v24, %v4529_v63 }
 0x9dd   :  { %v3902_v54 = vadd.f32 %v4531_v45, %v4175_v36  ;;  %v4532_v0 = vpop.f32.mrb[34].mxu0 }
 0x9de   :  { %v4533_v31 = vpop.f32.mrb[35].mxu0 }
 0x9df   :  { %6529 = vtanh.f32 %v3902_v54  ;;  %v4534_v41 = vadd.f32 %v4533_v31, %v4532_v0 }
 0x9e1   :  { %v3907_v48 = vadd.f32 %v4534_v41, %v4175_v36  ;;  %v4535_v11 = vpop.f32.mrb[36].mxu0 }
 0x9e2   :  { %v4536_v44 = vpop.f32.mrb[37].mxu0 }
 0x9e3   :  { %6531 = vtanh.f32 %v3907_v48  ;;  %v4537_v26 = vadd.f32 %v4536_v44, %v4535_v11  ;;  %v3995_v48 = vld [vmem:[%s8120_s1] sm:$0xff] }
 0x9e5   :  { %v3912_v61 = vadd.f32 %v4537_v26, %v4175_v36  ;;  %v4538_v35 = vpop.f32.mrb[38].mxu0 }
 0x9e6   :  { %v4539_v13 = vpop.f32.mrb[39].mxu0 }
 0x9e7   :  { %6533 = vtanh.f32 %v3912_v61  ;;  %v4540_v14 = vadd.f32 %v4539_v13, %v4538_v35  ;;  %v3996_v35 = vld [vmem:[%s8120_s1 + $0x8] sm:$0xff] }
 0x9e9   :  { %v6530_v3 = vpop.eup %6529  ;;  %v3917_v22 = vadd.f32 %v4540_v14, %v4175_v36  ;;  %v4541_v4 = vpop.f32.mrb[40].mxu0 }
 0x9ea   :  { %v4542_v60 = vpop.f32.mrb[41].mxu0  ;;  %v3955_v58 = vmul.f32 %v6530_v3, %v4176_v28 }
 0x9eb   :  { %6535 = vtanh.f32 %v3917_v22  ;;  %v4543_v10 = vadd.f32 %v4542_v60, %v4541_v4  ;;  %v3997_v22 = vld [vmem:[%s8120_s1 + $0x10] sm:$0xff] }
 0x9ec   :  { %3963 = vadd.xlane.f32.xlu0 %v3955_v58 }
 0x9ed   :  { %v6532_v16 = vpop.eup %6531  ;;  %v3922_v12 = vadd.f32 %v4543_v10, %v4175_v36  ;;  %v4544_v59 = vpop.f32.mrb[42].mxu0 }
 0x9ee   :  { %v4545_v25 = vpop.f32.mrb[43].mxu0  ;;  %v3956_v53 = vmul.f32 %v6532_v16, %v4176_v28  ;;  %v3998_v16 = vld [vmem:[%s8120_s1 + $0x18] sm:$0xff] }
 0x9ef   :  { %6537 = vtanh.f32 %v3922_v12  ;;  %v4546_v30 = vadd.f32 %v4545_v25, %v4544_v59 }
 0x9f0   :  { %3965 = vadd.xlane.f32.xlu1 %v3956_v53 }
 0x9f1   :  { %v6534_v50 = vpop.eup %6533  ;;  %v3927_v2 = vadd.f32 %v4546_v30, %v4175_v36  ;;  %v4547_v23 = vpop.f32.mrb[44].mxu0  ;;  %v3999_v30 = vld [vmem:[%s8120_s1 + $0x20] sm:$0xff] }
 0x9f2   :  { %v4548_v52 = vpop.f32.mrb[45].mxu0  ;;  %v3957_v62 = vmul.f32 %v6534_v50, %v4176_v28 }
 0x9f3   :  { %6539 = vtanh.f32 %v3927_v2  ;;  %v4549_v19 = vadd.f32 %v4548_v52, %v4547_v23 }
 0x9f4   :  { %3967 = vadd.xlane.f32.xlu0 %v3957_v62 }
 0x9f5   :  { %v6536_v32 = vpop.eup %6535  ;;  %v3932_v42 = vadd.f32 %v4549_v19, %v4175_v36  ;;  %v4550_v33 = vpop.f32.mrb[46].mxu0  ;;  %v4000_v19 = vld [vmem:[%s8120_s1 + $0x28] sm:$0xff] }
 0x9f6   :  { %v4551_v38 = vpop.f32.mrb[47].mxu0  ;;  %v3958_v20 = vmul.f32 %v6536_v32, %v4176_v28 }
 0x9f7   :  { %6541 = vtanh.f32 %v3932_v42  ;;  %v4552_v39 = vadd.f32 %v4551_v38, %v4550_v33 }
 0x9f8   :  { %3969 = vadd.xlane.f32.xlu0 %v3958_v20 }
 0x9f9   :  { %v6538_v47 = vpop.eup %6537  ;;  %v3937_v57 = vadd.f32 %v4552_v39, %v4175_v36 }
 0x9fa   :  { %v3959_v17 = vmul.f32 %v6538_v47, %v4176_v28 }
 0x9fb   :  { %6543 = vtanh.f32 %v3937_v57  ;;  %v4001_v57 = vld [vmem:[%s8120_s1 + $0x30] sm:$0xff] }
 0x9fc   :  { %3971 = vadd.xlane.f32.xlu1 %v3959_v17 }
 0x9fd   :  { %v6540_v18 = vpop.eup %6539 }
 0x9fe   :  { %v3960_v27 = vmul.f32 %v6540_v18, %v4176_v28 }
 0xa00   :  { %3973 = vadd.xlane.f32.xlu0 %v3960_v27 }
 0xa01   :  { %v6542_v37 = vpop.eup %6541 }
 0xa02   :  { %v3961_v8 = vmul.f32 %v6542_v37, %v4176_v28 }
 0xa04   :  { %3975 = vadd.xlane.f32.xlu1 %v3961_v8 }
 0xa05   :  { %v6544_v63 = vpop.eup %6543 }
 0xa06   :  { %v3962_v24 = vmul.f32 %v6544_v63, %v4176_v28 }
 0xa08   :  { %3977 = vadd.xlane.f32.xlu0 %v3962_v24  ;;  %v4002_v24 = vld [vmem:[%s8120_s1 + $0x38] sm:$0xff]  ;;  %s6716_s1 = smov [#allocation15]  }
 0xa09   :  { %s4114_s27 = sshll.u32 %s6716_s1, 4  ;;  %s4115_s27 = int_to_ptr.vmem [resolvable:$true] %s4114_s27 }
 0xa0a   :  { %s6673_s29 = scalar_lea.vmem %s4115_s27, 256  ;;  %p6678_p13 = scmp.lt.s32.totalorder %s4115_s27, %s4115_s27 }
 0xa0b   :  { %p6674_p12 = scmp.ne.s32.totalorder %s4115_s27, %s6673_s29  ;;  %p6679_p0 = scmp.lt.s32.totalorder %s6673_s29, %s6673_s29 }
 0xa0d   :  { %p6680_p1 = por %p6679_p0, %p6678_p13 }
 0xa0f   :  { %p6681_p2 = pnand %p6680_p1, %p6674_p12 }
 0xa79   :  { %v3964_v45 = vpop.xlane.xlu0 %3963 }
 0xa7a   :  { %v3979_v54 = vmul.f32 1.442695, %v3964_v45 }
 0xa7c   :  { %6545 = vpow2.f32 %v3979_v54 }
 0xa7d   :  { %v3966_v0 = vpop.xlane.xlu1 %3965 }
 0xa7e   :  { %v3981_v31 = vmul.f32 1.442695, %v3966_v0 }
 0xa80   :  { %6547 = vpow2.f32 %v3981_v31 }
 0xa81   :  { %v3968_v41 = vpop.xlane.xlu0 %3967 }
 0xa82   :  { %v3983_v36 = vmul.f32 1.442695, %v3968_v41 }
 0xa84   :  { %6549 = vpow2.f32 %v3983_v36 }
 0xa85   :  { %v3970_v11 = vpop.xlane.xlu0 %3969 }
 0xa86   :  { %v6546_v44 = vpop.eup %6545  ;;  %v3985_v26 = vmul.f32 1.442695, %v3970_v11 }
 0xa87   :  { %v4003_v61 = vmul.f32 %v6546_v44, %v3995_v48 }
 0xa88   :  { %6551 = vpow2.f32 %v3985_v26 }
 0xa89   :  { %v3972_v13 = vpop.xlane.xlu1 %3971  ;;  %4013 = vperm.xlu1 %6368, %v4003_v61   ;;  %v4082_v32 = vsel %vm4081_vm9, %v4003_v61, 0.0 }
 0xa8a   :  { %v6548_v14 = vpop.eup %6547  ;;  %v3987_v28 = vmul.f32 1.442695, %v3972_v13 }
 0xa8b   :  { %v4004_v3 = vmul.f32 %v6548_v14, %v3996_v35 }
 0xa8c   :  { %6553 = vpow2.f32 %v3987_v28 }
 0xa8d   :  { %4018 = vperm.xlu0 %6367, %v4004_v3   ;;  %v3974_v4 = vpop.xlane.xlu0 %3973  ;;  %v4083_v52 = vsel %vm4081_vm9, %v4004_v3, 0.0 }
 0xa8e   :  { %v6550_v60 = vpop.eup %6549  ;;  %v3989_v58 = vmul.f32 1.442695, %v3974_v4  ;;  %v4084_v38 = vadd.f32 %v4083_v52, %v4082_v32 }
 0xa8f   :  { %v4005_v10 = vmul.f32 %v6550_v60, %v3997_v22 }
 0xa90   :  { %6555 = vpow2.f32 %v3989_v58 }
 0xa91   :  { %v3976_v12 = vpop.xlane.xlu1 %3975  ;;  %4023 = vperm.xlu1 %6368, %v4005_v10   ;;  %v4085_v42 = vsel %vm4081_vm9, %v4005_v10, 0.0 }
 0xa92   :  { %v6552_v59 = vpop.eup %6551  ;;  %v3991_v25 = vmul.f32 1.442695, %v3976_v12  ;;  %v4086_v47 = vadd.f32 %v4085_v42, %v4084_v38 }
 0xa93   :  { %v4006_v53 = vmul.f32 %v6552_v59, %v3998_v16 }
 0xa94   :  { %6557 = vpow2.f32 %v3991_v25 }
 0xa95   :  { %4028 = vperm.xlu1 %6368, %v4006_v53   ;;  %v3978_v50 = vpop.xlane.xlu0 %3977  ;;  %v4087_v20 = vsel %vm4081_vm9, %v4006_v53, 0.0 }
 0xa96   :  { %v6554_v2 = vpop.eup %6553  ;;  %v3993_v23 = vmul.f32 1.442695, %v3978_v50  ;;  %v4088_v27 = vadd.f32 %v4087_v20, %v4086_v47 }
 0xa97   :  { %v4007_v62 = vmul.f32 %v6554_v2, %v3999_v30 }
 0xa98   :  { %6559 = vpow2.f32 %v3993_v23 }
 0xa99   :  { %4033 = vperm.xlu1 %6368, %v4007_v62   ;;  %v4089_v17 = vsel %vm4081_vm9, %v4007_v62, 0.0 }
 0xa9a   :  { %v6556_v33 = vpop.eup %6555  ;;  %v4090_v63 = vadd.f32 %v4089_v17, %v4088_v27 }
 0xa9b   :  { %v4008_v39 = vmul.f32 %v6556_v33, %v4000_v19 }
 0xa9d   :  { %v4091_v8 = vsel %vm4081_vm9, %v4008_v39, 0.0 }
 0xa9e   :  { %v6558_v18 = vpop.eup %6557  ;;  %v4092_v0 = vadd.f32 %v4091_v8, %v4090_v63 }
 0xa9f   :  { %v4009_v37 = vmul.f32 %v6558_v18, %v4001_v57 }
 0xaa1   :  { %v4093_v45 = vsel %vm4081_vm9, %v4009_v37, 0.0  ;;  %4043 = vperm.xlu1 %6368, %v4009_v37  }
 0xaa2   :  { %v6560_v54 = vpop.eup %6559  ;;  %v4094_v41 = vadd.f32 %v4093_v45, %v4092_v0 }
 0xaa3   :  { %v4010_v31 = vmul.f32 %v6560_v54, %v4002_v24 }
 0xaa5   :  { %v4095_v36 = vsel %vm4081_vm9, %v4010_v31, 0.0 }
 0xaa6   :  { %v4096_v48 = vadd.f32 %v4095_v36, %v4094_v41 }
 0xaa8   :  { %v4097_v11 = vadd.f32 0.0001, %v4096_v48 }
 0xaaa   :  { %4100 = vperm.xlu0 %6367, %v4097_v11  }
 0xaae   :  { %4038 = vperm.xlu0 %6367, %v4008_v39  }
 0xab2   :  { %4048 = vperm.xlu0 %6367, %v4010_v31  }
 0xb08   :  { %v4014_v44 = vpop.permute.xlu1 %4013 }
 0xb09   :  { %v4051_v28 = vmul.f32 %v4014_v44, %v7992_v6  ;;  %v4052_v22 = vmul.f32 %v4014_v44, %v7989_v43 }
 0xb0c   :  { %v4019_v61 = vpop.permute.xlu0 %4018 }
 0xb0d   :  { %v4053_v13 = vmul.f32 %v4019_v61, %v8001_v46  ;;  %v4054_v14 = vmul.f32 %v4019_v61, %v7996_v9 }
 0xb0f   :  { %v4067_v60 = vadd.f32 %v4053_v13, %v4051_v28  ;;  %v4074_v10 = vadd.f32 %v4054_v14, %v4052_v22 }
 0xb10   :  { %v4024_v26 = vpop.permute.xlu1 %4023 }
 0xb11   :  { %v4055_v3 = vmul.f32 %v4024_v26, %v8009_v29  ;;  %v4056_v4 = vmul.f32 %v4024_v26, %v8004_v49 }
 0xb13   :  { %v4068_v59 = vadd.f32 %v4067_v60, %v4055_v3  ;;  %v4075_v46 = vadd.f32 %v4074_v10, %v4056_v4 }
 0xb14   :  { %v4029_v35 = vpop.permute.xlu1 %4028 }
 0xb15   :  { %v4057_v16 = vmul.f32 %v4029_v35, %v8017_v56  ;;  %v4058_v12 = vmul.f32 %v4029_v35, %v8012_v55 }
 0xb17   :  { %v4069_v29 = vadd.f32 %v4068_v59, %v4057_v16  ;;  %v4076_v53 = vadd.f32 %v4075_v46, %v4058_v12 }
 0xb18   :  { %v4034_v58 = vpop.permute.xlu1 %4033 }
 0xb19   :  { %v4059_v9 = vmul.f32 %v4034_v58, %v8025_v34  ;;  %v4060_v6 = vmul.f32 %v4034_v58, %v8020_v15 }
 0xb1b   :  { %v4070_v49 = vadd.f32 %v4069_v29, %v4059_v9  ;;  %v4077_v50 = vadd.f32 %v4076_v53, %v4060_v6 }
 0xb20   :  { %v4044_v43 = vpop.permute.xlu1 %4043 }
 0xb21   :  { %v4063_v55 = vmul.f32 %v4044_v43, %v8041_v51  ;;  %v4064_v23 = vmul.f32 %v4044_v43, %v8036_v7 }
 0xb29   :  { %v4101_v25 = vpop.permute.xlu0 %4100 }
 0xb2a   :  { %6561 = vrcp.f32 %v4101_v25 }
 0xb2d   :  { %v4039_v30 = vpop.permute.xlu0 %4038 }
 0xb2e   :  { %v4061_v2 = vmul.f32 %v4039_v30, %v8033_v1  ;;  %v4062_v56 = vmul.f32 %v4039_v30, %v8028_v21 }
 0xb30   :  { %v4071_v52 = vadd.f32 %v4070_v49, %v4061_v2  ;;  %v4078_v62 = vadd.f32 %v4077_v50, %v4062_v56 }
 0xb31   :  { %v4049_v34 = vpop.permute.xlu0 %4048 }
 0xb32   :  { %v4072_v19 = vadd.f32 %v4071_v52, %v4063_v55  ;;  %v4079_v15 = vadd.f32 %v4078_v62, %v4064_v23  ;;  %v4065_v32 = vmul.f32 %v4049_v34, %v8050_v40  ;;  %v4066_v42 = vmul.f32 %v4049_v34, %v8044_v5 }
 0xb34   :  { %v6562_v33 = vpop.eup %6561  ;;  %v4073_v38 = vadd.f32 %v4072_v19, %v4065_v32  ;;  %v4080_v1 = vadd.f32 %v4079_v15, %v4066_v42 }
 0xb36   :  { %v4104_v20 = vmul.f32 %v6562_v33, %v4073_v38  ;;  %v4105_v21 = vmul.f32 %v6562_v33, %v4080_v1 }
 0xb38   :  { %4106 = vst [vmem:[#allocation15] sm:$0xff] %v4104_v20  ;;  %4107 = vst [vmem:[#allocation15 + $0x8] sm:$0xff] %v4105_v21 }
 0xb39   :  { %6684 = shalt.err (!%p6681_p2)
}
 0xb3a   :  { %s6685_s7 = scalar_lea.hbm %s8132_s13, 256 }
 0xb3b   :  { %p6686_p3 = scmp.ne.s32.totalorder %s8132_s13, %s6685_s7  ;;  %p6689_p4 = scmp.lt.u32.totalorder %s6685_s7, %s8132_s13 }
 0xb3d   :  { %p6691_p5 = pnand %p6689_p4, %p6686_p3 }
 0xb3f   :  { %6694 = shalt.err (!%p6691_p5)
}
 0xb40   :  { %4117 = dma.vmem_to_hbm [thread:$0]  %s4115_s27, 256, %s8132_s13, [#allocation8]  }
 0xb41   :  { %6701 = dma.done.wait [#allocation8], 256  }
 0xb42   :  { %6702 = vsyncadd [#allocation8], 4294967040 }
 0xb43   :  { %4121 = vsyncpa [#allocation7], 1 }
 0xb44   :  { %4122 = vsyncpa [#allocation10], 1 }
 0xb45   :  { %4123 = vsyncpa [#allocation13], 1 }
 0xb46   :  { %4124 = vsyncpa [#allocation8], 1 }

</bundles_post_ra>
